<compile_context>
chip_gen: v5e
topology: v5e:2x2
jax: 0.10.0
libtpu: 0.0.40
codegen_flags: <defaults>
</compile_context>

<pallas_src>
import math
import numpy as np
import jax
import jax.numpy as jnp
from jax import lax
from jax.experimental import pallas as pl
from jax.experimental.pallas import tpu as pltpu


# ----------------------- static operator matrices (numpy) -----------------------

def adaptive_pool_matrix(out_size, in_size):
    """(out, in) row-stochastic matrix implementing torch AdaptiveAvgPool1d bins."""
    m = np.zeros((out_size, in_size), np.float32)
    for i in range(out_size):
        s0 = (i * in_size) // out_size
        e0 = -((-(i + 1) * in_size) // out_size)          # ceil((i+1)*in/out)
        m[i, s0:e0] = 1.0 / (e0 - s0)
    return m


def bilinear_matrix(out_size, in_size, align_corners):
    """(out, in) 1-D bilinear interpolation matrix (torch semantics)."""
    m = np.zeros((out_size, in_size), np.float32)
    for d in range(out_size):
        if align_corners:
            if out_size == 1 or in_size == 1:
                src = 0.0
            else:
                src = d * (in_size - 1) / (out_size - 1)
        else:
            src = (d + 0.5) * in_size / out_size - 0.5
            src = min(max(src, 0.0), float(in_size - 1))
        i0 = min(max(int(np.floor(src)), 0), in_size - 1)
        i1 = min(i0 + 1, in_size - 1)
        w1 = src - i0
        m[d, i0] += 1.0 - w1
        m[d, i1] += w1
    return m


def _band_matrix(W, dx):
    """(W, W): band[w_in, w_out] = 1 iff w_in == w_out + dx - 1 (zero-pad conv)."""
    m = np.zeros((W, W), np.float32)
    for w_out in range(W):
        w_in = w_out + dx - 1
        if 0 <= w_in < W:
            m[w_in, w_out] = 1.0
    return m


def _padded_cin(cin, W):
    """Smallest Cin' >= Cin so W*Cin' is a multiple of 128 (if the pad is modest)."""
    step = 128 // math.gcd(W, 128)
    cp = int(math.ceil(cin / step) * step)
    return cp if cp <= max(2 * cin, cin + 8) else cin


# ----------------------------- constant precompute -----------------------------

def build_ppm_constants(params, pool_scales, H, W, in_channels, align_corners,
                        batch_block=1, compute_dtype=jnp.bfloat16):
    """Build all constant kernel operands once (numpy) and cache them on device."""
    cout = int(params['out_channels'])
    cin = int(in_channels)
    nb = int(batch_block)
    cdt = compute_dtype
    cp = _padded_cin(cin, W)
    WCo = W * cout

    k3 = np.asarray(params['bottleneck_w'], np.float32)        # (3,3,Ctot,Cout) HWIO
    bands = [_band_matrix(W, dx) for dx in range(3)]

    def fused_band(k3_block):
        # k3_block: (3, 3, cb, cout) -> (W*cb, 3*W*cout), dy taps stacked on lanes.
        cb = k3_block.shape[2]
        cols = []
        for dy in range(3):
            acc = np.zeros((W * cb, WCo), np.float32)
            for dx in range(3):
                acc = acc + np.kron(bands[dx], k3_block[dy, dx])
            cols.append(acc)
        return np.concatenate(cols, axis=1)

    eye_nb = np.eye(nb, dtype=np.float32)
    arrays = []
    for i, s in enumerate(pool_scales):
        ah = adaptive_pool_matrix(s, H)                        # (s, H)
        aw = adaptive_pool_matrix(s, W)                        # (s, W)
        lh = bilinear_matrix(H, s, align_corners)              # (H, s)
        lw = bilinear_matrix(W, s, align_corners)              # (W, s)
        w1 = np.asarray(params['branch_w'][i], np.float32)     # (cin, cout)
        w1p = np.zeros((cp, cout), np.float32)
        w1p[:cin] = w1
        sc = np.asarray(params['branch_bn'][i][0], np.float32)
        bi = np.asarray(params['branch_bn'][i][1], np.float32)

        ahb = np.kron(eye_nb, ah)                              # (nb*s, nb*H)
        pc = np.kron(aw.T, w1p)                                # (W*cp, s*cout)
        lhb = np.kron(eye_nb, lh)                              # (nb*H, nb*s)
        c0 = cin + i * cout                                    # concat channel offset
        kb_full = fused_band(k3[:, :, c0:c0 + cout, :])        # (W*cout, 3*WCo)
        kb = np.kron(lw.T, np.eye(cout, dtype=np.float32)) @ kb_full  # (s*cout, 3*WCo)

        arrays += [jnp.asarray(ahb, cdt),
                   jnp.asarray(pc, cdt),
                   jnp.asarray(lhb, cdt),
                   jnp.asarray(np.tile(sc, s)[None, :], jnp.float32),
                   jnp.asarray(np.tile(bi, s)[None, :], jnp.float32),
                   jnp.asarray(kb, cdt)]

    # x-block banded 3x3 (with zero rows for the padded input channels)
    k3x = np.zeros((3, 3, cp, cout), np.float32)
    k3x[:, :, :cin, :] = k3[:, :, :cin, :]
    kbx = fused_band(k3x)                                      # (W*cp, 3*WCo)

    # dy row-shift matrices (block-diagonal across folded batch samples)
    D = np.zeros((H, H), np.float32)
    U = np.zeros((H, H), np.float32)
    for h in range(1, H):
        D[h, h - 1] = 1.0                                      # acc[h] += T0[h-1]
    for h in range(H - 1):
        U[h, h + 1] = 1.0                                      # acc[h] += T2[h+1]
    sd = np.kron(eye_nb, D)
    su = np.kron(eye_nb, U)

    bsc = np.asarray(params['bottleneck_bn'][0], np.float32)
    bbi = np.asarray(params['bottleneck_bn'][1], np.float32)
    arrays += [jnp.asarray(kbx, cdt),
               jnp.asarray(sd, jnp.float32),
               jnp.asarray(su, jnp.float32),
               jnp.asarray(np.tile(bsc, W)[None, :], jnp.float32),
               jnp.asarray(np.tile(bbi, W)[None, :], jnp.float32)]

    return dict(arrays=arrays, pool_scales=tuple(int(s) for s in pool_scales),
                H=H, W=W, cin=cin, cp=cp, cout=cout, nb=nb, cdt=cdt)


# ---------------------------------- fused kernel ----------------------------------

def make_ppm_kernel(pool_scales, H, W, cp, cout, nb, cdt):
    ns = len(pool_scales)
    WCo = W * cout
    M = nb * H

    def kernel(*refs):
        x_ref = refs[0]
        o_ref = refs[-1]
        prm = refs[1:-1]
        per_scale = [prm[6 * i:6 * i + 6] for i in range(ns)]
        kbx_ref, sd_ref, su_ref, bsc_ref, bbi_ref = prm[6 * ns:6 * ns + 5]

        X = x_ref[...]                             # (nb, H, W*cp), compute dtype
        Xm = X.reshape(M, W * cp)                  # merge leading dims (layout-free)

        # x-block contribution: one wide dot, all 3 dy taps stacked on lanes
        T = jnp.dot(Xm, kbx_ref[...],
                    preferred_element_type=jnp.float32)        # (M, 3*WCo) f32

        for s, (ahb_ref, pc_ref, lhb_ref, sc_ref, bi_ref, kb_ref) in zip(
                pool_scales, per_scale):
            # adaptive avg pool over H (lane-dense, per-sample block-diagonal)
            pooled = jnp.dot(ahb_ref[...], Xm,
                             preferred_element_type=jnp.float32)   # (nb*s, W*cp)
            # pool over W + 1x1 conv folded into one matrix, then BN + ReLU
            y2 = jnp.dot(pooled.astype(cdt), pc_ref[...],
                         preferred_element_type=jnp.float32)       # (nb*s, s*cout)
            y2 = jnp.maximum(y2 * sc_ref[...] + bi_ref[...], 0.0).astype(cdt)
            if s == 1 and nb == 1:
                # upsample of a 1x1 map is a broadcast (avoid a K=1 dot)
                yh = jnp.broadcast_to(y2, (H, cout))
            else:
                # H-direction bilinear upsample (W-direction is folded into kb)
                yh = jnp.dot(lhb_ref[...], y2,
                             preferred_element_type=jnp.float32).astype(cdt)
            # branch contribution to the bottleneck (3 dy taps in one dot)
            T = T + jnp.dot(yh, kb_ref[...],
                            preferred_element_type=jnp.float32)    # (M, 3*WCo)

        # combine the three dy taps: identity + tiny shift-matrix matmuls
        acc = (T[:, WCo:2 * WCo]
               + jnp.dot(sd_ref[...], T[:, :WCo],
                         preferred_element_type=jnp.float32)
               + jnp.dot(su_ref[...], T[:, 2 * WCo:],
                         preferred_element_type=jnp.float32))
        out = jnp.maximum(acc * bsc_ref[...] + bbi_ref[...], 0.0)
        o_ref[...] = out.reshape(nb, H, WCo).astype(o_ref.dtype)

    return kernel


def _const_spec(shape, single_buffer):
    nd = len(shape)
    idx = lambda b, _n=nd: (0,) * _n
    if single_buffer:
        # Constant index_map -> fetched once; single-buffer to halve its VMEM.
        return pl.BlockSpec(shape, idx, pipeline_mode=pl.Buffered(1))
    return pl.BlockSpec(shape, idx)


# --------------------------------- module forward ---------------------------------

def pyramid_pooling_module(x_nchw, consts):
    ps, H, W = consts['pool_scales'], consts['H'], consts['W']
    cin, cp, cout = consts['cin'], consts['cp'], consts['cout']
    nb, cdt = consts['nb'], consts['cdt']
    arrays = consts['arrays']
    N = x_nchw.shape[0]
    assert x_nchw.shape == (N, cin, H, W)
    assert N % nb == 0
    WCo = W * cout

    x = jnp.transpose(x_nchw, (0, 2, 3, 1)).astype(cdt)        # NHWC
    if cp != cin:
        x = jnp.pad(x, ((0, 0), (0, 0), (0, 0), (0, cp - cin)))
    x2 = x.reshape(N, H, W * cp)                               # lane-dense slab

    kernel = make_ppm_kernel(ps, H, W, cp, cout, nb, cdt)

    def run(single_buffer):
        in_specs = [pl.BlockSpec((nb, H, W * cp), lambda b: (b, 0, 0))]
        in_specs += [_const_spec(a.shape, single_buffer) for a in arrays]
        return pl.pallas_call(
            kernel,
            out_shape=jax.ShapeDtypeStruct((N, H, WCo), cdt),
            grid=(N // nb,),
            in_specs=in_specs,
            out_specs=pl.BlockSpec((nb, H, WCo), lambda b: (b, 0, 0)),
            compiler_params=pltpu.CompilerParams(
                dimension_semantics=("parallel",),
                vmem_limit_bytes=32 * 1024 * 1024),            # v7x-safe (<48 MiB)
        )(x2, *arrays)

    try:
        out = run(True)
    except Exception:
        # Fallback for JAX versions without pipeline_mode=pl.Buffered(1) support.
        out = run(False)

    out = out.reshape(N, H, W, cout)
    return jnp.transpose(out, (0, 3, 1, 2))                    # back to NCHW


# -------------------------------------- params --------------------------------------

def _folded_bn(key, c, eps=1e-5):
    k1, k2, k3, k4 = jax.random.split(key, 4)
    gamma = 1.0 + 0.1 * jax.random.normal(k1, (c,), jnp.float32)
    beta = 0.1 * jax.random.normal(k2, (c,), jnp.float32)
    mean = 0.1 * jax.random.normal(k3, (c,), jnp.float32)
    var = jax.random.uniform(k4, (c,), jnp.float32, 0.5, 1.5)
    scale = gamma / jnp.sqrt(var + eps)
    return scale, beta - mean * scale


def init_params(key, in_channels, out_channels, pool_scales):
    branch_w, branch_bn = [], []
    for i in range(len(pool_scales)):
        kw = jax.random.fold_in(key, 10 + i)
        # torch Conv2d 1x1 weight is (Cout, Cin, 1, 1); stored here as (Cin, Cout).
        branch_w.append(0.1 * jax.random.normal(kw, (in_channels, out_channels),
                                                jnp.float32))
        branch_bn.append(_folded_bn(jax.random.fold_in(key, 100 + i), out_channels))
    ctot = in_channels + out_channels * len(pool_scales)
    # torch Conv2d 3x3 weight is (Cout, Ctot, 3, 3); stored here as HWIO.
    bottleneck_w = 0.05 * jax.random.normal(jax.random.fold_in(key, 1000),
                                            (3, 3, ctot, out_channels), jnp.float32)
    bottleneck_bn = _folded_bn(jax.random.fold_in(key, 2000), out_channels)
    return dict(out_channels=out_channels, branch_w=branch_w, branch_bn=branch_bn,
                bottleneck_w=bottleneck_w, bottleneck_bn=bottleneck_bn)


# --------------------------------- plain-JAX reference ---------------------------------

def reference(x_nchw, params, pool_scales, align_corners):
    N, Cin, H, W = x_nchw.shape
    x = jnp.transpose(x_nchw, (0, 2, 3, 1)).astype(jnp.float32)
    feats = [x]
    for idx, s in enumerate(pool_scales):
        ah = adaptive_pool_matrix(s, H)
        aw = adaptive_pool_matrix(s, W)
        pooled = jnp.einsum('ih,jw,nhwc->nijc', ah, aw, x)
        y = jnp.einsum('nijc,cd->nijd', pooled, params['branch_w'][idx])
        scale, bias = params['branch_bn'][idx]
        y = jnp.maximum(y * scale + bias, 0.0)
        lh = bilinear_matrix(H, s, align_corners)
        lw = bilinear_matrix(W, s, align_corners)
        feats.append(jnp.einsum('hi,wj,nijd->nhwd', lh, lw, y))
    cat = jnp.concatenate(feats, axis=-1)
    out = lax.conv_general_dilated(cat, params['bottleneck_w'], (1, 1),
                                   ((1, 1), (1, 1)),
                                   dimension_numbers=('NHWC', 'HWIO', 'NHWC'))
    scb, bib = params['bottleneck_bn']
    out = jnp.maximum(out * scb + bib, 0.0)
    return jnp.transpose(out, (0, 3, 1, 2))


if __name__ == "__main__":
    key = jax.random.PRNGKey(0)
    N, Cin, H, W = 2, 4, 16, 16
    Cout = 8
    pool_scales = (1, 2, 4, 8)
    align_corners = False

    kx, kp = jax.random.split(key)
    x = jax.random.normal(kx, (N, Cin, H, W), jnp.float32)
    params = init_params(kp, Cin, Cout, pool_scales)

    ref = reference(x, params, pool_scales, align_corners)

    # f32 compute path, grid=(N,) -> both v7x TensorCores: exact vs reference.
    c32 = build_ppm_constants(params, pool_scales, H, W, Cin, align_corners,
                              batch_block=1, compute_dtype=jnp.float32)
    out32 = jax.block_until_ready(pyramid_pooling_module(x, c32))
    assert out32.shape == (N, Cout, H, W)
    err32 = float(jnp.max(jnp.abs(out32.astype(jnp.float32) - ref)))
    assert err32 < 1e-3, f"f32 mismatch vs reference: {err32}"

    # f32 path with batch folding (grid=(1,), matmul M=N*H): exercises the
    # v5e/v6e batch-folding configuration.
    c32b = build_ppm_constants(params, pool_scales, H, W, Cin, align_corners,
                               batch_block=2, compute_dtype=jnp.float32)
    out32b = jax.block_until_ready(pyramid_pooling_module(x, c32b))
    err32b = float(jnp.max(jnp.abs(out32b.astype(jnp.float32) - ref)))
    assert err32b < 1e-3, f"f32 (batch-folded) mismatch vs reference: {err32b}"

    # bf16 operand + bf16 output path (f32 accumulation): looser tolerance.
    cbf = build_ppm_constants(params, pool_scales, H, W, Cin, align_corners,
                              batch_block=1, compute_dtype=jnp.bfloat16)
    outbf = jax.block_until_ready(pyramid_pooling_module(x, cbf))
    errbf = float(jnp.max(jnp.abs(outbf.astype(jnp.float32) - ref)))
    assert errbf < 1.5e-1, f"bf16 mismatch vs reference: {errbf}"

    print("KERNEL_OK")
</pallas_src>

<mosaic_0001>
module attributes {stable_mosaic.version = 11 : i64} {
  func.func @kernel(%arg0: i32, %arg1: memref<1x16x128xf32, #tpu.memory_space<vmem>>, %arg2: memref<1x16xf32, #tpu.memory_space<vmem>>, %arg3: memref<128x8xf32, #tpu.memory_space<vmem>>, %arg4: memref<16x1xf32, #tpu.memory_space<vmem>>, %arg5: memref<1x8xf32, #tpu.memory_space<vmem>>, %arg6: memref<1x8xf32, #tpu.memory_space<vmem>>, %arg7: memref<8x384xf32, #tpu.memory_space<vmem>>, %arg8: memref<2x16xf32, #tpu.memory_space<vmem>>, %arg9: memref<128x16xf32, #tpu.memory_space<vmem>>, %arg10: memref<16x2xf32, #tpu.memory_space<vmem>>, %arg11: memref<1x16xf32, #tpu.memory_space<vmem>>, %arg12: memref<1x16xf32, #tpu.memory_space<vmem>>, %arg13: memref<16x384xf32, #tpu.memory_space<vmem>>, %arg14: memref<4x16xf32, #tpu.memory_space<vmem>>, %arg15: memref<128x32xf32, #tpu.memory_space<vmem>>, %arg16: memref<16x4xf32, #tpu.memory_space<vmem>>, %arg17: memref<1x32xf32, #tpu.memory_space<vmem>>, %arg18: memref<1x32xf32, #tpu.memory_space<vmem>>, %arg19: memref<32x384xf32, #tpu.memory_space<vmem>>, %arg20: memref<8x16xf32, #tpu.memory_space<vmem>>, %arg21: memref<128x64xf32, #tpu.memory_space<vmem>>, %arg22: memref<16x8xf32, #tpu.memory_space<vmem>>, %arg23: memref<1x64xf32, #tpu.memory_space<vmem>>, %arg24: memref<1x64xf32, #tpu.memory_space<vmem>>, %arg25: memref<64x384xf32, #tpu.memory_space<vmem>>, %arg26: memref<128x384xf32, #tpu.memory_space<vmem>>, %arg27: memref<16x16xf32, #tpu.memory_space<vmem>>, %arg28: memref<16x16xf32, #tpu.memory_space<vmem>>, %arg29: memref<1x128xf32, #tpu.memory_space<vmem>>, %arg30: memref<1x128xf32, #tpu.memory_space<vmem>>, %arg31: memref<1x16x128xf32, #tpu.memory_space<vmem>>) attributes {dimension_semantics = [#tpu.dimension_semantics<parallel>], iteration_bounds = array<i64: 2>, scalar_prefetch = 0 : i64, scratch_operands = 0 : i64, tpu.core_type = #tpu.core_type<tc>, window_params = [{transform_indices = @transform_0, window_bounds = array<i64: 1, 16, 128>}, {pipeline_mode = #tpu.pipeline_mode<synchronous>, transform_indices = @transform_1, window_bounds = array<i64: 1, 16>}, {pipeline_mode = #tpu.pipeline_mode<synchronous>, transform_indices = @transform_2, window_bounds = array<i64: 128, 8>}, {pipeline_mode = #tpu.pipeline_mode<synchronous>, transform_indices = @transform_3, window_bounds = array<i64: 16, 1>}, {pipeline_mode = #tpu.pipeline_mode<synchronous>, transform_indices = @transform_4, window_bounds = array<i64: 1, 8>}, {pipeline_mode = #tpu.pipeline_mode<synchronous>, transform_indices = @transform_5, window_bounds = array<i64: 1, 8>}, {pipeline_mode = #tpu.pipeline_mode<synchronous>, transform_indices = @transform_6, window_bounds = array<i64: 8, 384>}, {pipeline_mode = #tpu.pipeline_mode<synchronous>, transform_indices = @transform_7, window_bounds = array<i64: 2, 16>}, {pipeline_mode = #tpu.pipeline_mode<synchronous>, transform_indices = @transform_8, window_bounds = array<i64: 128, 16>}, {pipeline_mode = #tpu.pipeline_mode<synchronous>, transform_indices = @transform_9, window_bounds = array<i64: 16, 2>}, {pipeline_mode = #tpu.pipeline_mode<synchronous>, transform_indices = @transform_10, window_bounds = array<i64: 1, 16>}, {pipeline_mode = #tpu.pipeline_mode<synchronous>, transform_indices = @transform_11, window_bounds = array<i64: 1, 16>}, {pipeline_mode = #tpu.pipeline_mode<synchronous>, transform_indices = @transform_12, window_bounds = array<i64: 16, 384>}, {pipeline_mode = #tpu.pipeline_mode<synchronous>, transform_indices = @transform_13, window_bounds = array<i64: 4, 16>}, {pipeline_mode = #tpu.pipeline_mode<synchronous>, transform_indices = @transform_14, window_bounds = array<i64: 128, 32>}, {pipeline_mode = #tpu.pipeline_mode<synchronous>, transform_indices = @transform_15, window_bounds = array<i64: 16, 4>}, {pipeline_mode = #tpu.pipeline_mode<synchronous>, transform_indices = @transform_16, window_bounds = array<i64: 1, 32>}, {pipeline_mode = #tpu.pipeline_mode<synchronous>, transform_indices = @transform_17, window_bounds = array<i64: 1, 32>}, {pipeline_mode = #tpu.pipeline_mode<synchronous>, transform_indices = @transform_18, window_bounds = array<i64: 32, 384>}, {pipeline_mode = #tpu.pipeline_mode<synchronous>, transform_indices = @transform_19, window_bounds = array<i64: 8, 16>}, {pipeline_mode = #tpu.pipeline_mode<synchronous>, transform_indices = @transform_20, window_bounds = array<i64: 128, 64>}, {pipeline_mode = #tpu.pipeline_mode<synchronous>, transform_indices = @transform_21, window_bounds = array<i64: 16, 8>}, {pipeline_mode = #tpu.pipeline_mode<synchronous>, transform_indices = @transform_22, window_bounds = array<i64: 1, 64>}, {pipeline_mode = #tpu.pipeline_mode<synchronous>, transform_indices = @transform_23, window_bounds = array<i64: 1, 64>}, {pipeline_mode = #tpu.pipeline_mode<synchronous>, transform_indices = @transform_24, window_bounds = array<i64: 64, 384>}, {pipeline_mode = #tpu.pipeline_mode<synchronous>, transform_indices = @transform_25, window_bounds = array<i64: 128, 384>}, {pipeline_mode = #tpu.pipeline_mode<synchronous>, transform_indices = @transform_26, window_bounds = array<i64: 16, 16>}, {pipeline_mode = #tpu.pipeline_mode<synchronous>, transform_indices = @transform_27, window_bounds = array<i64: 16, 16>}, {pipeline_mode = #tpu.pipeline_mode<synchronous>, transform_indices = @transform_28, window_bounds = array<i64: 1, 128>}, {pipeline_mode = #tpu.pipeline_mode<synchronous>, transform_indices = @transform_29, window_bounds = array<i64: 1, 128>}, {transform_indices = @transform_30, window_bounds = array<i64: 1, 16, 128>}]} {
    %c0 = arith.constant 0 : index
    %c0_0 = arith.constant 0 : index
    %c0_1 = arith.constant 0 : index
    %0 = vector.load %arg1[%c0, %c0_0, %c0_1] : memref<1x16x128xf32, #tpu.memory_space<vmem>>, vector<1x16x128xf32>
    %1 = vector.shape_cast %0 : vector<1x16x128xf32> to vector<16x128xf32>
    %c0_2 = arith.constant 0 : index
    %c0_3 = arith.constant 0 : index
    %2 = vector.load %arg26[%c0_2, %c0_3] : memref<128x384xf32, #tpu.memory_space<vmem>>, vector<128x384xf32>
    %cst = arith.constant dense<0.000000e+00> : vector<16x384xf32>
    %3 = tpu.matmul %1, %2, %cst {dimension_numbers = #tpu.dot_dimension_numbers<[1], [0], [0], [1], [0, 0, 1, 1], [], []>} : vector<16x128xf32>, vector<128x384xf32>, vector<16x384xf32> -> vector<16x384xf32>
    %c0_4 = arith.constant 0 : index
    %c0_5 = arith.constant 0 : index
    %4 = vector.load %arg2[%c0_4, %c0_5] : memref<1x16xf32, #tpu.memory_space<vmem>>, vector<1x16xf32>
    %cst_6 = arith.constant dense<0.000000e+00> : vector<1x128xf32>
    %5 = tpu.matmul %4, %1, %cst_6 {dimension_numbers = #tpu.dot_dimension_numbers<[1], [0], [0], [1], [0, 0, 1, 1], [], []>} : vector<1x16xf32>, vector<16x128xf32>, vector<1x128xf32> -> vector<1x128xf32>
    %c0_7 = arith.constant 0 : index
    %c0_8 = arith.constant 0 : index
    %6 = vector.load %arg3[%c0_7, %c0_8] : memref<128x8xf32, #tpu.memory_space<vmem>>, vector<128x8xf32>
    %cst_9 = arith.constant dense<0.000000e+00> : vector<1x8xf32>
    %7 = tpu.matmul %5, %6, %cst_9 {dimension_numbers = #tpu.dot_dimension_numbers<[1], [0], [0], [1], [0, 0, 1, 1], [], []>} : vector<1x128xf32>, vector<128x8xf32>, vector<1x8xf32> -> vector<1x8xf32>
    %c0_10 = arith.constant 0 : index
    %c0_11 = arith.constant 0 : index
    %8 = vector.load %arg5[%c0_10, %c0_11] : memref<1x8xf32, #tpu.memory_space<vmem>>, vector<1x8xf32>
    %9 = arith.mulf %7, %8 : vector<1x8xf32>
    %c0_12 = arith.constant 0 : index
    %c0_13 = arith.constant 0 : index
    %10 = vector.load %arg6[%c0_12, %c0_13] : memref<1x8xf32, #tpu.memory_space<vmem>>, vector<1x8xf32>
    %11 = arith.addf %9, %10 : vector<1x8xf32>
    %cst_14 = arith.constant 0.000000e+00 : f32
    %12 = vector.broadcast %cst_14 : f32 to vector<1x8xf32>
    %13 = arith.maximumf %11, %12 : vector<1x8xf32>
    %14 = vector.shape_cast %13 : vector<1x8xf32> to vector<1x8xf32>
    %15 = vector.broadcast %14 : vector<1x8xf32> to vector<16x8xf32>
    %c0_15 = arith.constant 0 : index
    %c0_16 = arith.constant 0 : index
    %16 = vector.load %arg7[%c0_15, %c0_16] : memref<8x384xf32, #tpu.memory_space<vmem>>, vector<8x384xf32>
    %cst_17 = arith.constant dense<0.000000e+00> : vector<16x384xf32>
    %17 = tpu.matmul %15, %16, %cst_17 {dimension_numbers = #tpu.dot_dimension_numbers<[1], [0], [0], [1], [0, 0, 1, 1], [], []>} : vector<16x8xf32>, vector<8x384xf32>, vector<16x384xf32> -> vector<16x384xf32>
    %18 = arith.addf %3, %17 : vector<16x384xf32>
    %c0_18 = arith.constant 0 : index
    %c0_19 = arith.constant 0 : index
    %19 = vector.load %arg8[%c0_18, %c0_19] : memref<2x16xf32, #tpu.memory_space<vmem>>, vector<2x16xf32>
    %cst_20 = arith.constant dense<0.000000e+00> : vector<2x128xf32>
    %20 = tpu.matmul %19, %1, %cst_20 {dimension_numbers = #tpu.dot_dimension_numbers<[1], [0], [0], [1], [0, 0, 1, 1], [], []>} : vector<2x16xf32>, vector<16x128xf32>, vector<2x128xf32> -> vector<2x128xf32>
    %c0_21 = arith.constant 0 : index
    %c0_22 = arith.constant 0 : index
    %21 = vector.load %arg9[%c0_21, %c0_22] : memref<128x16xf32, #tpu.memory_space<vmem>>, vector<128x16xf32>
    %cst_23 = arith.constant dense<0.000000e+00> : vector<2x16xf32>
    %22 = tpu.matmul %20, %21, %cst_23 {dimension_numbers = #tpu.dot_dimension_numbers<[1], [0], [0], [1], [0, 0, 1, 1], [], []>} : vector<2x128xf32>, vector<128x16xf32>, vector<2x16xf32> -> vector<2x16xf32>
    %c0_24 = arith.constant 0 : index
    %c0_25 = arith.constant 0 : index
    %23 = vector.load %arg11[%c0_24, %c0_25] : memref<1x16xf32, #tpu.memory_space<vmem>>, vector<1x16xf32>
    %24 = vector.broadcast %23 : vector<1x16xf32> to vector<2x16xf32>
    %25 = arith.mulf %22, %24 : vector<2x16xf32>
    %c0_26 = arith.constant 0 : index
    %c0_27 = arith.constant 0 : index
    %26 = vector.load %arg12[%c0_26, %c0_27] : memref<1x16xf32, #tpu.memory_space<vmem>>, vector<1x16xf32>
    %27 = vector.broadcast %26 : vector<1x16xf32> to vector<2x16xf32>
    %28 = arith.addf %25, %27 : vector<2x16xf32>
    %cst_28 = arith.constant 0.000000e+00 : f32
    %29 = vector.broadcast %cst_28 : f32 to vector<2x16xf32>
    %30 = arith.maximumf %28, %29 : vector<2x16xf32>
    %c0_29 = arith.constant 0 : index
    %c0_30 = arith.constant 0 : index
    %31 = vector.load %arg10[%c0_29, %c0_30] : memref<16x2xf32, #tpu.memory_space<vmem>>, vector<16x2xf32>
    %cst_31 = arith.constant dense<0.000000e+00> : vector<16x16xf32>
    %32 = tpu.matmul %31, %30, %cst_31 {dimension_numbers = #tpu.dot_dimension_numbers<[1], [0], [0], [1], [0, 0, 1, 1], [], []>} : vector<16x2xf32>, vector<2x16xf32>, vector<16x16xf32> -> vector<16x16xf32>
    %c0_32 = arith.constant 0 : index
    %c0_33 = arith.constant 0 : index
    %33 = vector.load %arg13[%c0_32, %c0_33] : memref<16x384xf32, #tpu.memory_space<vmem>>, vector<16x384xf32>
    %cst_34 = arith.constant dense<0.000000e+00> : vector<16x384xf32>
    %34 = tpu.matmul %32, %33, %cst_34 {dimension_numbers = #tpu.dot_dimension_numbers<[1], [0], [0], [1], [0, 0, 1, 1], [], []>} : vector<16x16xf32>, vector<16x384xf32>, vector<16x384xf32> -> vector<16x384xf32>
    %35 = arith.addf %18, %34 : vector<16x384xf32>
    %c0_35 = arith.constant 0 : index
    %c0_36 = arith.constant 0 : index
    %36 = vector.load %arg14[%c0_35, %c0_36] : memref<4x16xf32, #tpu.memory_space<vmem>>, vector<4x16xf32>
    %cst_37 = arith.constant dense<0.000000e+00> : vector<4x128xf32>
    %37 = tpu.matmul %36, %1, %cst_37 {dimension_numbers = #tpu.dot_dimension_numbers<[1], [0], [0], [1], [0, 0, 1, 1], [], []>} : vector<4x16xf32>, vector<16x128xf32>, vector<4x128xf32> -> vector<4x128xf32>
    %c0_38 = arith.constant 0 : index
    %c0_39 = arith.constant 0 : index
    %38 = vector.load %arg15[%c0_38, %c0_39] : memref<128x32xf32, #tpu.memory_space<vmem>>, vector<128x32xf32>
    %cst_40 = arith.constant dense<0.000000e+00> : vector<4x32xf32>
    %39 = tpu.matmul %37, %38, %cst_40 {dimension_numbers = #tpu.dot_dimension_numbers<[1], [0], [0], [1], [0, 0, 1, 1], [], []>} : vector<4x128xf32>, vector<128x32xf32>, vector<4x32xf32> -> vector<4x32xf32>
    %c0_41 = arith.constant 0 : index
    %c0_42 = arith.constant 0 : index
    %40 = vector.load %arg17[%c0_41, %c0_42] : memref<1x32xf32, #tpu.memory_space<vmem>>, vector<1x32xf32>
    %41 = vector.broadcast %40 : vector<1x32xf32> to vector<4x32xf32>
    %42 = arith.mulf %39, %41 : vector<4x32xf32>
    %c0_43 = arith.constant 0 : index
    %c0_44 = arith.constant 0 : index
    %43 = vector.load %arg18[%c0_43, %c0_44] : memref<1x32xf32, #tpu.memory_space<vmem>>, vector<1x32xf32>
    %44 = vector.broadcast %43 : vector<1x32xf32> to vector<4x32xf32>
    %45 = arith.addf %42, %44 : vector<4x32xf32>
    %cst_45 = arith.constant 0.000000e+00 : f32
    %46 = vector.broadcast %cst_45 : f32 to vector<4x32xf32>
    %47 = arith.maximumf %45, %46 : vector<4x32xf32>
    %c0_46 = arith.constant 0 : index
    %c0_47 = arith.constant 0 : index
    %48 = vector.load %arg16[%c0_46, %c0_47] : memref<16x4xf32, #tpu.memory_space<vmem>>, vector<16x4xf32>
    %cst_48 = arith.constant dense<0.000000e+00> : vector<16x32xf32>
    %49 = tpu.matmul %48, %47, %cst_48 {dimension_numbers = #tpu.dot_dimension_numbers<[1], [0], [0], [1], [0, 0, 1, 1], [], []>} : vector<16x4xf32>, vector<4x32xf32>, vector<16x32xf32> -> vector<16x32xf32>
    %c0_49 = arith.constant 0 : index
    %c0_50 = arith.constant 0 : index
    %50 = vector.load %arg19[%c0_49, %c0_50] : memref<32x384xf32, #tpu.memory_space<vmem>>, vector<32x384xf32>
    %cst_51 = arith.constant dense<0.000000e+00> : vector<16x384xf32>
    %51 = tpu.matmul %49, %50, %cst_51 {dimension_numbers = #tpu.dot_dimension_numbers<[1], [0], [0], [1], [0, 0, 1, 1], [], []>} : vector<16x32xf32>, vector<32x384xf32>, vector<16x384xf32> -> vector<16x384xf32>
    %52 = arith.addf %35, %51 : vector<16x384xf32>
    %c0_52 = arith.constant 0 : index
    %c0_53 = arith.constant 0 : index
    %53 = vector.load %arg20[%c0_52, %c0_53] : memref<8x16xf32, #tpu.memory_space<vmem>>, vector<8x16xf32>
    %cst_54 = arith.constant dense<0.000000e+00> : vector<8x128xf32>
    %54 = tpu.matmul %53, %1, %cst_54 {dimension_numbers = #tpu.dot_dimension_numbers<[1], [0], [0], [1], [0, 0, 1, 1], [], []>} : vector<8x16xf32>, vector<16x128xf32>, vector<8x128xf32> -> vector<8x128xf32>
    %c0_55 = arith.constant 0 : index
    %c0_56 = arith.constant 0 : index
    %55 = vector.load %arg21[%c0_55, %c0_56] : memref<128x64xf32, #tpu.memory_space<vmem>>, vector<128x64xf32>
    %cst_57 = arith.constant dense<0.000000e+00> : vector<8x64xf32>
    %56 = tpu.matmul %54, %55, %cst_57 {dimension_numbers = #tpu.dot_dimension_numbers<[1], [0], [0], [1], [0, 0, 1, 1], [], []>} : vector<8x128xf32>, vector<128x64xf32>, vector<8x64xf32> -> vector<8x64xf32>
    %c0_58 = arith.constant 0 : index
    %c0_59 = arith.constant 0 : index
    %57 = vector.load %arg23[%c0_58, %c0_59] : memref<1x64xf32, #tpu.memory_space<vmem>>, vector<1x64xf32>
    %58 = vector.broadcast %57 : vector<1x64xf32> to vector<8x64xf32>
    %59 = arith.mulf %56, %58 : vector<8x64xf32>
    %c0_60 = arith.constant 0 : index
    %c0_61 = arith.constant 0 : index
    %60 = vector.load %arg24[%c0_60, %c0_61] : memref<1x64xf32, #tpu.memory_space<vmem>>, vector<1x64xf32>
    %61 = vector.broadcast %60 : vector<1x64xf32> to vector<8x64xf32>
    %62 = arith.addf %59, %61 : vector<8x64xf32>
    %cst_62 = arith.constant 0.000000e+00 : f32
    %63 = vector.broadcast %cst_62 : f32 to vector<8x64xf32>
    %64 = arith.maximumf %62, %63 : vector<8x64xf32>
    %c0_63 = arith.constant 0 : index
    %c0_64 = arith.constant 0 : index
    %65 = vector.load %arg22[%c0_63, %c0_64] : memref<16x8xf32, #tpu.memory_space<vmem>>, vector<16x8xf32>
    %cst_65 = arith.constant dense<0.000000e+00> : vector<16x64xf32>
    %66 = tpu.matmul %65, %64, %cst_65 {dimension_numbers = #tpu.dot_dimension_numbers<[1], [0], [0], [1], [0, 0, 1, 1], [], []>} : vector<16x8xf32>, vector<8x64xf32>, vector<16x64xf32> -> vector<16x64xf32>
    %c0_66 = arith.constant 0 : index
    %c0_67 = arith.constant 0 : index
    %67 = vector.load %arg25[%c0_66, %c0_67] : memref<64x384xf32, #tpu.memory_space<vmem>>, vector<64x384xf32>
    %cst_68 = arith.constant dense<0.000000e+00> : vector<16x384xf32>
    %68 = tpu.matmul %66, %67, %cst_68 {dimension_numbers = #tpu.dot_dimension_numbers<[1], [0], [0], [1], [0, 0, 1, 1], [], []>} : vector<16x64xf32>, vector<64x384xf32>, vector<16x384xf32> -> vector<16x384xf32>
    %69 = arith.addf %52, %68 : vector<16x384xf32>
    %70 = vector.extract_strided_slice %69 {offsets = [0, 128], sizes = [16, 128], strides = [1, 1]} : vector<16x384xf32> to vector<16x128xf32>
    %c0_69 = arith.constant 0 : index
    %c0_70 = arith.constant 0 : index
    %71 = vector.load %arg27[%c0_69, %c0_70] : memref<16x16xf32, #tpu.memory_space<vmem>>, vector<16x16xf32>
    %72 = vector.extract_strided_slice %69 {offsets = [0, 0], sizes = [16, 128], strides = [1, 1]} : vector<16x384xf32> to vector<16x128xf32>
    %cst_71 = arith.constant dense<0.000000e+00> : vector<16x128xf32>
    %73 = tpu.matmul %71, %72, %cst_71 {dimension_numbers = #tpu.dot_dimension_numbers<[1], [0], [0], [1], [0, 0, 1, 1], [], []>} : vector<16x16xf32>, vector<16x128xf32>, vector<16x128xf32> -> vector<16x128xf32>
    %74 = arith.addf %70, %73 : vector<16x128xf32>
    %c0_72 = arith.constant 0 : index
    %c0_73 = arith.constant 0 : index
    %75 = vector.load %arg28[%c0_72, %c0_73] : memref<16x16xf32, #tpu.memory_space<vmem>>, vector<16x16xf32>
    %76 = vector.extract_strided_slice %69 {offsets = [0, 256], sizes = [16, 128], strides = [1, 1]} : vector<16x384xf32> to vector<16x128xf32>
    %cst_74 = arith.constant dense<0.000000e+00> : vector<16x128xf32>
    %77 = tpu.matmul %75, %76, %cst_74 {dimension_numbers = #tpu.dot_dimension_numbers<[1], [0], [0], [1], [0, 0, 1, 1], [], []>} : vector<16x16xf32>, vector<16x128xf32>, vector<16x128xf32> -> vector<16x128xf32>
    %78 = arith.addf %74, %77 : vector<16x128xf32>
    %c0_75 = arith.constant 0 : index
    %c0_76 = arith.constant 0 : index
    %79 = vector.load %arg29[%c0_75, %c0_76] : memref<1x128xf32, #tpu.memory_space<vmem>>, vector<1x128xf32>
    %80 = vector.broadcast %79 : vector<1x128xf32> to vector<16x128xf32>
    %81 = arith.mulf %78, %80 : vector<16x128xf32>
    %c0_77 = arith.constant 0 : index
    %c0_78 = arith.constant 0 : index
    %82 = vector.load %arg30[%c0_77, %c0_78] : memref<1x128xf32, #tpu.memory_space<vmem>>, vector<1x128xf32>
    %83 = vector.broadcast %82 : vector<1x128xf32> to vector<16x128xf32>
    %84 = arith.addf %81, %83 : vector<16x128xf32>
    %cst_79 = arith.constant 0.000000e+00 : f32
    %85 = vector.broadcast %cst_79 : f32 to vector<16x128xf32>
    %86 = arith.maximumf %84, %85 : vector<16x128xf32>
    %87 = vector.shape_cast %86 : vector<16x128xf32> to vector<1x16x128xf32>
    %c0_80 = arith.constant 0 : index
    %c0_81 = arith.constant 0 : index
    %c0_82 = arith.constant 0 : index
    %88 = vector.load %arg31[%c0_80, %c0_81, %c0_82] : memref<1x16x128xf32, #tpu.memory_space<vmem>>, vector<1x16x128xf32>
    tpu.vector_store %arg31[%c0_80, %c0_81, %c0_82], %87 {strides = array<i32>} : memref<1x16x128xf32, #tpu.memory_space<vmem>>, vector<1x16x128xf32>,
    return
  }
  func.func @transform_0(%arg0: i32) -> (i32, i32, i32) {
    %c0_i32 = arith.constant 0 : i32
    %c0_i32_0 = arith.constant 0 : i32
    %c0_i32_1 = arith.constant 0 : i32
    return %arg0, %c0_i32, %c0_i32_0 : i32, i32, i32
  }
  func.func @transform_1(%arg0: i32) -> (i32, i32) {
    %c0_i32 = arith.constant 0 : i32
    %c0_i32_0 = arith.constant 0 : i32
    %c0_i32_1 = arith.constant 0 : i32
    return %c0_i32, %c0_i32_0 : i32, i32
  }
  func.func @transform_2(%arg0: i32) -> (i32, i32) {
    %c0_i32 = arith.constant 0 : i32
    %c0_i32_0 = arith.constant 0 : i32
    %c0_i32_1 = arith.constant 0 : i32
    return %c0_i32, %c0_i32_0 : i32, i32
  }
  func.func @transform_3(%arg0: i32) -> (i32, i32) {
    %c0_i32 = arith.constant 0 : i32
    %c0_i32_0 = arith.constant 0 : i32
    %c0_i32_1 = arith.constant 0 : i32
    return %c0_i32, %c0_i32_0 : i32, i32
  }
  func.func @transform_4(%arg0: i32) -> (i32, i32) {
    %c0_i32 = arith.constant 0 : i32
    %c0_i32_0 = arith.constant 0 : i32
    %c0_i32_1 = arith.constant 0 : i32
    return %c0_i32, %c0_i32_0 : i32, i32
  }
  func.func @transform_5(%arg0: i32) -> (i32, i32) {
    %c0_i32 = arith.constant 0 : i32
    %c0_i32_0 = arith.constant 0 : i32
    %c0_i32_1 = arith.constant 0 : i32
    return %c0_i32, %c0_i32_0 : i32, i32
  }
  func.func @transform_6(%arg0: i32) -> (i32, i32) {
    %c0_i32 = arith.constant 0 : i32
    %c0_i32_0 = arith.constant 0 : i32
    %c0_i32_1 = arith.constant 0 : i32
    return %c0_i32, %c0_i32_0 : i32, i32
  }
  func.func @transform_7(%arg0: i32) -> (i32, i32) {
    %c0_i32 = arith.constant 0 : i32
    %c0_i32_0 = arith.constant 0 : i32
    %c0_i32_1 = arith.constant 0 : i32
    return %c0_i32, %c0_i32_0 : i32, i32
  }
  func.func @transform_8(%arg0: i32) -> (i32, i32) {
    %c0_i32 = arith.constant 0 : i32
    %c0_i32_0 = arith.constant 0 : i32
    %c0_i32_1 = arith.constant 0 : i32
    return %c0_i32, %c0_i32_0 : i32, i32
  }
  func.func @transform_9(%arg0: i32) -> (i32, i32) {
    %c0_i32 = arith.constant 0 : i32
    %c0_i32_0 = arith.constant 0 : i32
    %c0_i32_1 = arith.constant 0 : i32
    return %c0_i32, %c0_i32_0 : i32, i32
  }
  func.func @transform_10(%arg0: i32) -> (i32, i32) {
    %c0_i32 = arith.constant 0 : i32
    %c0_i32_0 = arith.constant 0 : i32
    %c0_i32_1 = arith.constant 0 : i32
    return %c0_i32, %c0_i32_0 : i32, i32
  }
  func.func @transform_11(%arg0: i32) -> (i32, i32) {
    %c0_i32 = arith.constant 0 : i32
    %c0_i32_0 = arith.constant 0 : i32
    %c0_i32_1 = arith.constant 0 : i32
    return %c0_i32, %c0_i32_0 : i32, i32
  }
  func.func @transform_12(%arg0: i32) -> (i32, i32) {
    %c0_i32 = arith.constant 0 : i32
    %c0_i32_0 = arith.constant 0 : i32
    %c0_i32_1 = arith.constant 0 : i32
    return %c0_i32, %c0_i32_0 : i32, i32
  }
  func.func @transform_13(%arg0: i32) -> (i32, i32) {
    %c0_i32 = arith.constant 0 : i32
    %c0_i32_0 = arith.constant 0 : i32
    %c0_i32_1 = arith.constant 0 : i32
    return %c0_i32, %c0_i32_0 : i32, i32
  }
  func.func @transform_14(%arg0: i32) -> (i32, i32) {
    %c0_i32 = arith.constant 0 : i32
    %c0_i32_0 = arith.constant 0 : i32
    %c0_i32_1 = arith.constant 0 : i32
    return %c0_i32, %c0_i32_0 : i32, i32
  }
  func.func @transform_15(%arg0: i32) -> (i32, i32) {
    %c0_i32 = arith.constant 0 : i32
    %c0_i32_0 = arith.constant 0 : i32
    %c0_i32_1 = arith.constant 0 : i32
    return %c0_i32, %c0_i32_0 : i32, i32
  }
  func.func @transform_16(%arg0: i32) -> (i32, i32) {
    %c0_i32 = arith.constant 0 : i32
    %c0_i32_0 = arith.constant 0 : i32
    %c0_i32_1 = arith.constant 0 : i32
    return %c0_i32, %c0_i32_0 : i32, i32
  }
  func.func @transform_17(%arg0: i32) -> (i32, i32) {
    %c0_i32 = arith.constant 0 : i32
    %c0_i32_0 = arith.constant 0 : i32
    %c0_i32_1 = arith.constant 0 : i32
    return %c0_i32, %c0_i32_0 : i32, i32
  }
  func.func @transform_18(%arg0: i32) -> (i32, i32) {
    %c0_i32 = arith.constant 0 : i32
    %c0_i32_0 = arith.constant 0 : i32
    %c0_i32_1 = arith.constant 0 : i32
    return %c0_i32, %c0_i32_0 : i32, i32
  }
  func.func @transform_19(%arg0: i32) -> (i32, i32) {
    %c0_i32 = arith.constant 0 : i32
    %c0_i32_0 = arith.constant 0 : i32
    %c0_i32_1 = arith.constant 0 : i32
    return %c0_i32, %c0_i32_0 : i32, i32
  }
  func.func @transform_20(%arg0: i32) -> (i32, i32) {
    %c0_i32 = arith.constant 0 : i32
    %c0_i32_0 = arith.constant 0 : i32
    %c0_i32_1 = arith.constant 0 : i32
    return %c0_i32, %c0_i32_0 : i32, i32
  }
  func.func @transform_21(%arg0: i32) -> (i32, i32) {
    %c0_i32 = arith.constant 0 : i32
    %c0_i32_0 = arith.constant 0 : i32
    %c0_i32_1 = arith.constant 0 : i32
    return %c0_i32, %c0_i32_0 : i32, i32
  }
  func.func @transform_22(%arg0: i32) -> (i32, i32) {
    %c0_i32 = arith.constant 0 : i32
    %c0_i32_0 = arith.constant 0 : i32
    %c0_i32_1 = arith.constant 0 : i32
    return %c0_i32, %c0_i32_0 : i32, i32
  }
  func.func @transform_23(%arg0: i32) -> (i32, i32) {
    %c0_i32 = arith.constant 0 : i32
    %c0_i32_0 = arith.constant 0 : i32
    %c0_i32_1 = arith.constant 0 : i32
    return %c0_i32, %c0_i32_0 : i32, i32
  }
  func.func @transform_24(%arg0: i32) -> (i32, i32) {
    %c0_i32 = arith.constant 0 : i32
    %c0_i32_0 = arith.constant 0 : i32
    %c0_i32_1 = arith.constant 0 : i32
    return %c0_i32, %c0_i32_0 : i32, i32
  }
  func.func @transform_25(%arg0: i32) -> (i32, i32) {
    %c0_i32 = arith.constant 0 : i32
    %c0_i32_0 = arith.constant 0 : i32
    %c0_i32_1 = arith.constant 0 : i32
    return %c0_i32, %c0_i32_0 : i32, i32
  }
  func.func @transform_26(%arg0: i32) -> (i32, i32) {
    %c0_i32 = arith.constant 0 : i32
    %c0_i32_0 = arith.constant 0 : i32
    %c0_i32_1 = arith.constant 0 : i32
    return %c0_i32, %c0_i32_0 : i32, i32
  }
  func.func @transform_27(%arg0: i32) -> (i32, i32) {
    %c0_i32 = arith.constant 0 : i32
    %c0_i32_0 = arith.constant 0 : i32
    %c0_i32_1 = arith.constant 0 : i32
    return %c0_i32, %c0_i32_0 : i32, i32
  }
  func.func @transform_28(%arg0: i32) -> (i32, i32) {
    %c0_i32 = arith.constant 0 : i32
    %c0_i32_0 = arith.constant 0 : i32
    %c0_i32_1 = arith.constant 0 : i32
    return %c0_i32, %c0_i32_0 : i32, i32
  }
  func.func @transform_29(%arg0: i32) -> (i32, i32) {
    %c0_i32 = arith.constant 0 : i32
    %c0_i32_0 = arith.constant 0 : i32
    %c0_i32_1 = arith.constant 0 : i32
    return %c0_i32, %c0_i32_0 : i32, i32
  }
  func.func @transform_30(%arg0: i32) -> (i32, i32, i32) {
    %c0_i32 = arith.constant 0 : i32
    %c0_i32_0 = arith.constant 0 : i32
    %c0_i32_1 = arith.constant 0 : i32
    return %arg0, %c0_i32, %c0_i32_0 : i32, i32, i32
  }
}

module attributes {stable_mosaic.version = 11 : i64} {
  func.func @kernel(%arg0: i32, %arg1: memref<1x16x128xf32, #tpu.memory_space<vmem>>, %arg2: memref<1x16xf32, #tpu.memory_space<vmem>>, %arg3: memref<128x8xf32, #tpu.memory_space<vmem>>, %arg4: memref<16x1xf32, #tpu.memory_space<vmem>>, %arg5: memref<1x8xf32, #tpu.memory_space<vmem>>, %arg6: memref<1x8xf32, #tpu.memory_space<vmem>>, %arg7: memref<8x384xf32, #tpu.memory_space<vmem>>, %arg8: memref<2x16xf32, #tpu.memory_space<vmem>>, %arg9: memref<128x16xf32, #tpu.memory_space<vmem>>, %arg10: memref<16x2xf32, #tpu.memory_space<vmem>>, %arg11: memref<1x16xf32, #tpu.memory_space<vmem>>, %arg12: memref<1x16xf32, #tpu.memory_space<vmem>>, %arg13: memref<16x384xf32, #tpu.memory_space<vmem>>, %arg14: memref<4x16xf32, #tpu.memory_space<vmem>>, %arg15: memref<128x32xf32, #tpu.memory_space<vmem>>, %arg16: memref<16x4xf32, #tpu.memory_space<vmem>>, %arg17: memref<1x32xf32, #tpu.memory_space<vmem>>, %arg18: memref<1x32xf32, #tpu.memory_space<vmem>>, %arg19: memref<32x384xf32, #tpu.memory_space<vmem>>, %arg20: memref<8x16xf32, #tpu.memory_space<vmem>>, %arg21: memref<128x64xf32, #tpu.memory_space<vmem>>, %arg22: memref<16x8xf32, #tpu.memory_space<vmem>>, %arg23: memref<1x64xf32, #tpu.memory_space<vmem>>, %arg24: memref<1x64xf32, #tpu.memory_space<vmem>>, %arg25: memref<64x384xf32, #tpu.memory_space<vmem>>, %arg26: memref<128x384xf32, #tpu.memory_space<vmem>>, %arg27: memref<16x16xf32, #tpu.memory_space<vmem>>, %arg28: memref<16x16xf32, #tpu.memory_space<vmem>>, %arg29: memref<1x128xf32, #tpu.memory_space<vmem>>, %arg30: memref<1x128xf32, #tpu.memory_space<vmem>>, %arg31: memref<1x16x128xf32, #tpu.memory_space<vmem>>) attributes {dimension_semantics = [#tpu.dimension_semantics<parallel>], iteration_bounds = array<i64: 2>, scalar_prefetch = 0 : i64, scratch_operands = 0 : i64, tpu.core_type = #tpu.core_type<tc>, window_params = [{transform_indices = @transform_0, window_bounds = array<i64: 1, 16, 128>}, {pipeline_mode = #tpu.pipeline_mode<synchronous>, transform_indices = @transform_1, window_bounds = array<i64: 1, 16>}, {pipeline_mode = #tpu.pipeline_mode<synchronous>, transform_indices = @transform_2, window_bounds = array<i64: 128, 8>}, {pipeline_mode = #tpu.pipeline_mode<synchronous>, transform_indices = @transform_3, window_bounds = array<i64: 16, 1>}, {pipeline_mode = #tpu.pipeline_mode<synchronous>, transform_indices = @transform_4, window_bounds = array<i64: 1, 8>}, {pipeline_mode = #tpu.pipeline_mode<synchronous>, transform_indices = @transform_5, window_bounds = array<i64: 1, 8>}, {pipeline_mode = #tpu.pipeline_mode<synchronous>, transform_indices = @transform_6, window_bounds = array<i64: 8, 384>}, {pipeline_mode = #tpu.pipeline_mode<synchronous>, transform_indices = @transform_7, window_bounds = array<i64: 2, 16>}, {pipeline_mode = #tpu.pipeline_mode<synchronous>, transform_indices = @transform_8, window_bounds = array<i64: 128, 16>}, {pipeline_mode = #tpu.pipeline_mode<synchronous>, transform_indices = @transform_9, window_bounds = array<i64: 16, 2>}, {pipeline_mode = #tpu.pipeline_mode<synchronous>, transform_indices = @transform_10, window_bounds = array<i64: 1, 16>}, {pipeline_mode = #tpu.pipeline_mode<synchronous>, transform_indices = @transform_11, window_bounds = array<i64: 1, 16>}, {pipeline_mode = #tpu.pipeline_mode<synchronous>, transform_indices = @transform_12, window_bounds = array<i64: 16, 384>}, {pipeline_mode = #tpu.pipeline_mode<synchronous>, transform_indices = @transform_13, window_bounds = array<i64: 4, 16>}, {pipeline_mode = #tpu.pipeline_mode<synchronous>, transform_indices = @transform_14, window_bounds = array<i64: 128, 32>}, {pipeline_mode = #tpu.pipeline_mode<synchronous>, transform_indices = @transform_15, window_bounds = array<i64: 16, 4>}, {pipeline_mode = #tpu.pipeline_mode<synchronous>, transform_indices = @transform_16, window_bounds = array<i64: 1, 32>}, {pipeline_mode = #tpu.pipeline_mode<synchronous>, transform_indices = @transform_17, window_bounds = array<i64: 1, 32>}, {pipeline_mode = #tpu.pipeline_mode<synchronous>, transform_indices = @transform_18, window_bounds = array<i64: 32, 384>}, {pipeline_mode = #tpu.pipeline_mode<synchronous>, transform_indices = @transform_19, window_bounds = array<i64: 8, 16>}, {pipeline_mode = #tpu.pipeline_mode<synchronous>, transform_indices = @transform_20, window_bounds = array<i64: 128, 64>}, {pipeline_mode = #tpu.pipeline_mode<synchronous>, transform_indices = @transform_21, window_bounds = array<i64: 16, 8>}, {pipeline_mode = #tpu.pipeline_mode<synchronous>, transform_indices = @transform_22, window_bounds = array<i64: 1, 64>}, {pipeline_mode = #tpu.pipeline_mode<synchronous>, transform_indices = @transform_23, window_bounds = array<i64: 1, 64>}, {pipeline_mode = #tpu.pipeline_mode<synchronous>, transform_indices = @transform_24, window_bounds = array<i64: 64, 384>}, {pipeline_mode = #tpu.pipeline_mode<synchronous>, transform_indices = @transform_25, window_bounds = array<i64: 128, 384>}, {pipeline_mode = #tpu.pipeline_mode<synchronous>, transform_indices = @transform_26, window_bounds = array<i64: 16, 16>}, {pipeline_mode = #tpu.pipeline_mode<synchronous>, transform_indices = @transform_27, window_bounds = array<i64: 16, 16>}, {pipeline_mode = #tpu.pipeline_mode<synchronous>, transform_indices = @transform_28, window_bounds = array<i64: 1, 128>}, {pipeline_mode = #tpu.pipeline_mode<synchronous>, transform_indices = @transform_29, window_bounds = array<i64: 1, 128>}, {transform_indices = @transform_30, window_bounds = array<i64: 1, 16, 128>}]} {
    %c0 = arith.constant 0 : index
    %c0_0 = arith.constant 0 : index
    %c0_1 = arith.constant 0 : index
    %0 = vector.load %arg1[%c0, %c0_0, %c0_1] : memref<1x16x128xf32, #tpu.memory_space<vmem>>, vector<1x16x128xf32>
    %1 = vector.shape_cast %0 : vector<1x16x128xf32> to vector<16x128xf32>
    %c0_2 = arith.constant 0 : index
    %c0_3 = arith.constant 0 : index
    %2 = vector.load %arg26[%c0_2, %c0_3] : memref<128x384xf32, #tpu.memory_space<vmem>>, vector<128x384xf32>
    %cst = arith.constant dense<0.000000e+00> : vector<16x384xf32>
    %3 = tpu.matmul %1, %2, %cst {dimension_numbers = #tpu.dot_dimension_numbers<[1], [0], [0], [1], [0, 0, 1, 1], [], []>} : vector<16x128xf32>, vector<128x384xf32>, vector<16x384xf32> -> vector<16x384xf32>
    %c0_4 = arith.constant 0 : index
    %c0_5 = arith.constant 0 : index
    %4 = vector.load %arg2[%c0_4, %c0_5] : memref<1x16xf32, #tpu.memory_space<vmem>>, vector<1x16xf32>
    %cst_6 = arith.constant dense<0.000000e+00> : vector<1x128xf32>
    %5 = tpu.matmul %4, %1, %cst_6 {dimension_numbers = #tpu.dot_dimension_numbers<[1], [0], [0], [1], [0, 0, 1, 1], [], []>} : vector<1x16xf32>, vector<16x128xf32>, vector<1x128xf32> -> vector<1x128xf32>
    %c0_7 = arith.constant 0 : index
    %c0_8 = arith.constant 0 : index
    %6 = vector.load %arg3[%c0_7, %c0_8] : memref<128x8xf32, #tpu.memory_space<vmem>>, vector<128x8xf32>
    %cst_9 = arith.constant dense<0.000000e+00> : vector<1x8xf32>
    %7 = tpu.matmul %5, %6, %cst_9 {dimension_numbers = #tpu.dot_dimension_numbers<[1], [0], [0], [1], [0, 0, 1, 1], [], []>} : vector<1x128xf32>, vector<128x8xf32>, vector<1x8xf32> -> vector<1x8xf32>
    %c0_10 = arith.constant 0 : index
    %c0_11 = arith.constant 0 : index
    %8 = vector.load %arg5[%c0_10, %c0_11] : memref<1x8xf32, #tpu.memory_space<vmem>>, vector<1x8xf32>
    %9 = arith.mulf %7, %8 : vector<1x8xf32>
    %c0_12 = arith.constant 0 : index
    %c0_13 = arith.constant 0 : index
    %10 = vector.load %arg6[%c0_12, %c0_13] : memref<1x8xf32, #tpu.memory_space<vmem>>, vector<1x8xf32>
    %11 = arith.addf %9, %10 : vector<1x8xf32>
    %cst_14 = arith.constant 0.000000e+00 : f32
    %12 = vector.broadcast %cst_14 : f32 to vector<1x8xf32>
    %13 = arith.maximumf %11, %12 : vector<1x8xf32>
    %14 = vector.shape_cast %13 : vector<1x8xf32> to vector<1x8xf32>
    %15 = vector.broadcast %14 : vector<1x8xf32> to vector<16x8xf32>
    %c0_15 = arith.constant 0 : index
    %c0_16 = arith.constant 0 : index
    %16 = vector.load %arg7[%c0_15, %c0_16] : memref<8x384xf32, #tpu.memory_space<vmem>>, vector<8x384xf32>
    %cst_17 = arith.constant dense<0.000000e+00> : vector<16x384xf32>
    %17 = tpu.matmul %15, %16, %cst_17 {dimension_numbers = #tpu.dot_dimension_numbers<[1], [0], [0], [1], [0, 0, 1, 1], [], []>} : vector<16x8xf32>, vector<8x384xf32>, vector<16x384xf32> -> vector<16x384xf32>
    %18 = arith.addf %3, %17 : vector<16x384xf32>
    %c0_18 = arith.constant 0 : index
    %c0_19 = arith.constant 0 : index
    %19 = vector.load %arg8[%c0_18, %c0_19] : memref<2x16xf32, #tpu.memory_space<vmem>>, vector<2x16xf32>
    %cst_20 = arith.constant dense<0.000000e+00> : vector<2x128xf32>
    %20 = tpu.matmul %19, %1, %cst_20 {dimension_numbers = #tpu.dot_dimension_numbers<[1], [0], [0], [1], [0, 0, 1, 1], [], []>} : vector<2x16xf32>, vector<16x128xf32>, vector<2x128xf32> -> vector<2x128xf32>
    %c0_21 = arith.constant 0 : index
    %c0_22 = arith.constant 0 : index
    %21 = vector.load %arg9[%c0_21, %c0_22] : memref<128x16xf32, #tpu.memory_space<vmem>>, vector<128x16xf32>
    %cst_23 = arith.constant dense<0.000000e+00> : vector<2x16xf32>
    %22 = tpu.matmul %20, %21, %cst_23 {dimension_numbers = #tpu.dot_dimension_numbers<[1], [0], [0], [1], [0, 0, 1, 1], [], []>} : vector<2x128xf32>, vector<128x16xf32>, vector<2x16xf32> -> vector<2x16xf32>
    %c0_24 = arith.constant 0 : index
    %c0_25 = arith.constant 0 : index
    %23 = vector.load %arg11[%c0_24, %c0_25] : memref<1x16xf32, #tpu.memory_space<vmem>>, vector<1x16xf32>
    %24 = vector.broadcast %23 : vector<1x16xf32> to vector<2x16xf32>
    %25 = arith.mulf %22, %24 : vector<2x16xf32>
    %c0_26 = arith.constant 0 : index
    %c0_27 = arith.constant 0 : index
    %26 = vector.load %arg12[%c0_26, %c0_27] : memref<1x16xf32, #tpu.memory_space<vmem>>, vector<1x16xf32>
    %27 = vector.broadcast %26 : vector<1x16xf32> to vector<2x16xf32>
    %28 = arith.addf %25, %27 : vector<2x16xf32>
    %cst_28 = arith.constant 0.000000e+00 : f32
    %29 = vector.broadcast %cst_28 : f32 to vector<2x16xf32>
    %30 = arith.maximumf %28, %29 : vector<2x16xf32>
    %c0_29 = arith.constant 0 : index
    %c0_30 = arith.constant 0 : index
    %31 = vector.load %arg10[%c0_29, %c0_30] : memref<16x2xf32, #tpu.memory_space<vmem>>, vector<16x2xf32>
    %cst_31 = arith.constant dense<0.000000e+00> : vector<16x16xf32>
    %32 = tpu.matmul %31, %30, %cst_31 {dimension_numbers = #tpu.dot_dimension_numbers<[1], [0], [0], [1], [0, 0, 1, 1], [], []>} : vector<16x2xf32>, vector<2x16xf32>, vector<16x16xf32> -> vector<16x16xf32>
    %c0_32 = arith.constant 0 : index
    %c0_33 = arith.constant 0 : index
    %33 = vector.load %arg13[%c0_32, %c0_33] : memref<16x384xf32, #tpu.memory_space<vmem>>, vector<16x384xf32>
    %cst_34 = arith.constant dense<0.000000e+00> : vector<16x384xf32>
    %34 = tpu.matmul %32, %33, %cst_34 {dimension_numbers = #tpu.dot_dimension_numbers<[1], [0], [0], [1], [0, 0, 1, 1], [], []>} : vector<16x16xf32>, vector<16x384xf32>, vector<16x384xf32> -> vector<16x384xf32>
    %35 = arith.addf %18, %34 : vector<16x384xf32>
    %c0_35 = arith.constant 0 : index
    %c0_36 = arith.constant 0 : index
    %36 = vector.load %arg14[%c0_35, %c0_36] : memref<4x16xf32, #tpu.memory_space<vmem>>, vector<4x16xf32>
    %cst_37 = arith.constant dense<0.000000e+00> : vector<4x128xf32>
    %37 = tpu.matmul %36, %1, %cst_37 {dimension_numbers = #tpu.dot_dimension_numbers<[1], [0], [0], [1], [0, 0, 1, 1], [], []>} : vector<4x16xf32>, vector<16x128xf32>, vector<4x128xf32> -> vector<4x128xf32>
    %c0_38 = arith.constant 0 : index
    %c0_39 = arith.constant 0 : index
    %38 = vector.load %arg15[%c0_38, %c0_39] : memref<128x32xf32, #tpu.memory_space<vmem>>, vector<128x32xf32>
    %cst_40 = arith.constant dense<0.000000e+00> : vector<4x32xf32>
    %39 = tpu.matmul %37, %38, %cst_40 {dimension_numbers = #tpu.dot_dimension_numbers<[1], [0], [0], [1], [0, 0, 1, 1], [], []>} : vector<4x128xf32>, vector<128x32xf32>, vector<4x32xf32> -> vector<4x32xf32>
    %c0_41 = arith.constant 0 : index
    %c0_42 = arith.constant 0 : index
    %40 = vector.load %arg17[%c0_41, %c0_42] : memref<1x32xf32, #tpu.memory_space<vmem>>, vector<1x32xf32>
    %41 = vector.broadcast %40 : vector<1x32xf32> to vector<4x32xf32>
    %42 = arith.mulf %39, %41 : vector<4x32xf32>
    %c0_43 = arith.constant 0 : index
    %c0_44 = arith.constant 0 : index
    %43 = vector.load %arg18[%c0_43, %c0_44] : memref<1x32xf32, #tpu.memory_space<vmem>>, vector<1x32xf32>
    %44 = vector.broadcast %43 : vector<1x32xf32> to vector<4x32xf32>
    %45 = arith.addf %42, %44 : vector<4x32xf32>
    %cst_45 = arith.constant 0.000000e+00 : f32
    %46 = vector.broadcast %cst_45 : f32 to vector<4x32xf32>
    %47 = arith.maximumf %45, %46 : vector<4x32xf32>
    %c0_46 = arith.constant 0 : index
    %c0_47 = arith.constant 0 : index
    %48 = vector.load %arg16[%c0_46, %c0_47] : memref<16x4xf32, #tpu.memory_space<vmem>>, vector<16x4xf32>
    %cst_48 = arith.constant dense<0.000000e+00> : vector<16x32xf32>
    %49 = tpu.matmul %48, %47, %cst_48 {dimension_numbers = #tpu.dot_dimension_numbers<[1], [0], [0], [1], [0, 0, 1, 1], [], []>} : vector<16x4xf32>, vector<4x32xf32>, vector<16x32xf32> -> vector<16x32xf32>
    %c0_49 = arith.constant 0 : index
    %c0_50 = arith.constant 0 : index
    %50 = vector.load %arg19[%c0_49, %c0_50] : memref<32x384xf32, #tpu.memory_space<vmem>>, vector<32x384xf32>
    %cst_51 = arith.constant dense<0.000000e+00> : vector<16x384xf32>
    %51 = tpu.matmul %49, %50, %cst_51 {dimension_numbers = #tpu.dot_dimension_numbers<[1], [0], [0], [1], [0, 0, 1, 1], [], []>} : vector<16x32xf32>, vector<32x384xf32>, vector<16x384xf32> -> vector<16x384xf32>
    %52 = arith.addf %35, %51 : vector<16x384xf32>
    %c0_52 = arith.constant 0 : index
    %c0_53 = arith.constant 0 : index
    %53 = vector.load %arg20[%c0_52, %c0_53] : memref<8x16xf32, #tpu.memory_space<vmem>>, vector<8x16xf32>
    %cst_54 = arith.constant dense<0.000000e+00> : vector<8x128xf32>
    %54 = tpu.matmul %53, %1, %cst_54 {dimension_numbers = #tpu.dot_dimension_numbers<[1], [0], [0], [1], [0, 0, 1, 1], [], []>} : vector<8x16xf32>, vector<16x128xf32>, vector<8x128xf32> -> vector<8x128xf32>
    %c0_55 = arith.constant 0 : index
    %c0_56 = arith.constant 0 : index
    %55 = vector.load %arg21[%c0_55, %c0_56] : memref<128x64xf32, #tpu.memory_space<vmem>>, vector<128x64xf32>
    %cst_57 = arith.constant dense<0.000000e+00> : vector<8x64xf32>
    %56 = tpu.matmul %54, %55, %cst_57 {dimension_numbers = #tpu.dot_dimension_numbers<[1], [0], [0], [1], [0, 0, 1, 1], [], []>} : vector<8x128xf32>, vector<128x64xf32>, vector<8x64xf32> -> vector<8x64xf32>
    %c0_58 = arith.constant 0 : index
    %c0_59 = arith.constant 0 : index
    %57 = vector.load %arg23[%c0_58, %c0_59] : memref<1x64xf32, #tpu.memory_space<vmem>>, vector<1x64xf32>
    %58 = vector.broadcast %57 : vector<1x64xf32> to vector<8x64xf32>
    %59 = arith.mulf %56, %58 : vector<8x64xf32>
    %c0_60 = arith.constant 0 : index
    %c0_61 = arith.constant 0 : index
    %60 = vector.load %arg24[%c0_60, %c0_61] : memref<1x64xf32, #tpu.memory_space<vmem>>, vector<1x64xf32>
    %61 = vector.broadcast %60 : vector<1x64xf32> to vector<8x64xf32>
    %62 = arith.addf %59, %61 : vector<8x64xf32>
    %cst_62 = arith.constant 0.000000e+00 : f32
    %63 = vector.broadcast %cst_62 : f32 to vector<8x64xf32>
    %64 = arith.maximumf %62, %63 : vector<8x64xf32>
    %c0_63 = arith.constant 0 : index
    %c0_64 = arith.constant 0 : index
    %65 = vector.load %arg22[%c0_63, %c0_64] : memref<16x8xf32, #tpu.memory_space<vmem>>, vector<16x8xf32>
    %cst_65 = arith.constant dense<0.000000e+00> : vector<16x64xf32>
    %66 = tpu.matmul %65, %64, %cst_65 {dimension_numbers = #tpu.dot_dimension_numbers<[1], [0], [0], [1], [0, 0, 1, 1], [], []>} : vector<16x8xf32>, vector<8x64xf32>, vector<16x64xf32> -> vector<16x64xf32>
    %c0_66 = arith.constant 0 : index
    %c0_67 = arith.constant 0 : index
    %67 = vector.load %arg25[%c0_66, %c0_67] : memref<64x384xf32, #tpu.memory_space<vmem>>, vector<64x384xf32>
    %cst_68 = arith.constant dense<0.000000e+00> : vector<16x384xf32>
    %68 = tpu.matmul %66, %67, %cst_68 {dimension_numbers = #tpu.dot_dimension_numbers<[1], [0], [0], [1], [0, 0, 1, 1], [], []>} : vector<16x64xf32>, vector<64x384xf32>, vector<16x384xf32> -> vector<16x384xf32>
    %69 = arith.addf %52, %68 : vector<16x384xf32>
    %70 = vector.extract_strided_slice %69 {offsets = [0, 128], sizes = [16, 128], strides = [1, 1]} : vector<16x384xf32> to vector<16x128xf32>
    %c0_69 = arith.constant 0 : index
    %c0_70 = arith.constant 0 : index
    %71 = vector.load %arg27[%c0_69, %c0_70] : memref<16x16xf32, #tpu.memory_space<vmem>>, vector<16x16xf32>
    %72 = vector.extract_strided_slice %69 {offsets = [0, 0], sizes = [16, 128], strides = [1, 1]} : vector<16x384xf32> to vector<16x128xf32>
    %cst_71 = arith.constant dense<0.000000e+00> : vector<16x128xf32>
    %73 = tpu.matmul %71, %72, %cst_71 {dimension_numbers = #tpu.dot_dimension_numbers<[1], [0], [0], [1], [0, 0, 1, 1], [], []>} : vector<16x16xf32>, vector<16x128xf32>, vector<16x128xf32> -> vector<16x128xf32>
    %74 = arith.addf %70, %73 : vector<16x128xf32>
    %c0_72 = arith.constant 0 : index
    %c0_73 = arith.constant 0 : index
    %75 = vector.load %arg28[%c0_72, %c0_73] : memref<16x16xf32, #tpu.memory_space<vmem>>, vector<16x16xf32>
    %76 = vector.extract_strided_slice %69 {offsets = [0, 256], sizes = [16, 128], strides = [1, 1]} : vector<16x384xf32> to vector<16x128xf32>
    %cst_74 = arith.constant dense<0.000000e+00> : vector<16x128xf32>
    %77 = tpu.matmul %75, %76, %cst_74 {dimension_numbers = #tpu.dot_dimension_numbers<[1], [0], [0], [1], [0, 0, 1, 1], [], []>} : vector<16x16xf32>, vector<16x128xf32>, vector<16x128xf32> -> vector<16x128xf32>
    %78 = arith.addf %74, %77 : vector<16x128xf32>
    %c0_75 = arith.constant 0 : index
    %c0_76 = arith.constant 0 : index
    %79 = vector.load %arg29[%c0_75, %c0_76] : memref<1x128xf32, #tpu.memory_space<vmem>>, vector<1x128xf32>
    %80 = vector.broadcast %79 : vector<1x128xf32> to vector<16x128xf32>
    %81 = arith.mulf %78, %80 : vector<16x128xf32>
    %c0_77 = arith.constant 0 : index
    %c0_78 = arith.constant 0 : index
    %82 = vector.load %arg30[%c0_77, %c0_78] : memref<1x128xf32, #tpu.memory_space<vmem>>, vector<1x128xf32>
    %83 = vector.broadcast %82 : vector<1x128xf32> to vector<16x128xf32>
    %84 = arith.addf %81, %83 : vector<16x128xf32>
    %cst_79 = arith.constant 0.000000e+00 : f32
    %85 = vector.broadcast %cst_79 : f32 to vector<16x128xf32>
    %86 = arith.maximumf %84, %85 : vector<16x128xf32>
    %87 = vector.shape_cast %86 : vector<16x128xf32> to vector<1x16x128xf32>
    %c0_80 = arith.constant 0 : index
    %c0_81 = arith.constant 0 : index
    %c0_82 = arith.constant 0 : index
    %88 = vector.load %arg31[%c0_80, %c0_81, %c0_82] : memref<1x16x128xf32, #tpu.memory_space<vmem>>, vector<1x16x128xf32>
    tpu.vector_store %arg31[%c0_80, %c0_81, %c0_82], %87 {strides = array<i32>} : memref<1x16x128xf32, #tpu.memory_space<vmem>>, vector<1x16x128xf32>,
    return
  }
  func.func @transform_0(%arg0: i32) -> (i32, i32, i32) {
    %c0_i32 = arith.constant 0 : i32
    %c0_i32_0 = arith.constant 0 : i32
    %c0_i32_1 = arith.constant 0 : i32
    return %arg0, %c0_i32, %c0_i32_0 : i32, i32, i32
  }
  func.func @transform_1(%arg0: i32) -> (i32, i32) {
    %c0_i32 = arith.constant 0 : i32
    %c0_i32_0 = arith.constant 0 : i32
    %c0_i32_1 = arith.constant 0 : i32
    return %c0_i32, %c0_i32_0 : i32, i32
  }
  func.func @transform_2(%arg0: i32) -> (i32, i32) {
    %c0_i32 = arith.constant 0 : i32
    %c0_i32_0 = arith.constant 0 : i32
    %c0_i32_1 = arith.constant 0 : i32
    return %c0_i32, %c0_i32_0 : i32, i32
  }
  func.func @transform_3(%arg0: i32) -> (i32, i32) {
    %c0_i32 = arith.constant 0 : i32
    %c0_i32_0 = arith.constant 0 : i32
    %c0_i32_1 = arith.constant 0 : i32
    return %c0_i32, %c0_i32_0 : i32, i32
  }
  func.func @transform_4(%arg0: i32) -> (i32, i32) {
    %c0_i32 = arith.constant 0 : i32
    %c0_i32_0 = arith.constant 0 : i32
    %c0_i32_1 = arith.constant 0 : i32
    return %c0_i32, %c0_i32_0 : i32, i32
  }
  func.func @transform_5(%arg0: i32) -> (i32, i32) {
    %c0_i32 = arith.constant 0 : i32
    %c0_i32_0 = arith.constant 0 : i32
    %c0_i32_1 = arith.constant 0 : i32
    return %c0_i32, %c0_i32_0 : i32, i32
  }
  func.func @transform_6(%arg0: i32) -> (i32, i32) {
    %c0_i32 = arith.constant 0 : i32
    %c0_i32_0 = arith.constant 0 : i32
    %c0_i32_1 = arith.constant 0 : i32
    return %c0_i32, %c0_i32_0 : i32, i32
  }
  func.func @transform_7(%arg0: i32) -> (i32, i32) {
    %c0_i32 = arith.constant 0 : i32
    %c0_i32_0 = arith.constant 0 : i32
    %c0_i32_1 = arith.constant 0 : i32
    return %c0_i32, %c0_i32_0 : i32, i32
  }
  func.func @transform_8(%arg0: i32) -> (i32, i32) {
    %c0_i32 = arith.constant 0 : i32
    %c0_i32_0 = arith.constant 0 : i32
    %c0_i32_1 = arith.constant 0 : i32
    return %c0_i32, %c0_i32_0 : i32, i32
  }
  func.func @transform_9(%arg0: i32) -> (i32, i32) {
    %c0_i32 = arith.constant 0 : i32
    %c0_i32_0 = arith.constant 0 : i32
    %c0_i32_1 = arith.constant 0 : i32
    return %c0_i32, %c0_i32_0 : i32, i32
  }
  func.func @transform_10(%arg0: i32) -> (i32, i32) {
    %c0_i32 = arith.constant 0 : i32
    %c0_i32_0 = arith.constant 0 : i32
    %c0_i32_1 = arith.constant 0 : i32
    return %c0_i32, %c0_i32_0 : i32, i32
  }
  func.func @transform_11(%arg0: i32) -> (i32, i32) {
    %c0_i32 = arith.constant 0 : i32
    %c0_i32_0 = arith.constant 0 : i32
    %c0_i32_1 = arith.constant 0 : i32
    return %c0_i32, %c0_i32_0 : i32, i32
  }
  func.func @transform_12(%arg0: i32) -> (i32, i32) {
    %c0_i32 = arith.constant 0 : i32
    %c0_i32_0 = arith.constant 0 : i32
    %c0_i32_1 = arith.constant 0 : i32
    return %c0_i32, %c0_i32_0 : i32, i32
  }
  func.func @transform_13(%arg0: i32) -> (i32, i32) {
    %c0_i32 = arith.constant 0 : i32
    %c0_i32_0 = arith.constant 0 : i32
    %c0_i32_1 = arith.constant 0 : i32
    return %c0_i32, %c0_i32_0 : i32, i32
  }
  func.func @transform_14(%arg0: i32) -> (i32, i32) {
    %c0_i32 = arith.constant 0 : i32
    %c0_i32_0 = arith.constant 0 : i32
    %c0_i32_1 = arith.constant 0 : i32
    return %c0_i32, %c0_i32_0 : i32, i32
  }
  func.func @transform_15(%arg0: i32) -> (i32, i32) {
    %c0_i32 = arith.constant 0 : i32
    %c0_i32_0 = arith.constant 0 : i32
    %c0_i32_1 = arith.constant 0 : i32
    return %c0_i32, %c0_i32_0 : i32, i32
  }
  func.func @transform_16(%arg0: i32) -> (i32, i32) {
    %c0_i32 = arith.constant 0 : i32
    %c0_i32_0 = arith.constant 0 : i32
    %c0_i32_1 = arith.constant 0 : i32
    return %c0_i32, %c0_i32_0 : i32, i32
  }
  func.func @transform_17(%arg0: i32) -> (i32, i32) {
    %c0_i32 = arith.constant 0 : i32
    %c0_i32_0 = arith.constant 0 : i32
    %c0_i32_1 = arith.constant 0 : i32
    return %c0_i32, %c0_i32_0 : i32, i32
  }
  func.func @transform_18(%arg0: i32) -> (i32, i32) {
    %c0_i32 = arith.constant 0 : i32
    %c0_i32_0 = arith.constant 0 : i32
    %c0_i32_1 = arith.constant 0 : i32
    return %c0_i32, %c0_i32_0 : i32, i32
  }
  func.func @transform_19(%arg0: i32) -> (i32, i32) {
    %c0_i32 = arith.constant 0 : i32
    %c0_i32_0 = arith.constant 0 : i32
    %c0_i32_1 = arith.constant 0 : i32
    return %c0_i32, %c0_i32_0 : i32, i32
  }
  func.func @transform_20(%arg0: i32) -> (i32, i32) {
    %c0_i32 = arith.constant 0 : i32
    %c0_i32_0 = arith.constant 0 : i32
    %c0_i32_1 = arith.constant 0 : i32
    return %c0_i32, %c0_i32_0 : i32, i32
  }
  func.func @transform_21(%arg0: i32) -> (i32, i32) {
    %c0_i32 = arith.constant 0 : i32
    %c0_i32_0 = arith.constant 0 : i32
    %c0_i32_1 = arith.constant 0 : i32
    return %c0_i32, %c0_i32_0 : i32, i32
  }
  func.func @transform_22(%arg0: i32) -> (i32, i32) {
    %c0_i32 = arith.constant 0 : i32
    %c0_i32_0 = arith.constant 0 : i32
    %c0_i32_1 = arith.constant 0 : i32
    return %c0_i32, %c0_i32_0 : i32, i32
  }
  func.func @transform_23(%arg0: i32) -> (i32, i32) {
    %c0_i32 = arith.constant 0 : i32
    %c0_i32_0 = arith.constant 0 : i32
    %c0_i32_1 = arith.constant 0 : i32
    return %c0_i32, %c0_i32_0 : i32, i32
  }
  func.func @transform_24(%arg0: i32) -> (i32, i32) {
    %c0_i32 = arith.constant 0 : i32
    %c0_i32_0 = arith.constant 0 : i32
    %c0_i32_1 = arith.constant 0 : i32
    return %c0_i32, %c0_i32_0 : i32, i32
  }
  func.func @transform_25(%arg0: i32) -> (i32, i32) {
    %c0_i32 = arith.constant 0 : i32
    %c0_i32_0 = arith.constant 0 : i32
    %c0_i32_1 = arith.constant 0 : i32
    return %c0_i32, %c0_i32_0 : i32, i32
  }
  func.func @transform_26(%arg0: i32) -> (i32, i32) {
    %c0_i32 = arith.constant 0 : i32
    %c0_i32_0 = arith.constant 0 : i32
    %c0_i32_1 = arith.constant 0 : i32
    return %c0_i32, %c0_i32_0 : i32, i32
  }
  func.func @transform_27(%arg0: i32) -> (i32, i32) {
    %c0_i32 = arith.constant 0 : i32
    %c0_i32_0 = arith.constant 0 : i32
    %c0_i32_1 = arith.constant 0 : i32
    return %c0_i32, %c0_i32_0 : i32, i32
  }
  func.func @transform_28(%arg0: i32) -> (i32, i32) {
    %c0_i32 = arith.constant 0 : i32
    %c0_i32_0 = arith.constant 0 : i32
    %c0_i32_1 = arith.constant 0 : i32
    return %c0_i32, %c0_i32_0 : i32, i32
  }
  func.func @transform_29(%arg0: i32) -> (i32, i32) {
    %c0_i32 = arith.constant 0 : i32
    %c0_i32_0 = arith.constant 0 : i32
    %c0_i32_1 = arith.constant 0 : i32
    return %c0_i32, %c0_i32_0 : i32, i32
  }
  func.func @transform_30(%arg0: i32) -> (i32, i32, i32) {
    %c0_i32 = arith.constant 0 : i32
    %c0_i32_0 = arith.constant 0 : i32
    %c0_i32_1 = arith.constant 0 : i32
    return %arg0, %c0_i32, %c0_i32_0 : i32, i32, i32
  }
}

</mosaic_0001>

<bundles_post_ra>
// kernel: tpu_custom_call.1
= control target key start
LH: loop header
LB: loop body
LE: loop exit
PB: predicated region body
PF: predicated region fallthrough
CT: control target
= control target key end

     0   :  { %s2258_s6 = smov 1   ;;  %s2259_s10 = smov 2   ;;  %s2777_s0 = inlined_call_operand.smem [shape: u32[31], index: -1, kind: input, shape index: {}] }
   0x1   :  { %s2300_s5 = sld [smem:[%s2777_s0]]   ;;  %s2260_s14 = smov 4  }
   0x2   :  { %s2305_s9 = sld [smem:[%s2777_s0 + %s2258_s6]]   ;;  %s2261_s18 = smov 5  }
   0x3   :  { %s2310_s13 = sld [smem:[%s2777_s0 + %s2259_s10]]   ;;  %s2262_s22 = smov 6  }
   0x4   :  { %s2315_s17 = sld [smem:[%s2777_s0 + %s2260_s14]]   ;;  %s2263_s26 = smov 7  }
   0x5   :  { %s2320_s21 = sld [smem:[%s2777_s0 + %s2261_s18]]   ;;  %s2264_s30 = smov 8  }
   0x6   :  { %s2325_s25 = sld [smem:[%s2777_s0 + %s2262_s22]]   ;;  %s2265_s4 = smov 9  }
   0x7   :  { %2795 = sst [smem:[#allocation8_spill]] %s2300_s5  ;;  %s2266_s10 = smov 10  }
   0x8   :  { %2796 = sst [smem:[#allocation9_spill]] %s2305_s9  ;;  %s2267_s15 = smov 11  }
   0x9   :  { %2797 = sst [smem:[#allocation10_spill]] %s2310_s13  ;;  %s2268_s20 = smov 12  }
   0xa   :  { %s2330_s29 = sld [smem:[%s2777_s0 + %s2263_s26]]   ;;  %s2269_s26 = smov 13  }
   0xb   :  { %s2335_s3 = sld [smem:[%s2777_s0 + %s2264_s30]]   ;;  %s2270_s1 = smov 14  }
   0xc   :  { %s2340_s8 = sld [smem:[%s2777_s0 + %s2265_s4]]   ;;  %s2271_s7 = smov 15  }
   0xd   :  { %s2345_s14 = sld [smem:[%s2777_s0 + %s2266_s10]]   ;;  %s2273_s22 = smov 17  }
   0xe   :  { %s2350_s19 = sld [smem:[%s2777_s0 + %s2267_s15]]   ;;  %s2272_s15 = smov 16  }
   0xf   :  { %s2355_s24 = sld [smem:[%s2777_s0 + %s2268_s20]]   ;;  %s2274_s28 = smov 18  }
  0x10   :  { %s2360_s30 = sld [smem:[%s2777_s0 + %s2269_s26]]  }
  0x11   :  { %2798 = sst [smem:[#allocation11_spill]] %s2335_s3 }
  0x12   :  { %2799 = sst [smem:[#allocation12_spill]] %s2340_s8 }
  0x13   :  { %s2365_s6 = sld [smem:[%s2777_s0 + %s2270_s1]]  }
  0x14   :  { %s2370_s12 = sld [smem:[%s2777_s0 + %s2271_s7]]   ;;  %s2275_s7 = smov 19  }
  0x15   :  { %s2375_s20 = sld [smem:[%s2777_s0 + %s2272_s15]]   ;;  %s2276_s15 = smov 20  }
  0x16   :  { %2800 = sst [smem:[#allocation13_spill]] %s2360_s30 }
  0x17   :  { %s2380_s27 = sld [smem:[%s2777_s0 + %s2273_s22]]   ;;  %s2277_s22 = smov 21  }
  0x18   :  { %s2385_s4 = sld [smem:[%s2777_s0 + %s2274_s28]]   ;;  %s2278_s28 = smov 22  }
  0x19   :  { %2801 = sst [smem:[#allocation14_spill]] %s2365_s6 }
  0x1a   :  { %2802 = sst [smem:[#allocation15_spill]] %s2370_s12 }
  0x1b   :  { %2803 = sst [smem:[#allocation16_spill]] %s2375_s20 }
  0x1c   :  { %s2390_s12 = sld [smem:[%s2777_s0 + %s2275_s7]]   ;;  %s2279_s7 = smov 23  }
  0x1d   :  { %2804 = sst [smem:[#allocation17_spill]] %s2380_s27 }
  0x1e   :  { %2805 = sst [smem:[#allocation18_spill]] %s2385_s4 }
  0x1f   :  { %s2395_s20 = sld [smem:[%s2777_s0 + %s2276_s15]]   ;;  %s2280_s15 = smov 24  }
  0x20   :  { %s2400_s27 = sld [smem:[%s2777_s0 + %s2277_s22]]   ;;  %s2281_s22 = smov 25  }
  0x21   :  { %s2405_s4 = sld [smem:[%s2777_s0 + %s2278_s28]]   ;;  %s2282_s28 = smov 26  }
  0x22   :  { %2806 = sst [smem:[#allocation19_spill]] %s2390_s12 }
  0x23   :  { %s2410_s12 = sld [smem:[%s2777_s0 + %s2279_s7]]   ;;  %s2283_s7 = smov 27  }
  0x25   :  { %2807 = sst [smem:[#allocation20_spill]] %s2395_s20 }
  0x26   :  { %2808 = sst [smem:[#allocation21_spill]] %s2400_s27 }
  0x27   :  { %2809 = sst [smem:[#allocation22_spill]] %s2405_s4 }
  0x28   :  { %s2415_s20 = sld [smem:[%s2777_s0 + %s2280_s15]]   ;;  %s2284_s15 = smov 28  }
  0x29   :  { %2810 = sst [smem:[#allocation23_spill]] %s2410_s12 }
  0x2a   :  { %s2420_s27 = sld [smem:[%s2777_s0 + %s2281_s22]]   ;;  %s2285_s22 = smov 29  }
  0x2b   :  { %s2425_s4 = sld [smem:[%s2777_s0 + %s2282_s28]]   ;;  %s2286_s28 = smov 30  }
  0x2c   :  { %s2430_s12 = sld [smem:[%s2777_s0 + %s2283_s7]]  }
  0x2d   :  { %s2440_s30 = sld [smem:[%s2777_s0 + %s2285_s22]]  }
  0x2e   :  { %2811 = sst [smem:[#allocation24_spill]] %s2415_s20 }
  0x2f   :  { %s2435_s20 = sld [smem:[%s2777_s0 + %s2284_s15]]  }
  0x31   :  { %2812 = sst [smem:[#allocation25_spill]] %s2425_s4 }
  0x32   :  { %2813 = sst [smem:[#allocation26_spill]] %s2430_s12 }
  0x33   :  { %s2445_s4 = sld [smem:[%s2777_s0 + %s2286_s28]]  }
  0x34   :  { %66 = vsyncpa [#allocation3], 0 }
  0x35   :  { %67 = vsyncpa [#allocation4], 0 }
  0x36   :  { %69 = vsyncpa [#allocation4 + $0x1], 0  ;;  %s2447_s7 = smov 0   ;;  %s2449_s10 = smov 0  }
  0x37   :  { %s2451_s11 = smov 0   ;;  %s2453_s15 = smov 0  }
  0x38 LB: > { %s2814_s13 = sld [smem:[#allocation10_spill]]  ;;  %s2468_s0 = sadd.s32 4294967295, %s2256_s15   ;;  %s2244_s7 = sphi %s2447_s7, %s2849_s7   ;;  %s2256_s15 = sphi %s2453_s15, %s2846_s15   ;;  %s2252_s11 = sphi %s2451_s11, %s2848_s11   ;;  %s2248_s10 = sphi %s2449_s10, %s2850_s10  }
  0x39   : > { %s2815_s12 = sld [smem:[#allocation26_spill]]  ;;  %s2012_s16 = sadd.s32 4294967294, %s2256_s15  }
  0x3a   : > { %s2816_s8 = sld [smem:[#allocation12_spill]]  ;;  %s2472_s18 = sadd.s32 1, %s2256_s15  }
  0x3b   : > { %s2817_s6 = sld [smem:[#allocation14_spill]]  ;;  %s717_s22 = sadd.s32 1, %s2252_s11 }
  0x3c   : > { %s2818_s3 = sld [smem:[#allocation11_spill]]  ;;  %s714_s23 = ssub.s32 %s2256_s15, %s2472_s18 }
  0x3d   : > { %2819 = sst [smem:[#allocation27_spill]] %s2244_s7  ;;  %p727_p0 = scmp.ne.s32.totalorder %s2252_s11, %s2248_s10 }
  0x3e   : > { %2820 = sst [smem:[#allocation28_spill]] %s2252_s11  ;;  %p715_p1 = scmp.eq.s32.totalorder %s714_s23, 0 }
  0x3f   : > { %2821 = sst [smem:[#allocation29_spill]] %s2472_s18  ;;  %p728_p2 = scmp.eq.s32.totalorder %s2468_s0, 1 }
  0x40   : > { %p733_p3 = scmp.ne.s32.totalorder %s2248_s10, %s2244_s7  ;;  %p734_p4 = scmp.eq.s32.totalorder %s2012_s16, 1 }
  0x41   : > { %s2483_s26 = scalar_select %p715_p1, %s2252_s11, %s717_s22  }
  0x42   : > { %p2485_p5 = por %p728_p2, %p727_p0  ;;  %p2489_p6 = por %p734_p4, %p733_p3 }
  0x43   : > { %2822 = sst [smem:[#allocation30_spill]] %s2483_s26  ;;  %p2013_p7 = scmp.ge.s32.totalorder %s2256_s15, 1 }
  0x44   : > { %s2824_s1 = scalar_select %p2489_p6, 1, 0 }
  0x45   : > { %p741_p8 = scmp.lt.s32.totalorder %s2256_s15, 3  ;;  %p2083_p9 = scmp.eq.s32.totalorder %s2468_s0, 0 }
  0x46   : > { %2825 = sst [smem:[#allocation31_spill]] %s2824_s1  ;;  %s824_s16 = sshll.u32 %s2420_s27, 4  ;;  %s825_s16 = int_to_ptr.hbm [resolvable:$true] %s824_s16 }
  0x47   : > { %p2496_p10 = pnand %p2013_p7, %p741_p8  ;;  %s2287_s22 = smov [#allocation2]  }
  0x48   : > { %s826_s23 = sshll.u32 %s2287_s22, 4  ;;  %s2160_s11 = sshra.s32 %s825_s16, 4  ;;  %s827_s23 = int_to_ptr.vmem [resolvable:$true] %s826_s23  ;;  %s2161_s11 = int_to_ptr.hbm [resolvable:$true] %s2160_s11 }
  0x49   : > { %p2075_p11 = pneg %p2496_p10  ;;  %s2162_s18 = scalar_lea.hbm %s2161_s11, 384 }
  0x4a   : > { %p2163_p13 = scmp.ne.s32.totalorder %s2161_s11, %s2162_s18  ;;  %s2167_s1 = scalar_lea.hbm %s2420_s27, 384 }
  0x4b   : > { %p2505_p12 = pnand %p2083_p9, %p2075_p11  ;;  %p2168_p3 = scmp.lt.s32.totalorder %s2161_s11, %s2420_s27 }
  0x4c   : > { %p2169_p4 = scmp.lt.s32.totalorder %s2167_s1, %s2162_s18 }
  0x4d   : > { %p2164_p0 = pneg %p2505_p12 }
  0x4e   : > { %p2170_p7 = por %p2169_p4, %p2168_p3 }
  0x4f   : > { %p2165_p1 = pnand %p2164_p0, %p2163_p13 }
  0x51   : > { %p2166_p2 = pneg %p2165_p1 }
  0x53   : > { %p2171_p8 = pnand %p2170_p7, %p2166_p2 }
  0x55   : > { %2174 = shalt.err (!%p2171_p8)
}
  0x56   : > { %s2288_s22 = smov 384   ;;  %s2289_s7 = smov 24  }
  0x57   : > { %2078 = dma.hbm_to_vmem [thread:$0]  (!%p2505_p12), %s825_s16, 6144, %s827_s23, [#allocation3], %s2288_s22, %s2288_s22, %s2289_s7  }
  0x58   : > { %862 = sbr.rel (%p2496_p10) target bundleno = 1780 (0x6f4), region = 140 }
  0x5d   : > { %2235 = dma.done.wait (%p2083_p9), [#allocation3], 6144  }
  0x5e   : > { %2237 = vsyncadd (%p2083_p9), [#allocation3], 4294961152  ;;  %s2828_s5 = sld [smem:[#allocation8_spill]]  ;;  %p941_p11 = scmp.lt.s32.totalorder %s2468_s0, 1  ;;  %vm997_vm0 = vcmask 130048   ;;  %v1036_v3 = vld [vmem:[%s2814_s13 + $0x78] sm:$0xff] }
  0x5f   : > { %s2829_s9 = sld [smem:[#allocation9_spill]]  ;;  %v1035_v4 = vld [vmem:[%s2814_s13 + $0x70] sm:$0xff]  ;;  %1037 = vmatpush.msra.mxu1 %v1036_v3  ;;  %v1034_v5 = vld [vmem:[%s2814_s13 + $0x68] sm:$0xff]  ;;  %v1033_v6 = vld [vmem:[%s2814_s13 + $0x60] sm:$0xff]  ;;  %vm1067_vm1 = vcmask 64512   ;;  %vm1288_vm2 = vcmask 1041408  }
  0x60   : > { %s942_s11 = scalar_select %p941_p11, %s2468_s0, 1  ;;  %v1032_v7 = vld [vmem:[%s2814_s13 + $0x58] sm:$0xff]  ;;  %v1031_v8 = vld [vmem:[%s2814_s13 + $0x50] sm:$0xff]  ;;  %v1030_v9 = vld [vmem:[%s2814_s13 + $0x48] sm:$0xff]  ;;  %vm1281_vm3 = vcmask 15360   ;;  %vm1482_vm4 = vcmask 1043456  }
  0x61   : > { %1038 = vmatpush.msra.mxu1 %v1035_v4  ;;  %v1029_v10 = vld [vmem:[%s2814_s13 + $0x40] sm:$0xff]  ;;  %v1028_v11 = vld [vmem:[%s2814_s13 + $0x38] sm:$0xff]  ;;  %v1027_v12 = vld [vmem:[%s2814_s13 + $0x30] sm:$0xff]  ;;  %s2830_s26 = sld [smem:[#allocation13_spill]]  ;;  %vm1475_vm5 = vcmask 31744   ;;  %vm1521_vm6 = vcmask 261120  }
  0x62   : > { %s2066_s7 = sshll.u32 %s942_s11, 4  ;;  %v1026_v13 = vld [vmem:[%s2814_s13 + $0x28] sm:$0xff]  ;;  %v1025_v14 = vld [vmem:[%s2814_s13 + $0x20] sm:$0xff]  ;;  %v1024_v15 = vld [vmem:[%s2814_s13 + $0x18] sm:$0xff]  ;;  %s2831_s1 = sld [smem:[#allocation18_spill]]  ;;  %vm1729_vm7 = vcmask 523264  }
  0x63   : > { %1039 = vmatpush.msra.mxu1 %v1034_v5  ;;  %v1023_v16 = vld [vmem:[%s2814_s13 + $0x10] sm:$0xff]  ;;  %v1022_v17 = vld [vmem:[%s2814_s13 + $0x8] sm:$0xff]  ;;  %v1021_v18 = vld [vmem:[%s2814_s13] sm:$0xff]  ;;  %s2832_s2 = sld [smem:[#allocation16_spill]] }
  0x64   : > { %s945_s18 = scalar_lea.vmem %s2828_s5, %s2066_s7  ;;  %v1063_v19 = vld [vmem:[%s2325_s25] sm:$0xff]  ;;  %v993_v20 = vld [vmem:[#allocation2 + $0x168] sm:$0xff]  ;;  %v990_v21 = vld [vmem:[#allocation2 + $0x150] sm:$0xff]  ;;  %s2833_s16 = sld [smem:[#allocation17_spill]] }
  0x65   : > { %v2524_v0 = vld [vmem:[%s945_s18 + $0x8] sm:$0xff]  ;;  %v2526_v1 = vld [vmem:[%s945_s18] sm:$0xff]  ;;  %1040 = vmatpush.msra.mxu1 %v1033_v6  ;;  %1085 = vmatpush.msra.mxu2 %v1063_v19  ;;  %v987_v23 = vld [vmem:[#allocation2 + $0x138] sm:$0xff]  ;;  %s2834_s23 = sld [smem:[#allocation15_spill]] }
  0x66   : > { %1015 = vmatpush.msra.mxu0 %v2524_v0  ;;  %v996_v2 = vld [vmem:[%s2829_s9] sm:$0x1]  ;;  %v1064_v22 = vld [vmem:[%s2325_s25 + $0x8] sm:$0xff]  ;;  %v1065_v24 = vld [vmem:[%s2325_s25 + $0x10] sm:$0xff]  ;;  %s2835_s22 = sld [smem:[#allocation20_spill]] }
  0x67   : > { %1041 = vmatpush.msra.mxu1 %v1032_v7  ;;  %1139 = vmatpush.msrb.mxu2 %v993_v20  ;;  %v994_v25 = vld [vmem:[#allocation2 + $0x170] sm:$0xff]  ;;  %v995_v26 = vld [vmem:[#allocation2 + $0x178] sm:$0xff]  ;;  %v984_v28 = vld [vmem:[#allocation2 + $0x120] sm:$0xff]  ;;  %s2836_s11 = sld [smem:[#allocation19_spill]] }
  0x68   : > { %1016 = vmatpush.msra.mxu0 %v2526_v1  ;;  %1108 = vmatpush.msra.mxu3 %v1064_v22  ;;  %v991_v27 = vld [vmem:[#allocation2 + $0x158] sm:$0xff]  ;;  %v992_v29 = vld [vmem:[#allocation2 + $0x160] sm:$0xff]  ;;  %v989_v31 = vld [vmem:[#allocation2 + $0x148] sm:$0xff]  ;;  %s2837_s7 = sld [smem:[#allocation24_spill]] }
  0x69   : > { %2021 = vmatmul.msk.f32.vlgmr.msra.gmra.mxu0 %vm997_vm0, %v996_v2  ;;  %1042 = vmatpush.msra.mxu1 %v1031_v8  ;;  %v988_v30 = vld [vmem:[#allocation2 + $0x140] sm:$0xff]  ;;  %v981_v32 = vld [vmem:[#allocation2 + $0x108] sm:$0xff]  ;;  %v978_v33 = vld [vmem:[#allocation2 + $0xf0] sm:$0xff] }
  0x6a   : > { %1140 = vmatpush.msrb.mxu2 %v990_v21  ;;  %1131 = vmatpush.msrb.mxu0 %v1065_v24  ;;  %v975_v34 = vld [vmem:[#allocation2 + $0xd8] sm:$0xff]  ;;  %v972_v35 = vld [vmem:[#allocation2 + $0xc0] sm:$0xff]  ;;  %v969_v36 = vld [vmem:[#allocation2 + $0xa8] sm:$0xff] }
  0x6b   : > { %1043 = vmatpush.msra.mxu1 %v1030_v9  ;;  %1162 = vmatpush.msrb.mxu3 %v994_v25  ;;  %v966_v37 = vld [vmem:[#allocation2 + $0x90] sm:$0xff]  ;;  %v963_v38 = vld [vmem:[#allocation2 + $0x78] sm:$0xff]  ;;  %v1208_v40 = vld [vmem:[%s2330_s29] sm:$0x3] }
  0x6c   : > { %1185 = vmatpush.msra.mxu0 %v995_v26  ;;  %1141 = vmatpush.msrb.mxu2 %v987_v23  ;;  %v985_v41 = vld [vmem:[#allocation2 + $0x128] sm:$0xff]  ;;  %v986_v42 = vld [vmem:[#allocation2 + $0x130] sm:$0xff]  ;;  %v960_v43 = vld [vmem:[#allocation2 + $0x60] sm:$0xff] }
  0x6d   : > { %1044 = vmatpush.msra.mxu1 %v1029_v10  ;;  %1163 = vmatpush.msrb.mxu3 %v991_v27  ;;  %v982_v44 = vld [vmem:[#allocation2 + $0x110] sm:$0xff]  ;;  %v983_v45 = vld [vmem:[#allocation2 + $0x118] sm:$0xff]  ;;  %v957_v46 = vld [vmem:[#allocation2 + $0x48] sm:$0xff] }
  0x6e   : > { %1186 = vmatpush.msra.mxu0 %v992_v29  ;;  %1142 = vmatpush.msrb.mxu2 %v984_v28  ;;  %v979_v47 = vld [vmem:[#allocation2 + $0xf8] sm:$0xff]  ;;  %v980_v48 = vld [vmem:[#allocation2 + $0x100] sm:$0xff]  ;;  %v954_v49 = vld [vmem:[#allocation2 + $0x30] sm:$0xff]  ;;  %s2838_s18 = smov %s2837_s7 }
  0x6f   : > { %1045 = vmatpush.msra.mxu1 %v1028_v11  ;;  %1164 = vmatpush.msrb.mxu3 %v988_v30  ;;  %v976_v50 = vld [vmem:[#allocation2 + $0xe0] sm:$0xff]  ;;  %v977_v51 = vld [vmem:[#allocation2 + $0xe8] sm:$0xff]  ;;  %v951_v52 = vld [vmem:[#allocation2 + $0x18] sm:$0xff] }
  0x70   : > { %1187 = vmatpush.msra.mxu0 %v989_v31  ;;  %1143 = vmatpush.msrb.mxu2 %v981_v32  ;;  %v973_v53 = vld [vmem:[#allocation2 + $0xc8] sm:$0xff]  ;;  %v974_v54 = vld [vmem:[#allocation2 + $0xd0] sm:$0xff]  ;;  %v948_v55 = vld [vmem:[#allocation2] sm:$0xff] }
  0x71   : > { %1046 = vmatpush.msra.mxu1 %v1027_v12  ;;  %1165 = vmatpush.msrb.mxu3 %v985_v41  ;;  %v970_v56 = vld [vmem:[#allocation2 + $0xb0] sm:$0xff]  ;;  %v971_v57 = vld [vmem:[#allocation2 + $0xb8] sm:$0xff]  ;;  %v968_v59 = vld [vmem:[#allocation2 + $0xa0] sm:$0xff] }
  0x72   : > { %1144 = vmatpush.msrb.mxu2 %v978_v33  ;;  %1188 = vmatpush.msra.mxu0 %v986_v42  ;;  %v967_v58 = vld [vmem:[#allocation2 + $0x98] sm:$0xff]  ;;  %v964_v60 = vld [vmem:[#allocation2 + $0x80] sm:$0xff]  ;;  %v965_v61 = vld [vmem:[#allocation2 + $0x88] sm:$0xff] }
  0x73   : > { %1047 = vmatpush.msra.mxu1 %v1026_v13  ;;  %1166 = vmatpush.msrb.mxu3 %v982_v44  ;;  %v961_v62 = vld [vmem:[#allocation2 + $0x68] sm:$0xff]  ;;  %v962_v63 = vld [vmem:[#allocation2 + $0x70] sm:$0xff]  ;;  %v959_v3 = vld [vmem:[#allocation2 + $0x58] sm:$0xff] }
  0x74   : > { %1145 = vmatpush.msrb.mxu2 %v975_v34  ;;  %1189 = vmatpush.msra.mxu0 %v983_v45  ;;  %v958_v2 = vld [vmem:[#allocation2 + $0x50] sm:$0xff]  ;;  %v955_v4 = vld [vmem:[#allocation2 + $0x38] sm:$0xff]  ;;  %v956_v5 = vld [vmem:[#allocation2 + $0x40] sm:$0xff] }
  0x75   : > { %1048 = vmatpush.msra.mxu1 %v1025_v14  ;;  %1167 = vmatpush.msrb.mxu3 %v979_v47  ;;  %v952_v6 = vld [vmem:[#allocation2 + $0x20] sm:$0xff]  ;;  %v953_v7 = vld [vmem:[#allocation2 + $0x28] sm:$0xff]  ;;  %v950_v9 = vld [vmem:[#allocation2 + $0x10] sm:$0xff] }
  0x76   : > { %1146 = vmatpush.msrb.mxu2 %v972_v35  ;;  %1190 = vmatpush.msra.mxu0 %v980_v48  ;;  %v949_v8 = vld [vmem:[#allocation2 + $0x8] sm:$0xff]  ;;  %v1057_v10 = vld [vmem:[%s2315_s17] sm:$0x1]  ;;  %v1243_v21 = vld [vmem:[%s2818_s3 + $0x58] sm:$0xff] }
  0x77   : > { %1049 = vmatpush.msra.mxu1 %v1024_v15  ;;  %1168 = vmatpush.msrb.mxu3 %v976_v50  ;;  %v1059_v12 = vld [vmem:[%s2320_s21] sm:$0x1]  ;;  %v1245_v19 = vld [vmem:[%s2818_s3 + $0x68] sm:$0xff]  ;;  %v1242_v22 = vld [vmem:[%s2818_s3 + $0x50] sm:$0xff] }
  0x78   : > { %1147 = vmatpush.msrb.mxu2 %v969_v36  ;;  %1191 = vmatpush.msra.mxu0 %v977_v51  ;;  %v1244_v20 = vld [vmem:[%s2818_s3 + $0x60] sm:$0xff]  ;;  %v1241_v23 = vld [vmem:[%s2818_s3 + $0x48] sm:$0xff]  ;;  %v1239_v25 = vld [vmem:[%s2818_s3 + $0x38] sm:$0xff] }
  0x79   : > { %1050 = vmatpush.msra.mxu1 %v1023_v16  ;;  %1169 = vmatpush.msrb.mxu3 %v973_v53  ;;  %v1240_v24 = vld [vmem:[%s2818_s3 + $0x40] sm:$0xff]  ;;  %v1238_v26 = vld [vmem:[%s2818_s3 + $0x30] sm:$0xff]  ;;  %v1237_v27 = vld [vmem:[%s2818_s3 + $0x28] sm:$0xff] }
  0x7a   : > { %1148 = vmatpush.msrb.mxu2 %v966_v37  ;;  %1192 = vmatpush.msra.mxu0 %v974_v54  ;;  %v1236_v28 = vld [vmem:[%s2818_s3 + $0x20] sm:$0xff]  ;;  %v1235_v29 = vld [vmem:[%s2818_s3 + $0x18] sm:$0xff]  ;;  %v1234_v30 = vld [vmem:[%s2818_s3 + $0x10] sm:$0xff] }
  0x7b   : > { %1051 = vmatpush.msra.mxu1 %v1022_v17  ;;  %1170 = vmatpush.msrb.mxu3 %v970_v56  ;;  %v1247_v17 = vld [vmem:[%s2818_s3 + $0x78] sm:$0xff]  ;;  %v1233_v31 = vld [vmem:[%s2818_s3 + $0x8] sm:$0xff]  ;;  %v1232_v32 = vld [vmem:[%s2818_s3] sm:$0xff] }
  0x7c   : > { %1149 = vmatpush.msrb.mxu2 %v963_v38  ;;  %1193 = vmatpush.msra.mxu0 %v971_v57  ;;  %v1319_v41 = vld [vmem:[%s2355_s24 + $0x20] sm:$0xff]  ;;  %v1280_v57 = vld [vmem:[%s2816_s8 + $0x8] sm:$0xff] }
  0x7d   : > { %1052 = vmatpush.msra.mxu1 %v1021_v18  ;;  %1171 = vmatpush.msrb.mxu3 %v967_v58  ;;  %v1246_v18 = vld [vmem:[%s2818_s3 + $0x70] sm:$0xff]  ;;  %v2152_v50 = vld [vmem:[%s2345_s14] ss:$0 sm:$0xff]  ;;  %v1320_v58 = vld [vmem:[%s2355_s24 + $0x28] sm:$0xff] }
  0x7e   : > { %1150 = vmatpush.msrb.mxu2 %v960_v43  ;;  %1194 = vmatpush.msra.mxu0 %v968_v59  ;;  %v2153_v51 = vld [vmem:[%s2350_s19] ss:$0 sm:$0xff] }
  0x7f   : > { %1226 = vmatpush.msrb.mxu1 %v2524_v0  ;;  %1172 = vmatpush.msrb.mxu3 %v964_v60  ;;  %v1279_v56 = vld [vmem:[%s2816_s8] sm:$0xff]  ;;  %v1316_v60 = vld [vmem:[%s2355_s24 + $0x8] sm:$0xff] }
  0x80   : > { %1151 = vmatpush.msrb.mxu2 %v957_v46  ;;  %1195 = vmatpush.msra.mxu0 %v965_v61  ;;  %v1315_v59 = vld [vmem:[%s2355_s24] sm:$0xff]  ;;  %v1317_v61 = vld [vmem:[%s2355_s24 + $0x10] sm:$0xff] }
  0x81   : > { %1227 = vmatpush.msrb.mxu1 %v2526_v1  ;;  %1173 = vmatpush.msrb.mxu3 %v961_v62  ;;  %v1441_v62 = vld [vmem:[%s2817_s6 + $0x78] sm:$0xff] }
  0x82   : > { %1152 = vmatpush.msrb.mxu2 %v954_v49  ;;  %1196 = vmatpush.msra.mxu0 %v962_v63  ;;  %v1440_v63 = vld [vmem:[%s2817_s6 + $0x70] sm:$0xff] }
  0x83   : > { %1174 = vmatpush.msrb.mxu3 %v958_v2  ;;  %v1439_v2 = vld [vmem:[%s2817_s6 + $0x68] sm:$0xff] }
  0x84   : > { %1153 = vmatpush.msrb.mxu2 %v951_v52  ;;  %1197 = vmatpush.msra.mxu0 %v959_v3  ;;  %v1438_v3 = vld [vmem:[%s2817_s6 + $0x60] sm:$0xff] }
  0x85   : > { %1175 = vmatpush.msrb.mxu3 %v955_v4 }
  0x86   : > { %1154 = vmatpush.msrb.mxu2 %v948_v55  ;;  %1198 = vmatpush.msra.mxu0 %v956_v5 }
  0x87   : > { %1176 = vmatpush.msrb.mxu3 %v952_v6  ;;  %v1402_v6 = vld [vmem:[%s2830_s26] sm:$0xf]  ;;  %s2839_s26 = sld [smem:[#allocation22_spill]] }
  0x88   : > { %1199 = vmatpush.msra.mxu0 %v953_v7  ;;  %v1437_v7 = vld [vmem:[%s2817_s6 + $0x58] sm:$0xff] }
  0x89   : > { %1177 = vmatpush.msrb.mxu3 %v949_v8  ;;  %v1436_v8 = vld [vmem:[%s2817_s6 + $0x50] sm:$0xff] }
  0x8a   : > { %1200 = vmatpush.msra.mxu0 %v950_v9  ;;  %v1435_v9 = vld [vmem:[%s2817_s6 + $0x48] sm:$0xff] }
  0xe6   : > { %v1018_v39 = vpop.f32.mrf.mxu0 }
  0xe7   : > { %1053 = vmatmul.f32.vlgmr.msra.gmra.mxu1 %v1018_v39 }
  0xef   : > { %2028 = vmatmul.msk.f32.vlgmr.msrb.gmra.mxu1 %vm997_vm0, %v1208_v40  ;;  %v1318_v40 = vld [vmem:[%s2355_s24 + $0x18] sm:$0xff] }
 0x164   : > { %v1054_v11 = vpop.f32.mrf.mxu1 }
 0x165   : > { %v1058_v13 = vmul.f32 %v1057_v10, %v1054_v11  ;;  %v1434_v10 = vld [vmem:[%s2817_s6 + $0x40] sm:$0xff]  ;;  %v1433_v11 = vld [vmem:[%s2817_s6 + $0x38] sm:$0xff] }
 0x167   : > { %v1060_v14 = vadd.f32 %v1059_v12, %v1058_v13  ;;  %v1432_v12 = vld [vmem:[%s2817_s6 + $0x30] sm:$0xff]  ;;  %v1431_v13 = vld [vmem:[%s2817_s6 + $0x28] sm:$0xff] }
 0x169   : > { %v1061_v15 = vmax.f32 %v1060_v14, 0.0  ;;  %v1430_v14 = vld [vmem:[%s2817_s6 + $0x20] sm:$0xff] }
 0x16b   : > { %v1062_v16 = vperm.slane %v1061_v15, 0  ;;  %v1429_v15 = vld [vmem:[%s2817_s6 + $0x18] sm:$0xff] }
 0x16c   : > { %v1229_v33 = vpop.f32.mrf.mxu1 }
 0x16d   : > { %2022 = vmatmul.msk.f32.vlgmr.msra.gmra.mxu2 %vm1067_vm1, %v1062_v16  ;;  %2024 = vmatmul.msk.f32.vlgmr.msra.gmra.mxu3 %vm1067_vm1, %v1062_v16 }
 0x16e   : > { %2026 = vmatmul.msk.f32.vlgmr.msrb.gmra.mxu0 %vm1067_vm1, %v1062_v16  ;;  %1248 = vmatpush.msra.mxu2 %v1247_v17  ;;  %v1427_v17 = vld [vmem:[%s2817_s6 + $0x8] sm:$0xff] }
 0x16f   : > { %1341 = vmatpush.msra.mxu3 %v1318_v40  ;;  %1364 = vmatpush.msrb.mxu0 %v1319_v41  ;;  %v1514_v40 = vld [vmem:[%s2831_s1 + $0x28] sm:$0xff] }
 0x170   : > { %1249 = vmatpush.msra.mxu2 %v1246_v18  ;;  %v1426_v18 = vld [vmem:[%s2817_s6] sm:$0xff] }
 0x171   : > { %1342 = vmatpush.msra.mxu3 %v1315_v59  ;;  %1365 = vmatpush.msrb.mxu0 %v1316_v60  ;;  %v1637_v59 = vld [vmem:[%s2835_s22 + $0x50] sm:$0xff]  ;;  %v1636_v60 = vld [vmem:[%s2835_s22 + $0x48] sm:$0xff] }
 0x172   : > { %1250 = vmatpush.msra.mxu2 %v1245_v19 }
 0x174   : > { %1251 = vmatpush.msra.mxu2 %v1244_v20 }
 0x175   : > { %2023 = vmatmul.msk.f32.gmra.mxu2 %vm1067_vm1, %v1062_v16  ;;  %2025 = vmatmul.msk.f32.gmra.mxu3 %vm1067_vm1, %v1062_v16 }
 0x176   : > { %2027 = vmatmul.msk.f32.gmra.mxu0 %vm1067_vm1, %v1062_v16  ;;  %1252 = vmatpush.msra.mxu2 %v1243_v21  ;;  %v1428_v16 = vld [vmem:[%s2817_s6 + $0x10] sm:$0xff] }
 0x178   : > { %1253 = vmatpush.msra.mxu2 %v1242_v22 }
 0x17a   : > { %1254 = vmatpush.msra.mxu2 %v1241_v23 }
 0x17c   : > { %1255 = vmatpush.msra.mxu2 %v1240_v24 }
 0x17d   : > { %1155 = vmatmul.f32.vlgmr.msrb.gmra.mxu2 %v2526_v1  ;;  %1178 = vmatmul.f32.vlgmr.msrb.gmra.mxu3 %v2526_v1 }
 0x17e   : > { %1201 = vmatmul.f32.vlgmr.msra.gmra.mxu0 %v2526_v1  ;;  %1256 = vmatpush.msra.mxu2 %v1239_v25 }
 0x17f   : > { %1420 = vmatpush.msrb.mxu3 %v2524_v0  ;;  %1442 = vmatpush.msra.mxu0 %v1441_v62  ;;  %v1634_v62 = vld [vmem:[%s2835_s22 + $0x38] sm:$0xff] }
 0x180   : > { %1257 = vmatpush.msra.mxu2 %v1238_v26 }
 0x181   : > { %1421 = vmatpush.msrb.mxu3 %v2526_v1  ;;  %1443 = vmatpush.msra.mxu0 %v1440_v63  ;;  %v1633_v63 = vld [vmem:[%s2835_s22 + $0x30] sm:$0xff] }
 0x182   : > { %1258 = vmatpush.msra.mxu2 %v1237_v27 }
 0x183   : > { %1444 = vmatpush.msra.mxu0 %v1439_v2  ;;  %v1632_v2 = vld [vmem:[%s2835_s22 + $0x28] sm:$0xff] }
 0x184   : > { %1259 = vmatpush.msra.mxu2 %v1236_v28 }
 0x185   : > { %1158 = vmatmul.f32.gmra.mxu2 %v2524_v0  ;;  %1181 = vmatmul.f32.gmra.mxu3 %v2524_v0 }
 0x186   : > { %1204 = vmatmul.f32.gmra.mxu0 %v2524_v0  ;;  %1260 = vmatpush.msra.mxu2 %v1235_v29 }
 0x187   : > { %1445 = vmatpush.msra.mxu0 %v1438_v3  ;;  %v1631_v3 = vld [vmem:[%s2835_s22 + $0x20] sm:$0xff] }
 0x188   : > { %1261 = vmatpush.msra.mxu2 %v1234_v30  ;;  %v1518_v30 = vld [vmem:[%s2831_s1 + $0x48] sm:$0xff] }
 0x189   : > { %1446 = vmatpush.msra.mxu0 %v1437_v7  ;;  %v1627_v7 = vld [vmem:[%s2835_s22] sm:$0xff] }
 0x18a   : > { %1262 = vmatpush.msra.mxu2 %v1233_v31  ;;  %v1519_v31 = vld [vmem:[%s2831_s1 + $0x50] sm:$0xff] }
 0x18b   : > { %1447 = vmatpush.msra.mxu0 %v1436_v8 }
 0x18c   : > { %1263 = vmatpush.msra.mxu2 %v1232_v32  ;;  %v1520_v32 = vld [vmem:[%s2831_s1 + $0x58] sm:$0xff] }
 0x18d   : > { %1264 = vmatmul.f32.vlgmr.msra.gmra.mxu2 %v1229_v33  ;;  %1448 = vmatpush.msra.mxu0 %v1435_v9  ;;  %v1515_v33 = vld [vmem:[%s2831_s1 + $0x30] sm:$0xff] }
 0x18f   : > { %1449 = vmatpush.msra.mxu0 %v1434_v10 }
 0x191   : > { %1450 = vmatpush.msra.mxu0 %v1433_v11 }
 0x193   : > { %1451 = vmatpush.msra.mxu0 %v1432_v12 }
 0x195   : > { %1452 = vmatpush.msra.mxu0 %v1431_v13 }
 0x197   : > { %1453 = vmatpush.msra.mxu0 %v1430_v14 }
 0x199   : > { %1454 = vmatpush.msra.mxu0 %v1429_v15 }
 0x19b   : > { %1455 = vmatpush.msra.mxu0 %v1428_v16  ;;  %v1726_v16 = vld [vmem:[%s2837_s7 + $0xa8] sm:$0xff]  ;;  %s938_s7 = sand.u32 1, %s2248_s10  }
 0x19c   : > { %s1894_s8 = scalar_lea.sflag [#allocation4], %s938_s7 }
 0x19d   : > { %1456 = vmatpush.msra.mxu0 %v1427_v17  ;;  %v1727_v17 = vld [vmem:[%s2838_s18 + $0xb0] sm:$0xff] }
 0x19f   : > { %1457 = vmatpush.msra.mxu0 %v1426_v18  ;;  %v1723_v18 = vld [vmem:[%s2838_s18 + $0x90] sm:$0xff] }
 0x1eb   : > { %v1133_v34 = vpop.f32.mrf.mxu0 }
 0x1f0   : > { %v1087_v35 = vpop.f32.mrf.mxu2  ;;  %v1110_v36 = vpop.f32.mrf.mxu3 }
 0x1f3   : > { %v2585_v37 = vpop.f32.mrf.mxu0 }
 0x1f8   : > { %v1090_v38 = vpop.f32.mrf.mxu2  ;;  %v2587_v39 = vpop.f32.mrf.mxu3 }
 0x1fb   : > { %v1202_v42 = vpop.f32.mrf.mxu0 }
 0x1fc   : > { %v2591_v43 = vadd.f32 %v1202_v42, %v1133_v34  ;;  %v1516_v34 = vld [vmem:[%s2831_s1 + $0x38] sm:$0xff]  ;;  %v2154_v42 = vld [vmem:[%s2832_s2] ss:$0 sm:$0xff]  ;;  %s2840_s2 = sld [smem:[#allocation23_spill]] }
 0x200   : > { %v1156_v44 = vpop.f32.mrf.mxu2  ;;  %v1179_v45 = vpop.f32.mrf.mxu3 }
 0x201   : > { %v2593_v46 = vadd.f32 %v1156_v44, %v1087_v35  ;;  %v2595_v47 = vadd.f32 %v1179_v45, %v1110_v36  ;;  %v1517_v35 = vld [vmem:[%s2831_s1 + $0x40] sm:$0xff]  ;;  %v1512_v36 = vld [vmem:[%s2831_s1 + $0x18] sm:$0xff] }
 0x203   : > { %v2633_v19 = vpop.f32.mrf.mxu0 }
 0x208   : > { %v1159_v48 = vpop.f32.mrf.mxu2  ;;  %v2635_v20 = vpop.f32.mrf.mxu3 }
 0x209   : > { %v2597_v49 = vadd.f32 %v1159_v48, %v1090_v38  ;;  %v1513_v38 = vld [vmem:[%s2831_s1 + $0x20] sm:$0xff] }
 0x20a   : > { %v1473_v48 = vld [vmem:[%s2834_s23] sm:$0xff] }
 0x210   : > { %v1265_v52 = vpop.f32.mrf.mxu2 }
 0x211   : > { %v1272_v53 = vmul.f32 %v2152_v50, %v1265_v52  ;;  %v1509_v50 = vld [vmem:[%s2831_s1] sm:$0xff]  ;;  %v1511_v52 = vld [vmem:[%s2831_s1 + $0x10] sm:$0xff] }
 0x213   : > { %v1277_v54 = vadd.f32 %v2153_v51, %v1272_v53  ;;  %v1510_v51 = vld [vmem:[%s2831_s1 + $0x8] sm:$0xff]  ;;  %v1642_v53 = vld [vmem:[%s2835_s22 + $0x78] sm:$0xff] }
 0x215   : > { %v1278_v55 = vmax.f32 %v1277_v54, 0.0  ;;  %v1641_v54 = vld [vmem:[%s2835_s22 + $0x70] sm:$0xff] }
 0x217   : > { %2029 = vmatpush.msk.msra.mxu1 %vm1288_vm2, %v1278_v55  ;;  %2068 = vmatpush.msk.msrb.mxu2 %vm1288_vm2, %v1278_v55  ;;  %v1640_v55 = vld [vmem:[%s2835_s22 + $0x68] sm:$0xff] }
 0x218   : > { %2030 = vmatmul.msk.f32.vlgmr.msra.gmra.mxu1 %vm1281_vm3, %v1279_v56  ;;  %2031 = vmatmul.msk.f32.vlgmr.msrb.gmra.mxu2 %vm1281_vm3, %v1280_v57  ;;  %v1639_v56 = vld [vmem:[%s2835_s22 + $0x60] sm:$0xff] }
 0x219   : > { %1387 = vmatpush.msrb.mxu1 %v1320_v58  ;;  %1586 = vmatpush.msra.mxu2 %v1520_v32  ;;  %v1638_v58 = vld [vmem:[%s2835_s22 + $0x58] sm:$0xff] }
 0x21a   : > { %v1708_v32 = vld [vmem:[%s2838_s18 + $0x18] sm:$0xff] }
 0x21b   : > { %1388 = vmatpush.msrb.mxu1 %v1317_v61  ;;  %1587 = vmatpush.msra.mxu2 %v1517_v35  ;;  %v1635_v61 = vld [vmem:[%s2835_s22 + $0x40] sm:$0xff] }
 0x21c   : > { %v2157_v35 = vld [vmem:[%s2840_s2] ss:$0 sm:$0xff]  ;;  %s2018_s2 = sshll.u32 %s938_s7, 4 }
 0x21d   : > { %1563 = vmatpush.msra.mxu1 %v1519_v31  ;;  %1588 = vmatpush.msra.mxu2 %v1514_v40  ;;  %v1712_v31 = vld [vmem:[%s2838_s18 + $0x38] sm:$0xff]  ;;  %s940_s3 = scalar_lea.vmem [#allocation5], %s2018_s2  ;;  %s2210_s2 = scalar_lea.hbm %s2445_s4, 32 }
 0x21e   : > { %s1906_s5 = sshll.u32 %s940_s3, 4  ;;  %s1907_s5 = int_to_ptr.vmem [resolvable:$true] %s1906_s5 }
 0x21f   : > { %1564 = vmatpush.msra.mxu1 %v1516_v34  ;;  %1589 = vmatpush.msra.mxu2 %v1511_v52  ;;  %v2156_v34 = vld [vmem:[%s2839_s26] ss:$0 sm:$0xff] }
 0x220   : > { %v1705_v52 = vld [vmem:[%s2838_s18] sm:$0xff] }
 0x221   : > { %1565 = vmatpush.msra.mxu1 %v1513_v38  ;;  %1744 = vmatpush.msrb.mxu2 %v1726_v16 }
 0x223   : > { %1566 = vmatpush.msra.mxu1 %v1510_v51  ;;  %1745 = vmatpush.msrb.mxu2 %v1723_v18  ;;  %v1710_v51 = vld [vmem:[%s2838_s18 + $0x28] sm:$0xff]  ;;  %v2159_v18 = vld [vmem:[%s2440_s30] ss:$0 sm:$0xff] }
 0x295   : > { %v1309_v4 = vpop.f32.mrf.mxu1 }
 0x296   : > { %2032 = vmatmul.msk.f32.vlgmr.msra.gmra.mxu3 %vm997_vm0, %v1309_v4  ;;  %2034 = vmatmul.msk.f32.vlgmr.msrb.gmra.mxu0 %vm997_vm0, %v1309_v4 }
 0x297   : > { %2036 = vmatmul.msk.f32.vlgmr.msrb.gmra.mxu1 %vm997_vm0, %v1309_v4  ;;  %1540 = vmatpush.msra.mxu3 %v1518_v30  ;;  %v1630_v4 = vld [vmem:[%s2835_s22 + $0x18] sm:$0xff]  ;;  %v1711_v30 = vld [vmem:[%s2838_s18 + $0x30] sm:$0xff] }
 0x298   : > { %1643 = vmatpush.msrb.mxu1 %v1642_v53  ;;  %v1706_v53 = vld [vmem:[%s2838_s18 + $0x8] sm:$0xff] }
 0x299   : > { %1541 = vmatpush.msra.mxu3 %v1515_v33  ;;  %v1709_v33 = vld [vmem:[%s2838_s18 + $0x20] sm:$0xff] }
 0x29a   : > { %1644 = vmatpush.msrb.mxu1 %v1641_v54  ;;  %v1707_v54 = vld [vmem:[%s2838_s18 + $0x10] sm:$0xff] }
 0x29b   : > { %v1312_v5 = vpop.f32.mrf.mxu2  ;;  %1542 = vmatpush.msra.mxu3 %v1512_v36 }
 0x29c   : > { %1645 = vmatpush.msrb.mxu1 %v1640_v55 }
 0x29d   : > { %1543 = vmatpush.msra.mxu3 %v1509_v50  ;;  %v1713_v50 = vld [vmem:[%s2838_s18 + $0x40] sm:$0xff] }
 0x29e   : > { %2033 = vmatmul.msk.f32.gmra.mxu3 %vm997_vm0, %v1312_v5  ;;  %2035 = vmatmul.msk.f32.gmra.mxu0 %vm997_vm0, %v1312_v5 }
 0x29f   : > { %2037 = vmatmul.msk.f32.gmra.mxu1 %vm997_vm0, %v1312_v5  ;;  %v1629_v5 = vld [vmem:[%s2835_s22 + $0x10] sm:$0xff] }
 0x2a0   : > { %1646 = vmatpush.msrb.mxu1 %v1639_v56 }
 0x2a2   : > { %1647 = vmatpush.msrb.mxu1 %v1638_v58 }
 0x2a4   : > { %1648 = vmatpush.msrb.mxu1 %v1637_v59  ;;  %v1206_v59 = vadd.f32 %v2633_v19, %v2585_v37  ;;  %v1844_v37 = vld [vmem:[%s2815_s12] sm:$0xff] }
 0x2a6   : > { %2038 = vmatmul.msk.f32.vlgmr.msrb.gmra.mxu3 %vm997_vm0, %v1402_v6  ;;  %1649 = vmatpush.msrb.mxu1 %v1636_v60  ;;  %v1628_v6 = vld [vmem:[%s2835_s22 + $0x8] sm:$0xff] }
 0x2a7   : > { %1621 = vmatpush.msrb.mxu3 %v2524_v0 }
 0x2a8   : > { %1650 = vmatpush.msrb.mxu1 %v1635_v61 }
 0x2a9   : > { %1622 = vmatpush.msrb.mxu3 %v2526_v1  ;;  %v1603_v1 = vld [vmem:[%s2836_s11] sm:$0xff]  ;;  %s2842_s11 = sld [smem:[#allocation25_spill]] }
 0x2aa   : > { %1651 = vmatpush.msrb.mxu1 %v1634_v62 }
 0x2ac   : > { %1652 = vmatpush.msrb.mxu1 %v1633_v63 }
 0x2ae   : > { %1653 = vmatpush.msrb.mxu1 %v1632_v2 }
 0x2af   : > { %s2843_s26 = smov %s2842_s11 }
 0x2b0   : > { %1654 = vmatpush.msrb.mxu1 %v1631_v3  ;;  %v1812_v19 = vld [vmem:[%s2843_s26 + $0x8] sm:$0xff] }
 0x2b2   : > { %1655 = vmatpush.msrb.mxu1 %v1630_v4 }
 0x2b4   : > { %1656 = vmatpush.msrb.mxu1 %v1629_v5 }
 0x2b6   : > { %1657 = vmatpush.msrb.mxu1 %v1628_v6  ;;  %v1811_v6 = vld [vmem:[%s2842_s11] sm:$0xff]  ;;  %s2067_s11 = sshll.u32 %s2468_s0, 4 }
 0x2b7   : > { %s1905_s1 = scalar_lea.hbm %s2445_s4, %s2067_s11 }
 0x2b8   : > { %1658 = vmatpush.msrb.mxu1 %v1627_v7  ;;  %s1908_s6 = sshll.u32 %s1905_s1, 4  ;;  %s1909_s6 = int_to_ptr.hbm [resolvable:$true] %s1908_s6 }
 0x2b9   : > { %s2204_s0 = sshra.s32 %s1909_s6, 4  ;;  %s2205_s0 = int_to_ptr.hbm [resolvable:$true] %s2204_s0 }
 0x2ba   : > { %s2206_s9 = scalar_lea.hbm %s2205_s0, 16  ;;  %p2211_p13 = scmp.lt.s32.totalorder %s2205_s0, %s2445_s4 }
 0x2bb   : > { %p2207_p9 = scmp.ne.s32.totalorder %s2205_s0, %s2206_s9  ;;  %p2212_p0 = scmp.lt.s32.totalorder %s2210_s2, %s2206_s9 }
 0x2bd   : > { %p2208_p10 = pnand %p2207_p9, %p2485_p5  ;;  %p2213_p1 = por %p2212_p0, %p2211_p13 }
 0x2bf   : > { %p2209_p12 = pneg %p2208_p10 }
 0x2c1   : > { %p2214_p2 = pnand %p2213_p1, %p2209_p12 }
 0x313   : > { %v1367_v21 = vpop.f32.mrf.mxu0 }
 0x314   : > { %v2638_v22 = vadd.f32 %v1367_v21, %v2595_v47  ;;  %v1390_v23 = vpop.f32.mrf.mxu1  ;;  %v1724_v21 = vld [vmem:[%s2838_s18 + $0x98] sm:$0xff] }
 0x315   : > { %v2641_v24 = vadd.f32 %v1390_v23, %v2591_v43  ;;  %v2155_v43 = vld [vmem:[%s2833_s16] ss:$0 sm:$0xff]  ;;  %s2841_s16 = sld [smem:[#allocation21_spill]] }
 0x316   : > { %v1721_v23 = vld [vmem:[%s2838_s18 + $0x80] sm:$0xff] }
 0x319   : > { %v1344_v25 = vpop.f32.mrf.mxu3 }
 0x31a   : > { %v2644_v26 = vadd.f32 %v1344_v25, %v2593_v46  ;;  %v1717_v25 = vld [vmem:[%s2838_s18 + $0x60] sm:$0xff] }
 0x31b   : > { %v2658_v41 = vpop.f32.mrf.mxu0 }
 0x31c   : > { %v2687_v8 = vpop.f32.mrf.mxu1 }
 0x31d   : > { %v1401_v60 = vadd.f32 %v2687_v8, %v1206_v59  ;;  %v1845_v8 = vld [vmem:[%s2815_s12 + $0x8] sm:$0xff] }
 0x321   : > { %v1347_v27 = vpop.f32.mrf.mxu3 }
 0x322   : > { %v2647_v28 = vadd.f32 %v1347_v27, %v2597_v49  ;;  %v1474_v49 = vld [vmem:[%s2834_s23 + $0x8] sm:$0xff] }
 0x323   : > { %v1714_v27 = vld [vmem:[%s2838_s18 + $0x48] sm:$0xff] }
 0x329   : > { %v1423_v29 = vpop.f32.mrf.mxu3 }
 0x32a   : > { %1458 = vmatmul.f32.vlgmr.msra.gmra.mxu0 %v1423_v29 }
 0x3a7   : > { %v1459_v44 = vpop.f32.mrf.mxu0 }
 0x3a8   : > { %v1466_v45 = vmul.f32 %v2154_v42, %v1459_v44  ;;  %v1728_v44 = vld [vmem:[%s2838_s18 + $0xb8] sm:$0xff] }
 0x3aa   : > { %v1471_v46 = vadd.f32 %v2155_v43, %v1466_v45  ;;  %v1674_v43 = vld [vmem:[%s2841_s16] sm:$0xff] }
 0x3ab   : > { %v1725_v45 = vld [vmem:[%s2838_s18 + $0xa0] sm:$0xff] }
 0x3ac   : > { %v1472_v47 = vmax.f32 %v1471_v46, 0.0  ;;  %v1722_v46 = vld [vmem:[%s2838_s18 + $0x88] sm:$0xff] }
 0x3ae   : > { %2039 = vmatpush.msk.msrb.mxu0 %vm1482_vm4, %v1472_v47  ;;  %v1719_v47 = vld [vmem:[%s2838_s18 + $0x70] sm:$0xff] }
 0x3af   : > { %2040 = vmatmul.msk.f32.vlgmr.msrb.gmra.mxu0 %vm1475_vm5, %v1473_v48  ;;  %v1675_v48 = vld [vmem:[%s2841_s16 + $0x8] sm:$0xff] }
 0x3b0   : > { %1767 = vmatpush.msra.mxu0 %v1727_v17 }
 0x3b2   : > { %1768 = vmatpush.msra.mxu0 %v1724_v21 }
 0x3b4   : > { %1769 = vmatpush.msra.mxu0 %v1721_v23 }
 0x3b7   : > { %2041 = vmatmul.msk.f32.gmra.mxu0 %vm1475_vm5, %v1474_v49  ;;  %v1716_v49 = vld [vmem:[%s2838_s18 + $0x58] sm:$0xff] }
 0x42c   : > { %v1503_v57 = vpop.f32.mrf.mxu0 }
 0x42d   : > { %2042 = vmatmul.msk.f32.vlgmr.msra.gmra.mxu3 %vm1521_vm6, %v1503_v57  ;;  %2044 = vmatmul.msk.f32.vlgmr.msra.gmra.mxu1 %vm1521_vm6, %v1503_v57 }
 0x42e   : > { %2046 = vmatmul.msk.f32.vlgmr.msra.gmra.mxu2 %vm1521_vm6, %v1503_v57 }
 0x434   : > { %v1506_v0 = vpop.f32.mrf.mxu0 }
 0x435   : > { %2043 = vmatmul.msk.f32.gmra.mxu3 %vm1521_vm6, %v1506_v0  ;;  %2045 = vmatmul.msk.f32.gmra.mxu1 %vm1521_vm6, %v1506_v0 }
 0x436   : > { %2047 = vmatmul.msk.f32.gmra.mxu2 %vm1521_vm6, %v1506_v0 }
 0x43d   : > { %2048 = vmatmul.msk.f32.vlgmr.msrb.gmra.mxu3 %vm997_vm0, %v1603_v1 }
 0x4aa   : > { %v1568_v9 = vpop.f32.mrf.mxu1 }
 0x4ab   : > { %v2690_v10 = vadd.f32 %v1568_v9, %v2638_v22  ;;  %v1720_v22 = vld [vmem:[%s2838_s18 + $0x78] sm:$0xff] }
 0x4ac   : > { %1746 = vmatpush.msrb.mxu2 %v1720_v22 }
 0x4ae   : > { %1747 = vmatpush.msrb.mxu2 %v1717_v25 }
 0x4b0   : > { %v1545_v11 = vpop.f32.mrf.mxu3  ;;  %1748 = vmatpush.msrb.mxu2 %v1714_v27 }
 0x4b1   : > { %v2693_v12 = vadd.f32 %v1545_v11, %v2644_v26  ;;  %v1718_v26 = vld [vmem:[%s2838_s18 + $0x68] sm:$0xff]  ;;  %v1591_v57 = vpop.f32.mrf.mxu2 }
 0x4b2   : > { %1770 = vmatpush.msra.mxu0 %v1718_v26  ;;  %v2708_v29 = vpop.f32.mrf.mxu1  ;;  %1749 = vmatpush.msrb.mxu2 %v1711_v30  ;;  %v1599_v3 = vadd.f32 %v1591_v57, %v2641_v24 }
 0x4b4   : > { %1750 = vmatpush.msrb.mxu2 %v1708_v32 }
 0x4b6   : > { %1751 = vmatpush.msrb.mxu2 %v1705_v52 }
 0x4b8   : > { %v1548_v13 = vpop.f32.mrf.mxu3 }
 0x4b9   : > { %v2696_v14 = vadd.f32 %v1548_v13, %v2647_v28  ;;  %v1715_v28 = vld [vmem:[%s2838_s18 + $0x50] sm:$0xff]  ;;  %v1594_v0 = vpop.f32.mrf.mxu2 }
 0x4ba   : > { %1771 = vmatpush.msra.mxu0 %v1715_v28  ;;  %v1602_v61 = vadd.f32 %v1594_v0, %v1401_v60 }
 0x4bc   : > { %1772 = vmatpush.msra.mxu0 %v1712_v31 }
 0x4be   : > { %1773 = vmatpush.msra.mxu0 %v1709_v33 }
 0x4c0   : > { %v1624_v15 = vpop.f32.mrf.mxu3  ;;  %1774 = vmatpush.msra.mxu0 %v1706_v53 }
 0x4c1   : > { %1659 = vmatmul.f32.vlgmr.msrb.gmra.mxu1 %v1624_v15 }
 0x53e   : > { %v1660_v36 = vpop.f32.mrf.mxu1 }
 0x53f   : > { %v1667_v38 = vmul.f32 %v2156_v34, %v1660_v36 }
 0x541   : > { %v1672_v40 = vadd.f32 %v2157_v35, %v1667_v38 }
 0x543   : > { %v1673_v42 = vmax.f32 %v1672_v40, 0.0 }
 0x545   : > { %1697 = vmatpush.msra.mxu3 %v1673_v42 }
 0x546   : > { %2049 = vmatmul.msk.f32.vlgmr.msra.gmra.mxu3 %vm1067_vm1, %v1674_v43 }
 0x547   : > { %1790 = vmatpush.msrb.mxu3 %v1728_v44 }
 0x549   : > { %1791 = vmatpush.msrb.mxu3 %v1725_v45 }
 0x54b   : > { %1792 = vmatpush.msrb.mxu3 %v1722_v46 }
 0x54d   : > { %1793 = vmatpush.msrb.mxu3 %v1719_v47 }
 0x54e   : > { %2050 = vmatmul.msk.f32.gmra.mxu3 %vm1067_vm1, %v1675_v48 }
 0x54f   : > { %1794 = vmatpush.msrb.mxu3 %v1716_v49 }
 0x551   : > { %1795 = vmatpush.msrb.mxu3 %v1713_v50 }
 0x553   : > { %1796 = vmatpush.msrb.mxu3 %v1710_v51 }
 0x555   : > { %1797 = vmatpush.msrb.mxu3 %v1707_v54 }
 0x5c9   : > { %v1699_v55 = vpop.f32.mrf.mxu3 }
 0x5ca   : > { %2051 = vmatmul.msk.f32.vlgmr.msrb.gmra.mxu2 %vm1729_vm7, %v1699_v55  ;;  %2053 = vmatmul.msk.f32.vlgmr.msra.gmra.mxu0 %vm1729_vm7, %v1699_v55 }
 0x5cb   : > { %2055 = vmatmul.msk.f32.vlgmr.msrb.gmra.mxu3 %vm1729_vm7, %v1699_v55 }
 0x5d1   : > { %v1702_v56 = vpop.f32.mrf.mxu3 }
 0x5d2   : > { %2052 = vmatmul.msk.f32.gmra.mxu2 %vm1729_vm7, %v1702_v56  ;;  %2054 = vmatmul.msk.f32.gmra.mxu0 %vm1729_vm7, %v1702_v56 }
 0x5d3   : > { %2056 = vmatmul.msk.f32.gmra.mxu3 %vm1729_vm7, %v1702_v56 }
 0x647   : > { %v1776_v24 = vpop.f32.mrf.mxu0 }
 0x648   : > { %v1806_v11 = vadd.f32 %v1776_v24, %v2690_v10 }
 0x64d   : > { %v1753_v1 = vpop.f32.mrf.mxu2 }
 0x64e   : > { %v1799_v58 = vpop.f32.mrf.mxu3  ;;  %v1805_v5 = vadd.f32 %v1753_v1, %v2693_v12  ;;  %v1183_v12 = vadd.f32 %v2635_v20, %v2587_v39 }
 0x64f   : > { %v1807_v7 = vadd.f32 %v1799_v58, %v1599_v3  ;;  %v1779_v21 = vpop.f32.mrf.mxu0 }
 0x650   : > { %v1400_v16 = vadd.f32 %v2658_v41, %v1183_v12 }
 0x652   : > { %v1601_v22 = vadd.f32 %v2708_v29, %v1400_v16 }
 0x654   : > { %v1809_v10 = vadd.f32 %v1779_v21, %v1601_v22 }
 0x655   : > { %v1756_v62 = vpop.f32.mrf.mxu2 }
 0x656   : > { %v1808_v63 = vadd.f32 %v1756_v62, %v2696_v14  ;;  %v1802_v2 = vpop.f32.mrf.mxu3  ;;  %v2158_v14 = vld [vmem:[%s2435_s20] ss:$0 sm:$0xff] }
 0x657   : > { %v1810_v4 = vadd.f32 %v1802_v2, %v1602_v61 }
 0x658   : > { %1833 = vmatpush.msra.mxu1 %v1808_v63 }
 0x659   : > { %1866 = vmatpush.msra.mxu2 %v1810_v4 }
 0x65a   : > { %1834 = vmatpush.msra.mxu1 %v1805_v5 }
 0x65b   : > { %1867 = vmatpush.msra.mxu2 %v1807_v7  ;;  %2057 = vmatmul.msk.f32.vlgmr.msra.gmra.mxu1 %vm997_vm0, %v1811_v6 }
 0x65c   : > { %2059 = vmatmul.msk.f32.vlgmr.msra.gmra.mxu2 %vm997_vm0, %v1844_v37 }
 0x663   : > { %2058 = vmatmul.msk.f32.gmra.mxu1 %vm997_vm0, %v1812_v19 }
 0x664   : > { %2060 = vmatmul.msk.f32.gmra.mxu2 %vm997_vm0, %v1845_v8 }
 0x6d8   : > { %v1836_v9 = vpop.f32.mrf.mxu1 }
 0x6d9   : > { %v1842_v13 = vadd.f32 %v1836_v9, %v1806_v11 }
 0x6df   : > { %v1869_v15 = vpop.f32.mrf.mxu2 }
 0x6e0   : > { %v1875_v17 = vadd.f32 %v1869_v15, %v1842_v13  ;;  %v1839_v25 = vpop.f32.mrf.mxu1 }
 0x6e1   : > { %v1843_v39 = vadd.f32 %v1839_v25, %v1809_v10 }
 0x6e2   : > { %v1881_v23 = vmul.f32 %v2158_v14, %v1875_v17 }
 0x6e4   : > { %v1887_v26 = vadd.f32 %v2159_v18, %v1881_v23 }
 0x6e6   : > { %v1889_v27 = vmax.f32 %v1887_v26, 0.0 }
 0x6e7   : > { %v1872_v20 = vpop.f32.mrf.mxu2 }
 0x6e8   : > { %1891 = vst [vmem:[%s940_s3] sm:$0xff] %v1889_v27  ;;  %v1876_v28 = vadd.f32 %v1872_v20, %v1843_v39 }
 0x6ea   : > { %v1882_v41 = vmul.f32 %v2158_v14, %v1876_v28 }
 0x6ec   : > { %v1888_v29 = vadd.f32 %v2159_v18, %v1882_v41 }
 0x6ee   : > { %v1890_v30 = vmax.f32 %v1888_v29, 0.0 }
 0x6f0   : > { %1892 = vst [vmem:[%s940_s3 + $0x8] sm:$0xff] %v1890_v30 }
 0x6f1   : > { %2217 = shalt.err (!%p2214_p2)
}
 0x6f2   : > { %s2290_s1 = smov 128   ;;  %s2291_s11 = smov 8  }
 0x6f3   : > { %2073 = dma.vmem_to_hbm [thread:$0]  (%p2485_p5), %s1907_s5, 256, %s1909_s6, %s1894_s8, %s2290_s1, %s2290_s1, %s2291_s11  }
 0x6f4 PF: > { %s2844_s3 = sld [smem:[#allocation27_spill]]  ;;  %p2085_p3 = scmp.ge.s32.totalorder %s2256_s15, 2 }
 0x6f6   : > { %p2080_p4 = pnand %p2085_p3, %p2489_p6 }
 0x6f8   : > { %p2081_p7 = pneg %p2080_p4 }
 0x6fa   : > { %s1923_s12 = sand.u32 1, %s2844_s3  }
 0x6fb   : > { %s1924_s13 = scalar_lea.sflag [#allocation4], %s1923_s12 }
 0x6fc   : > { %2239 = dma.done.wait (%p2081_p7), %s1924_s13, 256  }
 0x6fd   : > { %2241 = vsyncadd (%p2081_p7), %s1924_s13, 4294967040  ;;  %s2846_s15 = sld [smem:[#allocation29_spill]]  ;;  %s2849_s7 = smov %s2248_s10 }
 0x6fe   : > { %s2847_s9 = sld [smem:[#allocation28_spill]] }
 0x6ff   : > { %s2848_s11 = sld [smem:[#allocation30_spill]] }
 0x703   : > { %p72_p8 = scmp.ge.s32.totalorder %s2846_s15, 4  }
 0x704   : > { %s2850_s10 = smov %s2847_s9 }
 0x705   :  { %74 = sbr.rel (!%p72_p8) target bundleno = 56 (0x38), region = 210 }
 0x70a   :  { %1930 = vsyncpa [#allocation3], 1 }
 0x70b   :  { %1932 = vsyncpa [#allocation3 + $0x1], 1 }
 0x70c   :  { %1933 = vsyncpa [#allocation4], 1 }
 0x70d   :  { %1935 = vsyncpa [#allocation4 + $0x1], 1 }

// kernel: tpu_custom_call.1
= control target key start
LH: loop header
LB: loop body
LE: loop exit
PB: predicated region body
PF: predicated region fallthrough
CT: control target
= control target key end

     0   :  { %s2258_s6 = smov 1   ;;  %s2259_s10 = smov 2   ;;  %s2777_s0 = inlined_call_operand.smem [shape: u32[31], index: -1, kind: input, shape index: {}] }
   0x1   :  { %s2300_s5 = sld [smem:[%s2777_s0]]   ;;  %s2260_s14 = smov 4  }
   0x2   :  { %s2305_s9 = sld [smem:[%s2777_s0 + %s2258_s6]]   ;;  %s2261_s18 = smov 5  }
   0x3   :  { %s2310_s13 = sld [smem:[%s2777_s0 + %s2259_s10]]   ;;  %s2262_s22 = smov 6  }
   0x4   :  { %s2315_s17 = sld [smem:[%s2777_s0 + %s2260_s14]]   ;;  %s2263_s26 = smov 7  }
   0x5   :  { %s2320_s21 = sld [smem:[%s2777_s0 + %s2261_s18]]   ;;  %s2264_s30 = smov 8  }
   0x6   :  { %s2325_s25 = sld [smem:[%s2777_s0 + %s2262_s22]]   ;;  %s2265_s4 = smov 9  }
   0x7   :  { %2795 = sst [smem:[#allocation8_spill]] %s2300_s5  ;;  %s2266_s10 = smov 10  }
   0x8   :  { %2796 = sst [smem:[#allocation9_spill]] %s2305_s9  ;;  %s2267_s15 = smov 11  }
   0x9   :  { %2797 = sst [smem:[#allocation10_spill]] %s2310_s13  ;;  %s2268_s20 = smov 12  }
   0xa   :  { %s2330_s29 = sld [smem:[%s2777_s0 + %s2263_s26]]   ;;  %s2269_s26 = smov 13  }
   0xb   :  { %s2335_s3 = sld [smem:[%s2777_s0 + %s2264_s30]]   ;;  %s2270_s1 = smov 14  }
   0xc   :  { %s2340_s8 = sld [smem:[%s2777_s0 + %s2265_s4]]   ;;  %s2271_s7 = smov 15  }
   0xd   :  { %s2345_s14 = sld [smem:[%s2777_s0 + %s2266_s10]]   ;;  %s2273_s22 = smov 17  }
   0xe   :  { %s2350_s19 = sld [smem:[%s2777_s0 + %s2267_s15]]   ;;  %s2272_s15 = smov 16  }
   0xf   :  { %s2355_s24 = sld [smem:[%s2777_s0 + %s2268_s20]]   ;;  %s2274_s28 = smov 18  }
  0x10   :  { %s2360_s30 = sld [smem:[%s2777_s0 + %s2269_s26]]  }
  0x11   :  { %2798 = sst [smem:[#allocation11_spill]] %s2335_s3 }
  0x12   :  { %2799 = sst [smem:[#allocation12_spill]] %s2340_s8 }
  0x13   :  { %s2365_s6 = sld [smem:[%s2777_s0 + %s2270_s1]]  }
  0x14   :  { %s2370_s12 = sld [smem:[%s2777_s0 + %s2271_s7]]   ;;  %s2275_s7 = smov 19  }
  0x15   :  { %s2375_s20 = sld [smem:[%s2777_s0 + %s2272_s15]]   ;;  %s2276_s15 = smov 20  }
  0x16   :  { %2800 = sst [smem:[#allocation13_spill]] %s2360_s30 }
  0x17   :  { %s2380_s27 = sld [smem:[%s2777_s0 + %s2273_s22]]   ;;  %s2277_s22 = smov 21  }
  0x18   :  { %s2385_s4 = sld [smem:[%s2777_s0 + %s2274_s28]]   ;;  %s2278_s28 = smov 22  }
  0x19   :  { %2801 = sst [smem:[#allocation14_spill]] %s2365_s6 }
  0x1a   :  { %2802 = sst [smem:[#allocation15_spill]] %s2370_s12 }
  0x1b   :  { %2803 = sst [smem:[#allocation16_spill]] %s2375_s20 }
  0x1c   :  { %s2390_s12 = sld [smem:[%s2777_s0 + %s2275_s7]]   ;;  %s2279_s7 = smov 23  }
  0x1d   :  { %2804 = sst [smem:[#allocation17_spill]] %s2380_s27 }
  0x1e   :  { %2805 = sst [smem:[#allocation18_spill]] %s2385_s4 }
  0x1f   :  { %s2395_s20 = sld [smem:[%s2777_s0 + %s2276_s15]]   ;;  %s2280_s15 = smov 24  }
  0x20   :  { %s2400_s27 = sld [smem:[%s2777_s0 + %s2277_s22]]   ;;  %s2281_s22 = smov 25  }
  0x21   :  { %s2405_s4 = sld [smem:[%s2777_s0 + %s2278_s28]]   ;;  %s2282_s28 = smov 26  }
  0x22   :  { %2806 = sst [smem:[#allocation19_spill]] %s2390_s12 }
  0x23   :  { %s2410_s12 = sld [smem:[%s2777_s0 + %s2279_s7]]   ;;  %s2283_s7 = smov 27  }
  0x25   :  { %2807 = sst [smem:[#allocation20_spill]] %s2395_s20 }
  0x26   :  { %2808 = sst [smem:[#allocation21_spill]] %s2400_s27 }
  0x27   :  { %2809 = sst [smem:[#allocation22_spill]] %s2405_s4 }
  0x28   :  { %s2415_s20 = sld [smem:[%s2777_s0 + %s2280_s15]]   ;;  %s2284_s15 = smov 28  }
  0x29   :  { %2810 = sst [smem:[#allocation23_spill]] %s2410_s12 }
  0x2a   :  { %s2420_s27 = sld [smem:[%s2777_s0 + %s2281_s22]]   ;;  %s2285_s22 = smov 29  }
  0x2b   :  { %s2425_s4 = sld [smem:[%s2777_s0 + %s2282_s28]]   ;;  %s2286_s28 = smov 30  }
  0x2c   :  { %s2430_s12 = sld [smem:[%s2777_s0 + %s2283_s7]]  }
  0x2d   :  { %s2440_s30 = sld [smem:[%s2777_s0 + %s2285_s22]]  }
  0x2e   :  { %2811 = sst [smem:[#allocation24_spill]] %s2415_s20 }
  0x2f   :  { %s2435_s20 = sld [smem:[%s2777_s0 + %s2284_s15]]  }
  0x31   :  { %2812 = sst [smem:[#allocation25_spill]] %s2425_s4 }
  0x32   :  { %2813 = sst [smem:[#allocation26_spill]] %s2430_s12 }
  0x33   :  { %s2445_s4 = sld [smem:[%s2777_s0 + %s2286_s28]]  }
  0x34   :  { %66 = vsyncpa [#allocation3], 0 }
  0x35   :  { %67 = vsyncpa [#allocation4], 0 }
  0x36   :  { %69 = vsyncpa [#allocation4 + $0x1], 0  ;;  %s2447_s7 = smov 0   ;;  %s2449_s10 = smov 0  }
  0x37   :  { %s2451_s11 = smov 0   ;;  %s2453_s15 = smov 0  }
  0x38 LB: > { %s2814_s13 = sld [smem:[#allocation10_spill]]  ;;  %s2468_s0 = sadd.s32 4294967295, %s2256_s15   ;;  %s2244_s7 = sphi %s2447_s7, %s2849_s7   ;;  %s2256_s15 = sphi %s2453_s15, %s2846_s15   ;;  %s2252_s11 = sphi %s2451_s11, %s2848_s11   ;;  %s2248_s10 = sphi %s2449_s10, %s2850_s10  }
  0x39   : > { %s2815_s12 = sld [smem:[#allocation26_spill]]  ;;  %s2012_s16 = sadd.s32 4294967294, %s2256_s15  }
  0x3a   : > { %s2816_s8 = sld [smem:[#allocation12_spill]]  ;;  %s2472_s18 = sadd.s32 1, %s2256_s15  }
  0x3b   : > { %s2817_s6 = sld [smem:[#allocation14_spill]]  ;;  %s717_s22 = sadd.s32 1, %s2252_s11 }
  0x3c   : > { %s2818_s3 = sld [smem:[#allocation11_spill]]  ;;  %s714_s23 = ssub.s32 %s2256_s15, %s2472_s18 }
  0x3d   : > { %2819 = sst [smem:[#allocation27_spill]] %s2244_s7  ;;  %p727_p0 = scmp.ne.s32.totalorder %s2252_s11, %s2248_s10 }
  0x3e   : > { %2820 = sst [smem:[#allocation28_spill]] %s2252_s11  ;;  %p715_p1 = scmp.eq.s32.totalorder %s714_s23, 0 }
  0x3f   : > { %2821 = sst [smem:[#allocation29_spill]] %s2472_s18  ;;  %p728_p2 = scmp.eq.s32.totalorder %s2468_s0, 1 }
  0x40   : > { %p733_p3 = scmp.ne.s32.totalorder %s2248_s10, %s2244_s7  ;;  %p734_p4 = scmp.eq.s32.totalorder %s2012_s16, 1 }
  0x41   : > { %s2483_s26 = scalar_select %p715_p1, %s2252_s11, %s717_s22  }
  0x42   : > { %p2485_p5 = por %p728_p2, %p727_p0  ;;  %p2489_p6 = por %p734_p4, %p733_p3 }
  0x43   : > { %2822 = sst [smem:[#allocation30_spill]] %s2483_s26  ;;  %p2013_p7 = scmp.ge.s32.totalorder %s2256_s15, 1 }
  0x44   : > { %s2824_s1 = scalar_select %p2489_p6, 1, 0 }
  0x45   : > { %p741_p8 = scmp.lt.s32.totalorder %s2256_s15, 3  ;;  %p2083_p9 = scmp.eq.s32.totalorder %s2468_s0, 0 }
  0x46   : > { %2825 = sst [smem:[#allocation31_spill]] %s2824_s1  ;;  %s824_s16 = sshll.u32 %s2420_s27, 4  ;;  %s825_s16 = int_to_ptr.hbm [resolvable:$true] %s824_s16 }
  0x47   : > { %p2496_p10 = pnand %p2013_p7, %p741_p8  ;;  %s2287_s22 = smov [#allocation2]  }
  0x48   : > { %s826_s23 = sshll.u32 %s2287_s22, 4  ;;  %s2160_s11 = sshra.s32 %s825_s16, 4  ;;  %s827_s23 = int_to_ptr.vmem [resolvable:$true] %s826_s23  ;;  %s2161_s11 = int_to_ptr.hbm [resolvable:$true] %s2160_s11 }
  0x49   : > { %p2075_p11 = pneg %p2496_p10  ;;  %s2162_s18 = scalar_lea.hbm %s2161_s11, 384 }
  0x4a   : > { %p2163_p13 = scmp.ne.s32.totalorder %s2161_s11, %s2162_s18  ;;  %s2167_s1 = scalar_lea.hbm %s2420_s27, 384 }
  0x4b   : > { %p2505_p12 = pnand %p2083_p9, %p2075_p11  ;;  %p2168_p3 = scmp.lt.s32.totalorder %s2161_s11, %s2420_s27 }
  0x4c   : > { %p2169_p4 = scmp.lt.s32.totalorder %s2167_s1, %s2162_s18 }
  0x4d   : > { %p2164_p0 = pneg %p2505_p12 }
  0x4e   : > { %p2170_p7 = por %p2169_p4, %p2168_p3 }
  0x4f   : > { %p2165_p1 = pnand %p2164_p0, %p2163_p13 }
  0x51   : > { %p2166_p2 = pneg %p2165_p1 }
  0x53   : > { %p2171_p8 = pnand %p2170_p7, %p2166_p2 }
  0x55   : > { %2174 = shalt.err (!%p2171_p8)
}
  0x56   : > { %s2288_s22 = smov 384   ;;  %s2289_s7 = smov 24  }
  0x57   : > { %2078 = dma.hbm_to_vmem [thread:$0]  (!%p2505_p12), %s825_s16, 6144, %s827_s23, [#allocation3], %s2288_s22, %s2288_s22, %s2289_s7  }
  0x58   : > { %862 = sbr.rel (%p2496_p10) target bundleno = 1780 (0x6f4), region = 140 }
  0x5d   : > { %2235 = dma.done.wait (%p2083_p9), [#allocation3], 6144  }
  0x5e   : > { %2237 = vsyncadd (%p2083_p9), [#allocation3], 4294961152  ;;  %s2828_s5 = sld [smem:[#allocation8_spill]]  ;;  %p941_p11 = scmp.lt.s32.totalorder %s2468_s0, 1  ;;  %vm997_vm0 = vcmask 130048   ;;  %v1036_v3 = vld [vmem:[%s2814_s13 + $0x78] sm:$0xff] }
  0x5f   : > { %s2829_s9 = sld [smem:[#allocation9_spill]]  ;;  %v1035_v4 = vld [vmem:[%s2814_s13 + $0x70] sm:$0xff]  ;;  %1037 = vmatpush.msra.mxu1 %v1036_v3  ;;  %v1034_v5 = vld [vmem:[%s2814_s13 + $0x68] sm:$0xff]  ;;  %v1033_v6 = vld [vmem:[%s2814_s13 + $0x60] sm:$0xff]  ;;  %vm1067_vm1 = vcmask 64512   ;;  %vm1288_vm2 = vcmask 1041408  }
  0x60   : > { %s942_s11 = scalar_select %p941_p11, %s2468_s0, 1  ;;  %v1032_v7 = vld [vmem:[%s2814_s13 + $0x58] sm:$0xff]  ;;  %v1031_v8 = vld [vmem:[%s2814_s13 + $0x50] sm:$0xff]  ;;  %v1030_v9 = vld [vmem:[%s2814_s13 + $0x48] sm:$0xff]  ;;  %vm1281_vm3 = vcmask 15360   ;;  %vm1482_vm4 = vcmask 1043456  }
  0x61   : > { %1038 = vmatpush.msra.mxu1 %v1035_v4  ;;  %v1029_v10 = vld [vmem:[%s2814_s13 + $0x40] sm:$0xff]  ;;  %v1028_v11 = vld [vmem:[%s2814_s13 + $0x38] sm:$0xff]  ;;  %v1027_v12 = vld [vmem:[%s2814_s13 + $0x30] sm:$0xff]  ;;  %s2830_s26 = sld [smem:[#allocation13_spill]]  ;;  %vm1475_vm5 = vcmask 31744   ;;  %vm1521_vm6 = vcmask 261120  }
  0x62   : > { %s2066_s7 = sshll.u32 %s942_s11, 4  ;;  %v1026_v13 = vld [vmem:[%s2814_s13 + $0x28] sm:$0xff]  ;;  %v1025_v14 = vld [vmem:[%s2814_s13 + $0x20] sm:$0xff]  ;;  %v1024_v15 = vld [vmem:[%s2814_s13 + $0x18] sm:$0xff]  ;;  %s2831_s1 = sld [smem:[#allocation18_spill]]  ;;  %vm1729_vm7 = vcmask 523264  }
  0x63   : > { %1039 = vmatpush.msra.mxu1 %v1034_v5  ;;  %v1023_v16 = vld [vmem:[%s2814_s13 + $0x10] sm:$0xff]  ;;  %v1022_v17 = vld [vmem:[%s2814_s13 + $0x8] sm:$0xff]  ;;  %v1021_v18 = vld [vmem:[%s2814_s13] sm:$0xff]  ;;  %s2832_s2 = sld [smem:[#allocation16_spill]] }
  0x64   : > { %s945_s18 = scalar_lea.vmem %s2828_s5, %s2066_s7  ;;  %v1063_v19 = vld [vmem:[%s2325_s25] sm:$0xff]  ;;  %v993_v20 = vld [vmem:[#allocation2 + $0x168] sm:$0xff]  ;;  %v990_v21 = vld [vmem:[#allocation2 + $0x150] sm:$0xff]  ;;  %s2833_s16 = sld [smem:[#allocation17_spill]] }
  0x65   : > { %v2524_v0 = vld [vmem:[%s945_s18 + $0x8] sm:$0xff]  ;;  %v2526_v1 = vld [vmem:[%s945_s18] sm:$0xff]  ;;  %1040 = vmatpush.msra.mxu1 %v1033_v6  ;;  %1085 = vmatpush.msra.mxu2 %v1063_v19  ;;  %v987_v23 = vld [vmem:[#allocation2 + $0x138] sm:$0xff]  ;;  %s2834_s23 = sld [smem:[#allocation15_spill]] }
  0x66   : > { %1015 = vmatpush.msra.mxu0 %v2524_v0  ;;  %v996_v2 = vld [vmem:[%s2829_s9] sm:$0x1]  ;;  %v1064_v22 = vld [vmem:[%s2325_s25 + $0x8] sm:$0xff]  ;;  %v1065_v24 = vld [vmem:[%s2325_s25 + $0x10] sm:$0xff]  ;;  %s2835_s22 = sld [smem:[#allocation20_spill]] }
  0x67   : > { %1041 = vmatpush.msra.mxu1 %v1032_v7  ;;  %1139 = vmatpush.msrb.mxu2 %v993_v20  ;;  %v994_v25 = vld [vmem:[#allocation2 + $0x170] sm:$0xff]  ;;  %v995_v26 = vld [vmem:[#allocation2 + $0x178] sm:$0xff]  ;;  %v984_v28 = vld [vmem:[#allocation2 + $0x120] sm:$0xff]  ;;  %s2836_s11 = sld [smem:[#allocation19_spill]] }
  0x68   : > { %1016 = vmatpush.msra.mxu0 %v2526_v1  ;;  %1108 = vmatpush.msra.mxu3 %v1064_v22  ;;  %v991_v27 = vld [vmem:[#allocation2 + $0x158] sm:$0xff]  ;;  %v992_v29 = vld [vmem:[#allocation2 + $0x160] sm:$0xff]  ;;  %v989_v31 = vld [vmem:[#allocation2 + $0x148] sm:$0xff]  ;;  %s2837_s7 = sld [smem:[#allocation24_spill]] }
  0x69   : > { %2021 = vmatmul.msk.f32.vlgmr.msra.gmra.mxu0 %vm997_vm0, %v996_v2  ;;  %1042 = vmatpush.msra.mxu1 %v1031_v8  ;;  %v988_v30 = vld [vmem:[#allocation2 + $0x140] sm:$0xff]  ;;  %v981_v32 = vld [vmem:[#allocation2 + $0x108] sm:$0xff]  ;;  %v978_v33 = vld [vmem:[#allocation2 + $0xf0] sm:$0xff] }
  0x6a   : > { %1140 = vmatpush.msrb.mxu2 %v990_v21  ;;  %1131 = vmatpush.msrb.mxu0 %v1065_v24  ;;  %v975_v34 = vld [vmem:[#allocation2 + $0xd8] sm:$0xff]  ;;  %v972_v35 = vld [vmem:[#allocation2 + $0xc0] sm:$0xff]  ;;  %v969_v36 = vld [vmem:[#allocation2 + $0xa8] sm:$0xff] }
  0x6b   : > { %1043 = vmatpush.msra.mxu1 %v1030_v9  ;;  %1162 = vmatpush.msrb.mxu3 %v994_v25  ;;  %v966_v37 = vld [vmem:[#allocation2 + $0x90] sm:$0xff]  ;;  %v963_v38 = vld [vmem:[#allocation2 + $0x78] sm:$0xff]  ;;  %v1208_v40 = vld [vmem:[%s2330_s29] sm:$0x3] }
  0x6c   : > { %1185 = vmatpush.msra.mxu0 %v995_v26  ;;  %1141 = vmatpush.msrb.mxu2 %v987_v23  ;;  %v985_v41 = vld [vmem:[#allocation2 + $0x128] sm:$0xff]  ;;  %v986_v42 = vld [vmem:[#allocation2 + $0x130] sm:$0xff]  ;;  %v960_v43 = vld [vmem:[#allocation2 + $0x60] sm:$0xff] }
  0x6d   : > { %1044 = vmatpush.msra.mxu1 %v1029_v10  ;;  %1163 = vmatpush.msrb.mxu3 %v991_v27  ;;  %v982_v44 = vld [vmem:[#allocation2 + $0x110] sm:$0xff]  ;;  %v983_v45 = vld [vmem:[#allocation2 + $0x118] sm:$0xff]  ;;  %v957_v46 = vld [vmem:[#allocation2 + $0x48] sm:$0xff] }
  0x6e   : > { %1186 = vmatpush.msra.mxu0 %v992_v29  ;;  %1142 = vmatpush.msrb.mxu2 %v984_v28  ;;  %v979_v47 = vld [vmem:[#allocation2 + $0xf8] sm:$0xff]  ;;  %v980_v48 = vld [vmem:[#allocation2 + $0x100] sm:$0xff]  ;;  %v954_v49 = vld [vmem:[#allocation2 + $0x30] sm:$0xff]  ;;  %s2838_s18 = smov %s2837_s7 }
  0x6f   : > { %1045 = vmatpush.msra.mxu1 %v1028_v11  ;;  %1164 = vmatpush.msrb.mxu3 %v988_v30  ;;  %v976_v50 = vld [vmem:[#allocation2 + $0xe0] sm:$0xff]  ;;  %v977_v51 = vld [vmem:[#allocation2 + $0xe8] sm:$0xff]  ;;  %v951_v52 = vld [vmem:[#allocation2 + $0x18] sm:$0xff] }
  0x70   : > { %1187 = vmatpush.msra.mxu0 %v989_v31  ;;  %1143 = vmatpush.msrb.mxu2 %v981_v32  ;;  %v973_v53 = vld [vmem:[#allocation2 + $0xc8] sm:$0xff]  ;;  %v974_v54 = vld [vmem:[#allocation2 + $0xd0] sm:$0xff]  ;;  %v948_v55 = vld [vmem:[#allocation2] sm:$0xff] }
  0x71   : > { %1046 = vmatpush.msra.mxu1 %v1027_v12  ;;  %1165 = vmatpush.msrb.mxu3 %v985_v41  ;;  %v970_v56 = vld [vmem:[#allocation2 + $0xb0] sm:$0xff]  ;;  %v971_v57 = vld [vmem:[#allocation2 + $0xb8] sm:$0xff]  ;;  %v968_v59 = vld [vmem:[#allocation2 + $0xa0] sm:$0xff] }
  0x72   : > { %1144 = vmatpush.msrb.mxu2 %v978_v33  ;;  %1188 = vmatpush.msra.mxu0 %v986_v42  ;;  %v967_v58 = vld [vmem:[#allocation2 + $0x98] sm:$0xff]  ;;  %v964_v60 = vld [vmem:[#allocation2 + $0x80] sm:$0xff]  ;;  %v965_v61 = vld [vmem:[#allocation2 + $0x88] sm:$0xff] }
  0x73   : > { %1047 = vmatpush.msra.mxu1 %v1026_v13  ;;  %1166 = vmatpush.msrb.mxu3 %v982_v44  ;;  %v961_v62 = vld [vmem:[#allocation2 + $0x68] sm:$0xff]  ;;  %v962_v63 = vld [vmem:[#allocation2 + $0x70] sm:$0xff]  ;;  %v959_v3 = vld [vmem:[#allocation2 + $0x58] sm:$0xff] }
  0x74   : > { %1145 = vmatpush.msrb.mxu2 %v975_v34  ;;  %1189 = vmatpush.msra.mxu0 %v983_v45  ;;  %v958_v2 = vld [vmem:[#allocation2 + $0x50] sm:$0xff]  ;;  %v955_v4 = vld [vmem:[#allocation2 + $0x38] sm:$0xff]  ;;  %v956_v5 = vld [vmem:[#allocation2 + $0x40] sm:$0xff] }
  0x75   : > { %1048 = vmatpush.msra.mxu1 %v1025_v14  ;;  %1167 = vmatpush.msrb.mxu3 %v979_v47  ;;  %v952_v6 = vld [vmem:[#allocation2 + $0x20] sm:$0xff]  ;;  %v953_v7 = vld [vmem:[#allocation2 + $0x28] sm:$0xff]  ;;  %v950_v9 = vld [vmem:[#allocation2 + $0x10] sm:$0xff] }
  0x76   : > { %1146 = vmatpush.msrb.mxu2 %v972_v35  ;;  %1190 = vmatpush.msra.mxu0 %v980_v48  ;;  %v949_v8 = vld [vmem:[#allocation2 + $0x8] sm:$0xff]  ;;  %v1057_v10 = vld [vmem:[%s2315_s17] sm:$0x1]  ;;  %v1243_v21 = vld [vmem:[%s2818_s3 + $0x58] sm:$0xff] }
  0x77   : > { %1049 = vmatpush.msra.mxu1 %v1024_v15  ;;  %1168 = vmatpush.msrb.mxu3 %v976_v50  ;;  %v1059_v12 = vld [vmem:[%s2320_s21] sm:$0x1]  ;;  %v1245_v19 = vld [vmem:[%s2818_s3 + $0x68] sm:$0xff]  ;;  %v1242_v22 = vld [vmem:[%s2818_s3 + $0x50] sm:$0xff] }
  0x78   : > { %1147 = vmatpush.msrb.mxu2 %v969_v36  ;;  %1191 = vmatpush.msra.mxu0 %v977_v51  ;;  %v1244_v20 = vld [vmem:[%s2818_s3 + $0x60] sm:$0xff]  ;;  %v1241_v23 = vld [vmem:[%s2818_s3 + $0x48] sm:$0xff]  ;;  %v1239_v25 = vld [vmem:[%s2818_s3 + $0x38] sm:$0xff] }
  0x79   : > { %1050 = vmatpush.msra.mxu1 %v1023_v16  ;;  %1169 = vmatpush.msrb.mxu3 %v973_v53  ;;  %v1240_v24 = vld [vmem:[%s2818_s3 + $0x40] sm:$0xff]  ;;  %v1238_v26 = vld [vmem:[%s2818_s3 + $0x30] sm:$0xff]  ;;  %v1237_v27 = vld [vmem:[%s2818_s3 + $0x28] sm:$0xff] }
  0x7a   : > { %1148 = vmatpush.msrb.mxu2 %v966_v37  ;;  %1192 = vmatpush.msra.mxu0 %v974_v54  ;;  %v1236_v28 = vld [vmem:[%s2818_s3 + $0x20] sm:$0xff]  ;;  %v1235_v29 = vld [vmem:[%s2818_s3 + $0x18] sm:$0xff]  ;;  %v1234_v30 = vld [vmem:[%s2818_s3 + $0x10] sm:$0xff] }
  0x7b   : > { %1051 = vmatpush.msra.mxu1 %v1022_v17  ;;  %1170 = vmatpush.msrb.mxu3 %v970_v56  ;;  %v1247_v17 = vld [vmem:[%s2818_s3 + $0x78] sm:$0xff]  ;;  %v1233_v31 = vld [vmem:[%s2818_s3 + $0x8] sm:$0xff]  ;;  %v1232_v32 = vld [vmem:[%s2818_s3] sm:$0xff] }
  0x7c   : > { %1149 = vmatpush.msrb.mxu2 %v963_v38  ;;  %1193 = vmatpush.msra.mxu0 %v971_v57  ;;  %v1319_v41 = vld [vmem:[%s2355_s24 + $0x20] sm:$0xff]  ;;  %v1280_v57 = vld [vmem:[%s2816_s8 + $0x8] sm:$0xff] }
  0x7d   : > { %1052 = vmatpush.msra.mxu1 %v1021_v18  ;;  %1171 = vmatpush.msrb.mxu3 %v967_v58  ;;  %v1246_v18 = vld [vmem:[%s2818_s3 + $0x70] sm:$0xff]  ;;  %v2152_v50 = vld [vmem:[%s2345_s14] ss:$0 sm:$0xff]  ;;  %v1320_v58 = vld [vmem:[%s2355_s24 + $0x28] sm:$0xff] }
  0x7e   : > { %1150 = vmatpush.msrb.mxu2 %v960_v43  ;;  %1194 = vmatpush.msra.mxu0 %v968_v59  ;;  %v2153_v51 = vld [vmem:[%s2350_s19] ss:$0 sm:$0xff] }
  0x7f   : > { %1226 = vmatpush.msrb.mxu1 %v2524_v0  ;;  %1172 = vmatpush.msrb.mxu3 %v964_v60  ;;  %v1279_v56 = vld [vmem:[%s2816_s8] sm:$0xff]  ;;  %v1316_v60 = vld [vmem:[%s2355_s24 + $0x8] sm:$0xff] }
  0x80   : > { %1151 = vmatpush.msrb.mxu2 %v957_v46  ;;  %1195 = vmatpush.msra.mxu0 %v965_v61  ;;  %v1315_v59 = vld [vmem:[%s2355_s24] sm:$0xff]  ;;  %v1317_v61 = vld [vmem:[%s2355_s24 + $0x10] sm:$0xff] }
  0x81   : > { %1227 = vmatpush.msrb.mxu1 %v2526_v1  ;;  %1173 = vmatpush.msrb.mxu3 %v961_v62  ;;  %v1441_v62 = vld [vmem:[%s2817_s6 + $0x78] sm:$0xff] }
  0x82   : > { %1152 = vmatpush.msrb.mxu2 %v954_v49  ;;  %1196 = vmatpush.msra.mxu0 %v962_v63  ;;  %v1440_v63 = vld [vmem:[%s2817_s6 + $0x70] sm:$0xff] }
  0x83   : > { %1174 = vmatpush.msrb.mxu3 %v958_v2  ;;  %v1439_v2 = vld [vmem:[%s2817_s6 + $0x68] sm:$0xff] }
  0x84   : > { %1153 = vmatpush.msrb.mxu2 %v951_v52  ;;  %1197 = vmatpush.msra.mxu0 %v959_v3  ;;  %v1438_v3 = vld [vmem:[%s2817_s6 + $0x60] sm:$0xff] }
  0x85   : > { %1175 = vmatpush.msrb.mxu3 %v955_v4 }
  0x86   : > { %1154 = vmatpush.msrb.mxu2 %v948_v55  ;;  %1198 = vmatpush.msra.mxu0 %v956_v5 }
  0x87   : > { %1176 = vmatpush.msrb.mxu3 %v952_v6  ;;  %v1402_v6 = vld [vmem:[%s2830_s26] sm:$0xf]  ;;  %s2839_s26 = sld [smem:[#allocation22_spill]] }
  0x88   : > { %1199 = vmatpush.msra.mxu0 %v953_v7  ;;  %v1437_v7 = vld [vmem:[%s2817_s6 + $0x58] sm:$0xff] }
  0x89   : > { %1177 = vmatpush.msrb.mxu3 %v949_v8  ;;  %v1436_v8 = vld [vmem:[%s2817_s6 + $0x50] sm:$0xff] }
  0x8a   : > { %1200 = vmatpush.msra.mxu0 %v950_v9  ;;  %v1435_v9 = vld [vmem:[%s2817_s6 + $0x48] sm:$0xff] }
  0xe6   : > { %v1018_v39 = vpop.f32.mrf.mxu0 }
  0xe7   : > { %1053 = vmatmul.f32.vlgmr.msra.gmra.mxu1 %v1018_v39 }
  0xef   : > { %2028 = vmatmul.msk.f32.vlgmr.msrb.gmra.mxu1 %vm997_vm0, %v1208_v40  ;;  %v1318_v40 = vld [vmem:[%s2355_s24 + $0x18] sm:$0xff] }
 0x164   : > { %v1054_v11 = vpop.f32.mrf.mxu1 }
 0x165   : > { %v1058_v13 = vmul.f32 %v1057_v10, %v1054_v11  ;;  %v1434_v10 = vld [vmem:[%s2817_s6 + $0x40] sm:$0xff]  ;;  %v1433_v11 = vld [vmem:[%s2817_s6 + $0x38] sm:$0xff] }
 0x167   : > { %v1060_v14 = vadd.f32 %v1059_v12, %v1058_v13  ;;  %v1432_v12 = vld [vmem:[%s2817_s6 + $0x30] sm:$0xff]  ;;  %v1431_v13 = vld [vmem:[%s2817_s6 + $0x28] sm:$0xff] }
 0x169   : > { %v1061_v15 = vmax.f32 %v1060_v14, 0.0  ;;  %v1430_v14 = vld [vmem:[%s2817_s6 + $0x20] sm:$0xff] }
 0x16b   : > { %v1062_v16 = vperm.slane %v1061_v15, 0  ;;  %v1429_v15 = vld [vmem:[%s2817_s6 + $0x18] sm:$0xff] }
 0x16c   : > { %v1229_v33 = vpop.f32.mrf.mxu1 }
 0x16d   : > { %2022 = vmatmul.msk.f32.vlgmr.msra.gmra.mxu2 %vm1067_vm1, %v1062_v16  ;;  %2024 = vmatmul.msk.f32.vlgmr.msra.gmra.mxu3 %vm1067_vm1, %v1062_v16 }
 0x16e   : > { %2026 = vmatmul.msk.f32.vlgmr.msrb.gmra.mxu0 %vm1067_vm1, %v1062_v16  ;;  %1248 = vmatpush.msra.mxu2 %v1247_v17  ;;  %v1427_v17 = vld [vmem:[%s2817_s6 + $0x8] sm:$0xff] }
 0x16f   : > { %1341 = vmatpush.msra.mxu3 %v1318_v40  ;;  %1364 = vmatpush.msrb.mxu0 %v1319_v41  ;;  %v1514_v40 = vld [vmem:[%s2831_s1 + $0x28] sm:$0xff] }
 0x170   : > { %1249 = vmatpush.msra.mxu2 %v1246_v18  ;;  %v1426_v18 = vld [vmem:[%s2817_s6] sm:$0xff] }
 0x171   : > { %1342 = vmatpush.msra.mxu3 %v1315_v59  ;;  %1365 = vmatpush.msrb.mxu0 %v1316_v60  ;;  %v1637_v59 = vld [vmem:[%s2835_s22 + $0x50] sm:$0xff]  ;;  %v1636_v60 = vld [vmem:[%s2835_s22 + $0x48] sm:$0xff] }
 0x172   : > { %1250 = vmatpush.msra.mxu2 %v1245_v19 }
 0x174   : > { %1251 = vmatpush.msra.mxu2 %v1244_v20 }
 0x175   : > { %2023 = vmatmul.msk.f32.gmra.mxu2 %vm1067_vm1, %v1062_v16  ;;  %2025 = vmatmul.msk.f32.gmra.mxu3 %vm1067_vm1, %v1062_v16 }
 0x176   : > { %2027 = vmatmul.msk.f32.gmra.mxu0 %vm1067_vm1, %v1062_v16  ;;  %1252 = vmatpush.msra.mxu2 %v1243_v21  ;;  %v1428_v16 = vld [vmem:[%s2817_s6 + $0x10] sm:$0xff] }
 0x178   : > { %1253 = vmatpush.msra.mxu2 %v1242_v22 }
 0x17a   : > { %1254 = vmatpush.msra.mxu2 %v1241_v23 }
 0x17c   : > { %1255 = vmatpush.msra.mxu2 %v1240_v24 }
 0x17d   : > { %1155 = vmatmul.f32.vlgmr.msrb.gmra.mxu2 %v2526_v1  ;;  %1178 = vmatmul.f32.vlgmr.msrb.gmra.mxu3 %v2526_v1 }
 0x17e   : > { %1201 = vmatmul.f32.vlgmr.msra.gmra.mxu0 %v2526_v1  ;;  %1256 = vmatpush.msra.mxu2 %v1239_v25 }
 0x17f   : > { %1420 = vmatpush.msrb.mxu3 %v2524_v0  ;;  %1442 = vmatpush.msra.mxu0 %v1441_v62  ;;  %v1634_v62 = vld [vmem:[%s2835_s22 + $0x38] sm:$0xff] }
 0x180   : > { %1257 = vmatpush.msra.mxu2 %v1238_v26 }
 0x181   : > { %1421 = vmatpush.msrb.mxu3 %v2526_v1  ;;  %1443 = vmatpush.msra.mxu0 %v1440_v63  ;;  %v1633_v63 = vld [vmem:[%s2835_s22 + $0x30] sm:$0xff] }
 0x182   : > { %1258 = vmatpush.msra.mxu2 %v1237_v27 }
 0x183   : > { %1444 = vmatpush.msra.mxu0 %v1439_v2  ;;  %v1632_v2 = vld [vmem:[%s2835_s22 + $0x28] sm:$0xff] }
 0x184   : > { %1259 = vmatpush.msra.mxu2 %v1236_v28 }
 0x185   : > { %1158 = vmatmul.f32.gmra.mxu2 %v2524_v0  ;;  %1181 = vmatmul.f32.gmra.mxu3 %v2524_v0 }
 0x186   : > { %1204 = vmatmul.f32.gmra.mxu0 %v2524_v0  ;;  %1260 = vmatpush.msra.mxu2 %v1235_v29 }
 0x187   : > { %1445 = vmatpush.msra.mxu0 %v1438_v3  ;;  %v1631_v3 = vld [vmem:[%s2835_s22 + $0x20] sm:$0xff] }
 0x188   : > { %1261 = vmatpush.msra.mxu2 %v1234_v30  ;;  %v1518_v30 = vld [vmem:[%s2831_s1 + $0x48] sm:$0xff] }
 0x189   : > { %1446 = vmatpush.msra.mxu0 %v1437_v7  ;;  %v1627_v7 = vld [vmem:[%s2835_s22] sm:$0xff] }
 0x18a   : > { %1262 = vmatpush.msra.mxu2 %v1233_v31  ;;  %v1519_v31 = vld [vmem:[%s2831_s1 + $0x50] sm:$0xff] }
 0x18b   : > { %1447 = vmatpush.msra.mxu0 %v1436_v8 }
 0x18c   : > { %1263 = vmatpush.msra.mxu2 %v1232_v32  ;;  %v1520_v32 = vld [vmem:[%s2831_s1 + $0x58] sm:$0xff] }
 0x18d   : > { %1264 = vmatmul.f32.vlgmr.msra.gmra.mxu2 %v1229_v33  ;;  %1448 = vmatpush.msra.mxu0 %v1435_v9  ;;  %v1515_v33 = vld [vmem:[%s2831_s1 + $0x30] sm:$0xff] }
 0x18f   : > { %1449 = vmatpush.msra.mxu0 %v1434_v10 }
 0x191   : > { %1450 = vmatpush.msra.mxu0 %v1433_v11 }
 0x193   : > { %1451 = vmatpush.msra.mxu0 %v1432_v12 }
 0x195   : > { %1452 = vmatpush.msra.mxu0 %v1431_v13 }
 0x197   : > { %1453 = vmatpush.msra.mxu0 %v1430_v14 }
 0x199   : > { %1454 = vmatpush.msra.mxu0 %v1429_v15 }
 0x19b   : > { %1455 = vmatpush.msra.mxu0 %v1428_v16  ;;  %v1726_v16 = vld [vmem:[%s2837_s7 + $0xa8] sm:$0xff]  ;;  %s938_s7 = sand.u32 1, %s2248_s10  }
 0x19c   : > { %s1894_s8 = scalar_lea.sflag [#allocation4], %s938_s7 }
 0x19d   : > { %1456 = vmatpush.msra.mxu0 %v1427_v17  ;;  %v1727_v17 = vld [vmem:[%s2838_s18 + $0xb0] sm:$0xff] }
 0x19f   : > { %1457 = vmatpush.msra.mxu0 %v1426_v18  ;;  %v1723_v18 = vld [vmem:[%s2838_s18 + $0x90] sm:$0xff] }
 0x1eb   : > { %v1133_v34 = vpop.f32.mrf.mxu0 }
 0x1f0   : > { %v1087_v35 = vpop.f32.mrf.mxu2  ;;  %v1110_v36 = vpop.f32.mrf.mxu3 }
 0x1f3   : > { %v2585_v37 = vpop.f32.mrf.mxu0 }
 0x1f8   : > { %v1090_v38 = vpop.f32.mrf.mxu2  ;;  %v2587_v39 = vpop.f32.mrf.mxu3 }
 0x1fb   : > { %v1202_v42 = vpop.f32.mrf.mxu0 }
 0x1fc   : > { %v2591_v43 = vadd.f32 %v1202_v42, %v1133_v34  ;;  %v1516_v34 = vld [vmem:[%s2831_s1 + $0x38] sm:$0xff]  ;;  %v2154_v42 = vld [vmem:[%s2832_s2] ss:$0 sm:$0xff]  ;;  %s2840_s2 = sld [smem:[#allocation23_spill]] }
 0x200   : > { %v1156_v44 = vpop.f32.mrf.mxu2  ;;  %v1179_v45 = vpop.f32.mrf.mxu3 }
 0x201   : > { %v2593_v46 = vadd.f32 %v1156_v44, %v1087_v35  ;;  %v2595_v47 = vadd.f32 %v1179_v45, %v1110_v36  ;;  %v1517_v35 = vld [vmem:[%s2831_s1 + $0x40] sm:$0xff]  ;;  %v1512_v36 = vld [vmem:[%s2831_s1 + $0x18] sm:$0xff] }
 0x203   : > { %v2633_v19 = vpop.f32.mrf.mxu0 }
 0x208   : > { %v1159_v48 = vpop.f32.mrf.mxu2  ;;  %v2635_v20 = vpop.f32.mrf.mxu3 }
 0x209   : > { %v2597_v49 = vadd.f32 %v1159_v48, %v1090_v38  ;;  %v1513_v38 = vld [vmem:[%s2831_s1 + $0x20] sm:$0xff] }
 0x20a   : > { %v1473_v48 = vld [vmem:[%s2834_s23] sm:$0xff] }
 0x210   : > { %v1265_v52 = vpop.f32.mrf.mxu2 }
 0x211   : > { %v1272_v53 = vmul.f32 %v2152_v50, %v1265_v52  ;;  %v1509_v50 = vld [vmem:[%s2831_s1] sm:$0xff]  ;;  %v1511_v52 = vld [vmem:[%s2831_s1 + $0x10] sm:$0xff] }
 0x213   : > { %v1277_v54 = vadd.f32 %v2153_v51, %v1272_v53  ;;  %v1510_v51 = vld [vmem:[%s2831_s1 + $0x8] sm:$0xff]  ;;  %v1642_v53 = vld [vmem:[%s2835_s22 + $0x78] sm:$0xff] }
 0x215   : > { %v1278_v55 = vmax.f32 %v1277_v54, 0.0  ;;  %v1641_v54 = vld [vmem:[%s2835_s22 + $0x70] sm:$0xff] }
 0x217   : > { %2029 = vmatpush.msk.msra.mxu1 %vm1288_vm2, %v1278_v55  ;;  %2068 = vmatpush.msk.msrb.mxu2 %vm1288_vm2, %v1278_v55  ;;  %v1640_v55 = vld [vmem:[%s2835_s22 + $0x68] sm:$0xff] }
 0x218   : > { %2030 = vmatmul.msk.f32.vlgmr.msra.gmra.mxu1 %vm1281_vm3, %v1279_v56  ;;  %2031 = vmatmul.msk.f32.vlgmr.msrb.gmra.mxu2 %vm1281_vm3, %v1280_v57  ;;  %v1639_v56 = vld [vmem:[%s2835_s22 + $0x60] sm:$0xff] }
 0x219   : > { %1387 = vmatpush.msrb.mxu1 %v1320_v58  ;;  %1586 = vmatpush.msra.mxu2 %v1520_v32  ;;  %v1638_v58 = vld [vmem:[%s2835_s22 + $0x58] sm:$0xff] }
 0x21a   : > { %v1708_v32 = vld [vmem:[%s2838_s18 + $0x18] sm:$0xff] }
 0x21b   : > { %1388 = vmatpush.msrb.mxu1 %v1317_v61  ;;  %1587 = vmatpush.msra.mxu2 %v1517_v35  ;;  %v1635_v61 = vld [vmem:[%s2835_s22 + $0x40] sm:$0xff] }
 0x21c   : > { %v2157_v35 = vld [vmem:[%s2840_s2] ss:$0 sm:$0xff]  ;;  %s2018_s2 = sshll.u32 %s938_s7, 4 }
 0x21d   : > { %1563 = vmatpush.msra.mxu1 %v1519_v31  ;;  %1588 = vmatpush.msra.mxu2 %v1514_v40  ;;  %v1712_v31 = vld [vmem:[%s2838_s18 + $0x38] sm:$0xff]  ;;  %s940_s3 = scalar_lea.vmem [#allocation5], %s2018_s2  ;;  %s2210_s2 = scalar_lea.hbm %s2445_s4, 32 }
 0x21e   : > { %s1906_s5 = sshll.u32 %s940_s3, 4  ;;  %s1907_s5 = int_to_ptr.vmem [resolvable:$true] %s1906_s5 }
 0x21f   : > { %1564 = vmatpush.msra.mxu1 %v1516_v34  ;;  %1589 = vmatpush.msra.mxu2 %v1511_v52  ;;  %v2156_v34 = vld [vmem:[%s2839_s26] ss:$0 sm:$0xff] }
 0x220   : > { %v1705_v52 = vld [vmem:[%s2838_s18] sm:$0xff] }
 0x221   : > { %1565 = vmatpush.msra.mxu1 %v1513_v38  ;;  %1744 = vmatpush.msrb.mxu2 %v1726_v16 }
 0x223   : > { %1566 = vmatpush.msra.mxu1 %v1510_v51  ;;  %1745 = vmatpush.msrb.mxu2 %v1723_v18  ;;  %v1710_v51 = vld [vmem:[%s2838_s18 + $0x28] sm:$0xff]  ;;  %v2159_v18 = vld [vmem:[%s2440_s30] ss:$0 sm:$0xff] }
 0x295   : > { %v1309_v4 = vpop.f32.mrf.mxu1 }
 0x296   : > { %2032 = vmatmul.msk.f32.vlgmr.msra.gmra.mxu3 %vm997_vm0, %v1309_v4  ;;  %2034 = vmatmul.msk.f32.vlgmr.msrb.gmra.mxu0 %vm997_vm0, %v1309_v4 }
 0x297   : > { %2036 = vmatmul.msk.f32.vlgmr.msrb.gmra.mxu1 %vm997_vm0, %v1309_v4  ;;  %1540 = vmatpush.msra.mxu3 %v1518_v30  ;;  %v1630_v4 = vld [vmem:[%s2835_s22 + $0x18] sm:$0xff]  ;;  %v1711_v30 = vld [vmem:[%s2838_s18 + $0x30] sm:$0xff] }
 0x298   : > { %1643 = vmatpush.msrb.mxu1 %v1642_v53  ;;  %v1706_v53 = vld [vmem:[%s2838_s18 + $0x8] sm:$0xff] }
 0x299   : > { %1541 = vmatpush.msra.mxu3 %v1515_v33  ;;  %v1709_v33 = vld [vmem:[%s2838_s18 + $0x20] sm:$0xff] }
 0x29a   : > { %1644 = vmatpush.msrb.mxu1 %v1641_v54  ;;  %v1707_v54 = vld [vmem:[%s2838_s18 + $0x10] sm:$0xff] }
 0x29b   : > { %v1312_v5 = vpop.f32.mrf.mxu2  ;;  %1542 = vmatpush.msra.mxu3 %v1512_v36 }
 0x29c   : > { %1645 = vmatpush.msrb.mxu1 %v1640_v55 }
 0x29d   : > { %1543 = vmatpush.msra.mxu3 %v1509_v50  ;;  %v1713_v50 = vld [vmem:[%s2838_s18 + $0x40] sm:$0xff] }
 0x29e   : > { %2033 = vmatmul.msk.f32.gmra.mxu3 %vm997_vm0, %v1312_v5  ;;  %2035 = vmatmul.msk.f32.gmra.mxu0 %vm997_vm0, %v1312_v5 }
 0x29f   : > { %2037 = vmatmul.msk.f32.gmra.mxu1 %vm997_vm0, %v1312_v5  ;;  %v1629_v5 = vld [vmem:[%s2835_s22 + $0x10] sm:$0xff] }
 0x2a0   : > { %1646 = vmatpush.msrb.mxu1 %v1639_v56 }
 0x2a2   : > { %1647 = vmatpush.msrb.mxu1 %v1638_v58 }
 0x2a4   : > { %1648 = vmatpush.msrb.mxu1 %v1637_v59  ;;  %v1206_v59 = vadd.f32 %v2633_v19, %v2585_v37  ;;  %v1844_v37 = vld [vmem:[%s2815_s12] sm:$0xff] }
 0x2a6   : > { %2038 = vmatmul.msk.f32.vlgmr.msrb.gmra.mxu3 %vm997_vm0, %v1402_v6  ;;  %1649 = vmatpush.msrb.mxu1 %v1636_v60  ;;  %v1628_v6 = vld [vmem:[%s2835_s22 + $0x8] sm:$0xff] }
 0x2a7   : > { %1621 = vmatpush.msrb.mxu3 %v2524_v0 }
 0x2a8   : > { %1650 = vmatpush.msrb.mxu1 %v1635_v61 }
 0x2a9   : > { %1622 = vmatpush.msrb.mxu3 %v2526_v1  ;;  %v1603_v1 = vld [vmem:[%s2836_s11] sm:$0xff]  ;;  %s2842_s11 = sld [smem:[#allocation25_spill]] }
 0x2aa   : > { %1651 = vmatpush.msrb.mxu1 %v1634_v62 }
 0x2ac   : > { %1652 = vmatpush.msrb.mxu1 %v1633_v63 }
 0x2ae   : > { %1653 = vmatpush.msrb.mxu1 %v1632_v2 }
 0x2af   : > { %s2843_s26 = smov %s2842_s11 }
 0x2b0   : > { %1654 = vmatpush.msrb.mxu1 %v1631_v3  ;;  %v1812_v19 = vld [vmem:[%s2843_s26 + $0x8] sm:$0xff] }
 0x2b2   : > { %1655 = vmatpush.msrb.mxu1 %v1630_v4 }
 0x2b4   : > { %1656 = vmatpush.msrb.mxu1 %v1629_v5 }
 0x2b6   : > { %1657 = vmatpush.msrb.mxu1 %v1628_v6  ;;  %v1811_v6 = vld [vmem:[%s2842_s11] sm:$0xff]  ;;  %s2067_s11 = sshll.u32 %s2468_s0, 4 }
 0x2b7   : > { %s1905_s1 = scalar_lea.hbm %s2445_s4, %s2067_s11 }
 0x2b8   : > { %1658 = vmatpush.msrb.mxu1 %v1627_v7  ;;  %s1908_s6 = sshll.u32 %s1905_s1, 4  ;;  %s1909_s6 = int_to_ptr.hbm [resolvable:$true] %s1908_s6 }
 0x2b9   : > { %s2204_s0 = sshra.s32 %s1909_s6, 4  ;;  %s2205_s0 = int_to_ptr.hbm [resolvable:$true] %s2204_s0 }
 0x2ba   : > { %s2206_s9 = scalar_lea.hbm %s2205_s0, 16  ;;  %p2211_p13 = scmp.lt.s32.totalorder %s2205_s0, %s2445_s4 }
 0x2bb   : > { %p2207_p9 = scmp.ne.s32.totalorder %s2205_s0, %s2206_s9  ;;  %p2212_p0 = scmp.lt.s32.totalorder %s2210_s2, %s2206_s9 }
 0x2bd   : > { %p2208_p10 = pnand %p2207_p9, %p2485_p5  ;;  %p2213_p1 = por %p2212_p0, %p2211_p13 }
 0x2bf   : > { %p2209_p12 = pneg %p2208_p10 }
 0x2c1   : > { %p2214_p2 = pnand %p2213_p1, %p2209_p12 }
 0x313   : > { %v1367_v21 = vpop.f32.mrf.mxu0 }
 0x314   : > { %v2638_v22 = vadd.f32 %v1367_v21, %v2595_v47  ;;  %v1390_v23 = vpop.f32.mrf.mxu1  ;;  %v1724_v21 = vld [vmem:[%s2838_s18 + $0x98] sm:$0xff] }
 0x315   : > { %v2641_v24 = vadd.f32 %v1390_v23, %v2591_v43  ;;  %v2155_v43 = vld [vmem:[%s2833_s16] ss:$0 sm:$0xff]  ;;  %s2841_s16 = sld [smem:[#allocation21_spill]] }
 0x316   : > { %v1721_v23 = vld [vmem:[%s2838_s18 + $0x80] sm:$0xff] }
 0x319   : > { %v1344_v25 = vpop.f32.mrf.mxu3 }
 0x31a   : > { %v2644_v26 = vadd.f32 %v1344_v25, %v2593_v46  ;;  %v1717_v25 = vld [vmem:[%s2838_s18 + $0x60] sm:$0xff] }
 0x31b   : > { %v2658_v41 = vpop.f32.mrf.mxu0 }
 0x31c   : > { %v2687_v8 = vpop.f32.mrf.mxu1 }
 0x31d   : > { %v1401_v60 = vadd.f32 %v2687_v8, %v1206_v59  ;;  %v1845_v8 = vld [vmem:[%s2815_s12 + $0x8] sm:$0xff] }
 0x321   : > { %v1347_v27 = vpop.f32.mrf.mxu3 }
 0x322   : > { %v2647_v28 = vadd.f32 %v1347_v27, %v2597_v49  ;;  %v1474_v49 = vld [vmem:[%s2834_s23 + $0x8] sm:$0xff] }
 0x323   : > { %v1714_v27 = vld [vmem:[%s2838_s18 + $0x48] sm:$0xff] }
 0x329   : > { %v1423_v29 = vpop.f32.mrf.mxu3 }
 0x32a   : > { %1458 = vmatmul.f32.vlgmr.msra.gmra.mxu0 %v1423_v29 }
 0x3a7   : > { %v1459_v44 = vpop.f32.mrf.mxu0 }
 0x3a8   : > { %v1466_v45 = vmul.f32 %v2154_v42, %v1459_v44  ;;  %v1728_v44 = vld [vmem:[%s2838_s18 + $0xb8] sm:$0xff] }
 0x3aa   : > { %v1471_v46 = vadd.f32 %v2155_v43, %v1466_v45  ;;  %v1674_v43 = vld [vmem:[%s2841_s16] sm:$0xff] }
 0x3ab   : > { %v1725_v45 = vld [vmem:[%s2838_s18 + $0xa0] sm:$0xff] }
 0x3ac   : > { %v1472_v47 = vmax.f32 %v1471_v46, 0.0  ;;  %v1722_v46 = vld [vmem:[%s2838_s18 + $0x88] sm:$0xff] }
 0x3ae   : > { %2039 = vmatpush.msk.msrb.mxu0 %vm1482_vm4, %v1472_v47  ;;  %v1719_v47 = vld [vmem:[%s2838_s18 + $0x70] sm:$0xff] }
 0x3af   : > { %2040 = vmatmul.msk.f32.vlgmr.msrb.gmra.mxu0 %vm1475_vm5, %v1473_v48  ;;  %v1675_v48 = vld [vmem:[%s2841_s16 + $0x8] sm:$0xff] }
 0x3b0   : > { %1767 = vmatpush.msra.mxu0 %v1727_v17 }
 0x3b2   : > { %1768 = vmatpush.msra.mxu0 %v1724_v21 }
 0x3b4   : > { %1769 = vmatpush.msra.mxu0 %v1721_v23 }
 0x3b7   : > { %2041 = vmatmul.msk.f32.gmra.mxu0 %vm1475_vm5, %v1474_v49  ;;  %v1716_v49 = vld [vmem:[%s2838_s18 + $0x58] sm:$0xff] }
 0x42c   : > { %v1503_v57 = vpop.f32.mrf.mxu0 }
 0x42d   : > { %2042 = vmatmul.msk.f32.vlgmr.msra.gmra.mxu3 %vm1521_vm6, %v1503_v57  ;;  %2044 = vmatmul.msk.f32.vlgmr.msra.gmra.mxu1 %vm1521_vm6, %v1503_v57 }
 0x42e   : > { %2046 = vmatmul.msk.f32.vlgmr.msra.gmra.mxu2 %vm1521_vm6, %v1503_v57 }
 0x434   : > { %v1506_v0 = vpop.f32.mrf.mxu0 }
 0x435   : > { %2043 = vmatmul.msk.f32.gmra.mxu3 %vm1521_vm6, %v1506_v0  ;;  %2045 = vmatmul.msk.f32.gmra.mxu1 %vm1521_vm6, %v1506_v0 }
 0x436   : > { %2047 = vmatmul.msk.f32.gmra.mxu2 %vm1521_vm6, %v1506_v0 }
 0x43d   : > { %2048 = vmatmul.msk.f32.vlgmr.msrb.gmra.mxu3 %vm997_vm0, %v1603_v1 }
 0x4aa   : > { %v1568_v9 = vpop.f32.mrf.mxu1 }
 0x4ab   : > { %v2690_v10 = vadd.f32 %v1568_v9, %v2638_v22  ;;  %v1720_v22 = vld [vmem:[%s2838_s18 + $0x78] sm:$0xff] }
 0x4ac   : > { %1746 = vmatpush.msrb.mxu2 %v1720_v22 }
 0x4ae   : > { %1747 = vmatpush.msrb.mxu2 %v1717_v25 }
 0x4b0   : > { %v1545_v11 = vpop.f32.mrf.mxu3  ;;  %1748 = vmatpush.msrb.mxu2 %v1714_v27 }
 0x4b1   : > { %v2693_v12 = vadd.f32 %v1545_v11, %v2644_v26  ;;  %v1718_v26 = vld [vmem:[%s2838_s18 + $0x68] sm:$0xff]  ;;  %v1591_v57 = vpop.f32.mrf.mxu2 }
 0x4b2   : > { %1770 = vmatpush.msra.mxu0 %v1718_v26  ;;  %v2708_v29 = vpop.f32.mrf.mxu1  ;;  %1749 = vmatpush.msrb.mxu2 %v1711_v30  ;;  %v1599_v3 = vadd.f32 %v1591_v57, %v2641_v24 }
 0x4b4   : > { %1750 = vmatpush.msrb.mxu2 %v1708_v32 }
 0x4b6   : > { %1751 = vmatpush.msrb.mxu2 %v1705_v52 }
 0x4b8   : > { %v1548_v13 = vpop.f32.mrf.mxu3 }
 0x4b9   : > { %v2696_v14 = vadd.f32 %v1548_v13, %v2647_v28  ;;  %v1715_v28 = vld [vmem:[%s2838_s18 + $0x50] sm:$0xff]  ;;  %v1594_v0 = vpop.f32.mrf.mxu2 }
 0x4ba   : > { %1771 = vmatpush.msra.mxu0 %v1715_v28  ;;  %v1602_v61 = vadd.f32 %v1594_v0, %v1401_v60 }
 0x4bc   : > { %1772 = vmatpush.msra.mxu0 %v1712_v31 }
 0x4be   : > { %1773 = vmatpush.msra.mxu0 %v1709_v33 }
 0x4c0   : > { %v1624_v15 = vpop.f32.mrf.mxu3  ;;  %1774 = vmatpush.msra.mxu0 %v1706_v53 }
 0x4c1   : > { %1659 = vmatmul.f32.vlgmr.msrb.gmra.mxu1 %v1624_v15 }
 0x53e   : > { %v1660_v36 = vpop.f32.mrf.mxu1 }
 0x53f   : > { %v1667_v38 = vmul.f32 %v2156_v34, %v1660_v36 }
 0x541   : > { %v1672_v40 = vadd.f32 %v2157_v35, %v1667_v38 }
 0x543   : > { %v1673_v42 = vmax.f32 %v1672_v40, 0.0 }
 0x545   : > { %1697 = vmatpush.msra.mxu3 %v1673_v42 }
 0x546   : > { %2049 = vmatmul.msk.f32.vlgmr.msra.gmra.mxu3 %vm1067_vm1, %v1674_v43 }
 0x547   : > { %1790 = vmatpush.msrb.mxu3 %v1728_v44 }
 0x549   : > { %1791 = vmatpush.msrb.mxu3 %v1725_v45 }
 0x54b   : > { %1792 = vmatpush.msrb.mxu3 %v1722_v46 }
 0x54d   : > { %1793 = vmatpush.msrb.mxu3 %v1719_v47 }
 0x54e   : > { %2050 = vmatmul.msk.f32.gmra.mxu3 %vm1067_vm1, %v1675_v48 }
 0x54f   : > { %1794 = vmatpush.msrb.mxu3 %v1716_v49 }
 0x551   : > { %1795 = vmatpush.msrb.mxu3 %v1713_v50 }
 0x553   : > { %1796 = vmatpush.msrb.mxu3 %v1710_v51 }
 0x555   : > { %1797 = vmatpush.msrb.mxu3 %v1707_v54 }
 0x5c9   : > { %v1699_v55 = vpop.f32.mrf.mxu3 }
 0x5ca   : > { %2051 = vmatmul.msk.f32.vlgmr.msrb.gmra.mxu2 %vm1729_vm7, %v1699_v55  ;;  %2053 = vmatmul.msk.f32.vlgmr.msra.gmra.mxu0 %vm1729_vm7, %v1699_v55 }
 0x5cb   : > { %2055 = vmatmul.msk.f32.vlgmr.msrb.gmra.mxu3 %vm1729_vm7, %v1699_v55 }
 0x5d1   : > { %v1702_v56 = vpop.f32.mrf.mxu3 }
 0x5d2   : > { %2052 = vmatmul.msk.f32.gmra.mxu2 %vm1729_vm7, %v1702_v56  ;;  %2054 = vmatmul.msk.f32.gmra.mxu0 %vm1729_vm7, %v1702_v56 }
 0x5d3   : > { %2056 = vmatmul.msk.f32.gmra.mxu3 %vm1729_vm7, %v1702_v56 }
 0x647   : > { %v1776_v24 = vpop.f32.mrf.mxu0 }
 0x648   : > { %v1806_v11 = vadd.f32 %v1776_v24, %v2690_v10 }
 0x64d   : > { %v1753_v1 = vpop.f32.mrf.mxu2 }
 0x64e   : > { %v1799_v58 = vpop.f32.mrf.mxu3  ;;  %v1805_v5 = vadd.f32 %v1753_v1, %v2693_v12  ;;  %v1183_v12 = vadd.f32 %v2635_v20, %v2587_v39 }
 0x64f   : > { %v1807_v7 = vadd.f32 %v1799_v58, %v1599_v3  ;;  %v1779_v21 = vpop.f32.mrf.mxu0 }
 0x650   : > { %v1400_v16 = vadd.f32 %v2658_v41, %v1183_v12 }
 0x652   : > { %v1601_v22 = vadd.f32 %v2708_v29, %v1400_v16 }
 0x654   : > { %v1809_v10 = vadd.f32 %v1779_v21, %v1601_v22 }
 0x655   : > { %v1756_v62 = vpop.f32.mrf.mxu2 }
 0x656   : > { %v1808_v63 = vadd.f32 %v1756_v62, %v2696_v14  ;;  %v1802_v2 = vpop.f32.mrf.mxu3  ;;  %v2158_v14 = vld [vmem:[%s2435_s20] ss:$0 sm:$0xff] }
 0x657   : > { %v1810_v4 = vadd.f32 %v1802_v2, %v1602_v61 }
 0x658   : > { %1833 = vmatpush.msra.mxu1 %v1808_v63 }
 0x659   : > { %1866 = vmatpush.msra.mxu2 %v1810_v4 }
 0x65a   : > { %1834 = vmatpush.msra.mxu1 %v1805_v5 }
 0x65b   : > { %1867 = vmatpush.msra.mxu2 %v1807_v7  ;;  %2057 = vmatmul.msk.f32.vlgmr.msra.gmra.mxu1 %vm997_vm0, %v1811_v6 }
 0x65c   : > { %2059 = vmatmul.msk.f32.vlgmr.msra.gmra.mxu2 %vm997_vm0, %v1844_v37 }
 0x663   : > { %2058 = vmatmul.msk.f32.gmra.mxu1 %vm997_vm0, %v1812_v19 }
 0x664   : > { %2060 = vmatmul.msk.f32.gmra.mxu2 %vm997_vm0, %v1845_v8 }
 0x6d8   : > { %v1836_v9 = vpop.f32.mrf.mxu1 }
 0x6d9   : > { %v1842_v13 = vadd.f32 %v1836_v9, %v1806_v11 }
 0x6df   : > { %v1869_v15 = vpop.f32.mrf.mxu2 }
 0x6e0   : > { %v1875_v17 = vadd.f32 %v1869_v15, %v1842_v13  ;;  %v1839_v25 = vpop.f32.mrf.mxu1 }
 0x6e1   : > { %v1843_v39 = vadd.f32 %v1839_v25, %v1809_v10 }
 0x6e2   : > { %v1881_v23 = vmul.f32 %v2158_v14, %v1875_v17 }
 0x6e4   : > { %v1887_v26 = vadd.f32 %v2159_v18, %v1881_v23 }
 0x6e6   : > { %v1889_v27 = vmax.f32 %v1887_v26, 0.0 }
 0x6e7   : > { %v1872_v20 = vpop.f32.mrf.mxu2 }
 0x6e8   : > { %1891 = vst [vmem:[%s940_s3] sm:$0xff] %v1889_v27  ;;  %v1876_v28 = vadd.f32 %v1872_v20, %v1843_v39 }
 0x6ea   : > { %v1882_v41 = vmul.f32 %v2158_v14, %v1876_v28 }
 0x6ec   : > { %v1888_v29 = vadd.f32 %v2159_v18, %v1882_v41 }
 0x6ee   : > { %v1890_v30 = vmax.f32 %v1888_v29, 0.0 }
 0x6f0   : > { %1892 = vst [vmem:[%s940_s3 + $0x8] sm:$0xff] %v1890_v30 }
 0x6f1   : > { %2217 = shalt.err (!%p2214_p2)
}
 0x6f2   : > { %s2290_s1 = smov 128   ;;  %s2291_s11 = smov 8  }
 0x6f3   : > { %2073 = dma.vmem_to_hbm [thread:$0]  (%p2485_p5), %s1907_s5, 256, %s1909_s6, %s1894_s8, %s2290_s1, %s2290_s1, %s2291_s11  }
 0x6f4 PF: > { %s2844_s3 = sld [smem:[#allocation27_spill]]  ;;  %p2085_p3 = scmp.ge.s32.totalorder %s2256_s15, 2 }
 0x6f6   : > { %p2080_p4 = pnand %p2085_p3, %p2489_p6 }
 0x6f8   : > { %p2081_p7 = pneg %p2080_p4 }
 0x6fa   : > { %s1923_s12 = sand.u32 1, %s2844_s3  }
 0x6fb   : > { %s1924_s13 = scalar_lea.sflag [#allocation4], %s1923_s12 }
 0x6fc   : > { %2239 = dma.done.wait (%p2081_p7), %s1924_s13, 256  }
 0x6fd   : > { %2241 = vsyncadd (%p2081_p7), %s1924_s13, 4294967040  ;;  %s2846_s15 = sld [smem:[#allocation29_spill]]  ;;  %s2849_s7 = smov %s2248_s10 }
 0x6fe   : > { %s2847_s9 = sld [smem:[#allocation28_spill]] }
 0x6ff   : > { %s2848_s11 = sld [smem:[#allocation30_spill]] }
 0x703   : > { %p72_p8 = scmp.ge.s32.totalorder %s2846_s15, 4  }
 0x704   : > { %s2850_s10 = smov %s2847_s9 }
 0x705   :  { %74 = sbr.rel (!%p72_p8) target bundleno = 56 (0x38), region = 210 }
 0x70a   :  { %1930 = vsyncpa [#allocation3], 1 }
 0x70b   :  { %1932 = vsyncpa [#allocation3 + $0x1], 1 }
 0x70c   :  { %1933 = vsyncpa [#allocation4], 1 }
 0x70d   :  { %1935 = vsyncpa [#allocation4 + $0x1], 1 }

</bundles_post_ra>
